<compile_context>
chip_gen: v7x
topology: tpu7x:2x2x1
jax: 0.10.0
libtpu: 0.0.40
codegen_flags: <defaults>
</compile_context>

<pallas_src>
import functools

import numpy as np
import jax
import jax.numpy as jnp
from jax.experimental import pallas as pl
from jax.experimental.pallas import tpu as pltpu  # noqa: F401 (TPU-specific tuning hooks)


# -----------------------------------------------------------------------------
# In-kernel helpers
# -----------------------------------------------------------------------------
def _bdot(x, w):
    """bf16 x bf16 matmul with f32 accumulation (MXU-friendly)."""
    return jnp.dot(x.astype(jnp.bfloat16), w.astype(jnp.bfloat16),
                   preferred_element_type=jnp.float32)


def _ln(x, g, b):
    """LayerNorm over the last dim, eps matches PyTorch (1e-5). f32 math."""
    m = jnp.mean(x, axis=-1, keepdims=True)
    v = jnp.mean((x - m) ** 2, axis=-1, keepdims=True)
    return (x - m) * jax.lax.rsqrt(v + 1e-5) * g + b


def _mha(q, k, v, bmask, addmask, nh, scale):
    """Multi-head attention batched over (batch, head) via block-diagonal lanes.

    q      : (Rq, H)  f32   queries (all batch elements stacked)
    k, v   : (Rk, H)  f32   keys/values (all batch elements stacked)
    bmask  : (nh*Rk, H) f32 {0,1}; row (h,b,j) keeps only head-h feature columns
    addmask: (Rq, nh*Rk) f32 {0,-1e30}; -1e30 where query-batch != key-batch
    Returns (Rq, H) with heads concatenated along features (PyTorch MHA order).
    """
    f32, bf16 = jnp.float32, jnp.bfloat16
    krep = jnp.concatenate([k] * nh, axis=0) * bmask        # (nh*Rk, H) f32
    vrep = jnp.concatenate([v] * nh, axis=0) * bmask
    s = jax.lax.dot_general(q.astype(bf16), krep.astype(bf16),
                            (((1,), (1,)), ((), ())),
                            preferred_element_type=f32) * scale + addmask
    # Global row max (>= every per-head max): exp never overflows; a head whose
    # logits are ~80+ below the row max would underflow to zeros (clamped denom),
    # which is benign for this model's logit scale.
    s = s - jnp.max(s, axis=-1, keepdims=True)
    p = jnp.exp(s).astype(bf16)                              # (Rq, nh*Rk)
    num = jnp.dot(p, vrep.astype(bf16), preferred_element_type=f32)    # (Rq, H)
    den = jnp.dot(p, bmask.astype(bf16), preferred_element_type=f32)   # per-head sums, (Rq, H)
    return num / jnp.maximum(den, 1e-20)


# -----------------------------------------------------------------------------
# The single fused kernel: encode + transformer block + cross-attn decode
# -----------------------------------------------------------------------------
def _action_gpt_kernel(
        # data
        lang_ref, patch_ref, robot_ref, prev_ref,
        # precomputed attention constants
        bm_self_ref, am_self_ref, bm_cross_ref, am_cross_ref,
        # encode weights
        wvp_ref, bvp_ref, wl_ref, bl_ref, wsp_ref, bsp_ref,
        wr1_ref, br1_ref, wr2_ref, br2_ref,
        wp1_ref, bp1_ref, wp2_ref, bp2_ref,
        aqw_ref, acqw_ref, cond_ref, lng_ref, lnb_ref,
        # transformer block weights (stand-in for the frozen causal transformer)
        g1_ref, b1_ref, wqkv_ref, bqkv_ref, wo_ref, bo_ref,
        g2_ref, b2_ref, w1_ref, m1_ref, w2_ref, m2_ref,
        # decode (cross-attention + pred MLP + fused heads)
        cwq_ref, cbq_ref, cwkv_ref, cbkv_ref, cwo_ref, cbo_ref,
        pw1_ref, pb1_ref, pw2_ref, pb2_ref, hw_ref, hb_ref,
        # output
        out_ref,
        *, B, L, P, NAQ, NP, LTOT, H, NH):
    cond = cond_ref[...]                                                # (1, H)
    scale = 1.0 / ((H // NH) ** 0.5)

    # ---- encode -------------------------------------------------------------
    pf = _bdot(patch_ref[...], wvp_ref[...]) + bvp_ref[...]             # (B*NP, pf)
    patch_emb = _bdot(pf, wsp_ref[...]) + bsp_ref[...] + cond           # (B*NP, H)

    le = _bdot(lang_ref[...], wl_ref[...]) + bl_ref[...] + cond         # (B*L, H)
    rh = jnp.maximum(_bdot(robot_ref[...], wr1_ref[...]) + br1_ref[...], 0.0)
    re = _bdot(rh, wr2_ref[...]) + br2_ref[...] + cond                  # (B, H)
    ph = jnp.maximum(_bdot(prev_ref[...], wp1_ref[...]) + bp1_ref[...], 0.0)
    pa = _bdot(ph, wp2_ref[...]) + bp2_ref[...] + cond                  # (B*P, H)
    acq = acqw_ref[...] + aqw_ref[...]                                  # (NAQ, H), no cond

    # assemble [lang | robot | prev | queries] per batch element, then one LN
    segs = []
    for b in range(B):
        segs += [le[b * L:(b + 1) * L, :], re[b:b + 1, :],
                 pa[b * P:(b + 1) * P, :], acq]
    stacked = jnp.concatenate(segs, axis=0)                             # (B*LTOT, H)
    stacked = _ln(stacked, lng_ref[...], lnb_ref[...])

    # ---- transformer block (pre-LN, bidirectional self-attention) ------------
    h1 = _ln(stacked, g1_ref[...], b1_ref[...])
    qkv = _bdot(h1, wqkv_ref[...]) + bqkv_ref[...]                      # (B*LTOT, 3H)
    q, k, v = qkv[:, 0:H], qkv[:, H:2 * H], qkv[:, 2 * H:3 * H]
    attn = _mha(q, k, v, bm_self_ref[...], am_self_ref[...], NH, scale)
    x = stacked + _bdot(attn, wo_ref[...]) + bo_ref[...]
    h2 = _ln(x, g2_ref[...], b2_ref[...])
    m = jnp.maximum(_bdot(h2, w1_ref[...]) + m1_ref[...], 0.0)
    hidden = x + _bdot(m, w2_ref[...]) + m2_ref[...]                    # (B*LTOT, H)

    # ---- decode: cross-attn over patch tokens + pred MLP + fused heads -------
    START = L + 1 + P
    aq_h = jnp.concatenate(
        [hidden[b * LTOT + START:b * LTOT + START + NAQ, :] for b in range(B)],
        axis=0)                                                         # (B*NAQ, H)
    qc = _bdot(aq_h, cwq_ref[...]) + cbq_ref[...]
    kvc = _bdot(patch_emb, cwkv_ref[...]) + cbkv_ref[...]               # fused K|V
    kc, vc = kvc[:, 0:H], kvc[:, H:2 * H]
    attc = _mha(qc, kc, vc, bm_cross_ref[...], am_cross_ref[...], NH, scale)
    ae = _bdot(attc, cwo_ref[...]) + cbo_ref[...] + aq_h                # + residual

    # pred_act_mlps: Linear(H, H/2) -> ReLU -> Linear(H/2, H/2) (no act after)
    hmid = jnp.maximum(_bdot(ae, pw1_ref[...]) + pb1_ref[...], 0.0)
    hmid = _bdot(hmid, pw2_ref[...]) + pb2_ref[...]

    preds = _bdot(hmid, hw_ref[...]) + hb_ref[...]                      # (B*NAQ, 128)
    out_ref[...] = preds.astype(out_ref.dtype)


# -----------------------------------------------------------------------------
# Trace-time attention constants (passed to the kernel as plain inputs)
# -----------------------------------------------------------------------------
def _attn_masks(B, lq, lk, H, NH):
    """Block-diagonal MHA constants; key/value column order is (head, batch, j)."""
    hd = H // NH
    ncol = NH * B * lk
    col = np.arange(ncol)
    col_head = col // (B * lk)
    col_batch = (col % (B * lk)) // lk
    feat_head = np.arange(H) // hd
    bmask = (col_head[:, None] == feat_head[None, :]).astype(np.float32)    # (ncol, H)
    row_batch = np.arange(B * lq) // lq
    addmask = np.where(row_batch[:, None] == col_batch[None, :],
                       0.0, -1e30).astype(np.float32)                       # (B*lq, ncol)
    return jnp.asarray(bmask), jnp.asarray(addmask)


# -----------------------------------------------------------------------------
# Config & deterministic parameter init
# -----------------------------------------------------------------------------
CFG = dict(
    batch=2, act_dim=7, hidden=64, seq_len=2, chunk=3, prev_buf=4,
    lang_tokens=8, vocab=50, lang_feat_dim=32,
    img_c=3, img_hw=16, patch=4, patch_feat_dim=24,
    robot_obs_dim=15, robot_states_dim=7, num_heads=8,
)
OUT_LANES = 128  # lane-padded fused head width (arm 6 | gripper 1 | zeros)


def init_params(key, cfg):
    H = cfg["hidden"]
    H2 = H // 2
    Dl = cfg["lang_feat_dim"]
    pf = cfg["patch_feat_dim"]
    raw = cfg["img_c"] * cfg["patch"] * cfg["patch"]
    A = cfg["act_dim"]
    NAQ = cfg["seq_len"] * cfg["chunk"]
    f32, bf16 = jnp.float32, jnp.bfloat16

    keys = iter(jax.random.split(key, 48))

    def w(shape, dtype=bf16, scale=0.02):
        return (scale * jax.random.normal(next(keys), shape, dtype=f32)).astype(dtype)

    def zb(n):
        return jnp.zeros((1, n), f32)

    p = {}
    # --- stand-ins for the frozen external models (opaque in the reference) ---
    p["lang_embed_table"] = w((cfg["vocab"], Dl), f32)
    p["vis_patch_w"] = w((raw, pf)); p["vis_patch_b"] = zb(pf)
    p["t_ln1_g"] = jnp.ones((1, H), f32); p["t_ln1_b"] = zb(H)
    p["t_wqkv"] = w((H, 3 * H)); p["t_bqkv"] = zb(3 * H)
    p["t_wo"] = w((H, H)); p["t_bo"] = zb(H)
    p["t_ln2_g"] = jnp.ones((1, H), f32); p["t_ln2_b"] = zb(H)
    p["t_mlp_w1"] = w((H, 2 * H)); p["t_mlp_b1"] = zb(2 * H)
    p["t_mlp_w2"] = w((2 * H, H)); p["t_mlp_b2"] = zb(H)

    # --- ActionGPT's own parameters ---
    p["embed_condition"] = w((1, H), f32)                      # nn.Embedding(1, H)
    p["embed_lang_w"] = w((Dl, H)); p["embed_lang_b"] = zb(H)
    p["embed_static_patch_w"] = w((pf, H)); p["embed_static_patch_b"] = zb(H)
    # TODO(synk): embed_static_img exists in the reference but its output is never
    # consumed when use_gripper_rgb=False -> dead compute, omitted here.
    p["robot_w1"] = w((cfg["robot_states_dim"], H2)); p["robot_b1"] = zb(H2)
    p["robot_w2"] = w((H2, H)); p["robot_b2"] = zb(H)
    p["prev_w1"] = w((A, H2)); p["prev_b1"] = zb(H2)
    p["prev_w2"] = w((H2, H)); p["prev_b2"] = zb(H)
    p["action_queries"] = w((1, H), f32)                       # nn.Embedding(1, H)
    p["action_chunk_queries"] = jnp.zeros((NAQ, H), f32)       # .fill_(0)
    p["embed_ln_g"] = jnp.ones((1, H), f32); p["embed_ln_b"] = zb(H)
    # cross-attention (8 heads): Q separate, K|V fused; dropout=0.1 is identity at inference
    p["ca_wq"] = w((H, H)); p["ca_bq"] = zb(H)
    p["ca_wkv"] = w((H, 2 * H)); p["ca_bkv"] = zb(2 * H)
    p["ca_wo"] = w((H, H)); p["ca_bo"] = zb(H)
    p["pred_w1"] = w((H, H2)); p["pred_b1"] = zb(H2)
    p["pred_w2"] = w((H2, H2)); p["pred_b2"] = zb(H2)
    # arm (A-1) | gripper (1) heads fused, lane-padded to 128 for a dense store
    hw = jnp.zeros((H2, OUT_LANES), f32)
    hw = hw.at[:, :A].set(w((H2, A), f32))
    p["head_w"] = hw.astype(bf16)
    p["head_b"] = zb(OUT_LANES)
    return p


# -----------------------------------------------------------------------------
# Forward pass (single pallas_call)
# -----------------------------------------------------------------------------
def _full_spec(shape):
    nd = len(shape)
    return pl.BlockSpec(tuple(int(s) for s in shape), lambda *_: (0,) * nd)


def action_gpt_forward(p, rgb_static, language, robot_obs, prev_actions, cfg):
    B, T, C, Hh, Ww = rgb_static.shape
    H = cfg["hidden"]
    NH = cfg["num_heads"]
    L = cfg["lang_tokens"]
    P = cfg["prev_buf"]
    A = cfg["act_dim"]
    NAQ = cfg["seq_len"] * cfg["chunk"]
    ps = cfg["patch"]
    NP = (Hh // ps) * (Ww // ps)
    LTOT = L + 1 + P + NAQ

    # frozen language-model stand-in: embedding lookup (gather stays in XLA)
    lang_hidden = jnp.take(p["lang_embed_table"], language, axis=0)          # (B, L, Dl)
    lang2 = lang_hidden.reshape(B * L, -1)

    # patchify (layout plumbing for the frozen vision-model stand-in)
    img = rgb_static.reshape(B, C, Hh, Ww)
    patches = img.reshape(B, C, Hh // ps, ps, Ww // ps, ps)
    patches = patches.transpose(0, 2, 4, 1, 3, 5).reshape(B * NP, C * ps * ps)

    # robot states: tcp_pos(3) + tcp_ori(3) + gripper_action(1)
    robot_states = jnp.concatenate(
        [robot_obs[..., :3], robot_obs[..., 3:6], robot_obs[..., -1:]], axis=-1)   # (B, 7)
    prev2 = prev_actions.reshape(B * P, A)

    # NOTE: the reference builds full_attention_mask but never passes it to the
    # causal transformer (only inputs_embeds), so it is dead compute -> omitted.

    # trace-time attention constants (become XLA constants; DMA'd once)
    bm_self, am_self = _attn_masks(B, LTOT, LTOT, H, NH)
    bm_cross, am_cross = _attn_masks(B, NAQ, NP, H, NH)

    inputs = [
        lang2, patches, robot_states, prev2,
        bm_self, am_self, bm_cross, am_cross,
        p["vis_patch_w"], p["vis_patch_b"],
        p["embed_lang_w"], p["embed_lang_b"],
        p["embed_static_patch_w"], p["embed_static_patch_b"],
        p["robot_w1"], p["robot_b1"], p["robot_w2"], p["robot_b2"],
        p["prev_w1"], p["prev_b1"], p["prev_w2"], p["prev_b2"],
        p["action_queries"], p["action_chunk_queries"],
        p["embed_condition"], p["embed_ln_g"], p["embed_ln_b"],
        p["t_ln1_g"], p["t_ln1_b"], p["t_wqkv"], p["t_bqkv"],
        p["t_wo"], p["t_bo"], p["t_ln2_g"], p["t_ln2_b"],
        p["t_mlp_w1"], p["t_mlp_b1"], p["t_mlp_w2"], p["t_mlp_b2"],
        p["ca_wq"], p["ca_bq"], p["ca_wkv"], p["ca_bkv"],
        p["ca_wo"], p["ca_bo"],
        p["pred_w1"], p["pred_b1"], p["pred_w2"], p["pred_b2"],
        p["head_w"], p["head_b"],
    ]

    preds = pl.pallas_call(
        functools.partial(_action_gpt_kernel, B=B, L=L, P=P, NAQ=NAQ, NP=NP,
                          LTOT=LTOT, H=H, NH=NH),
        out_shape=jax.ShapeDtypeStruct((B * NAQ, OUT_LANES), jnp.float32),
        in_specs=[_full_spec(a.shape) for a in inputs],
        out_specs=_full_spec((B * NAQ, OUT_LANES)),
    )(*inputs)

    arm = preds[:, :A - 1].reshape(B, cfg["seq_len"], cfg["chunk"], A - 1)
    grip = preds[:, A - 1:A].reshape(B, cfg["seq_len"], cfg["chunk"], 1)
    return {"arm_action_preds": arm, "gripper_action_preds": grip}


# -----------------------------------------------------------------------------
# Driver
# -----------------------------------------------------------------------------
if __name__ == "__main__":
    cfg = CFG
    key = jax.random.PRNGKey(0)
    kp, k1, k2, k3, k4 = jax.random.split(key, 5)

    params = init_params(kp, cfg)

    B = cfg["batch"]
    rgb_static = jax.random.normal(
        k1, (B, 1, cfg["img_c"], cfg["img_hw"], cfg["img_hw"]), dtype=jnp.float32)
    language = jax.random.randint(k2, (B, cfg["lang_tokens"]), 0, cfg["vocab"])
    robot_obs = jax.random.normal(k3, (B, cfg["robot_obs_dim"]), dtype=jnp.float32)
    prev_actions = jax.random.normal(
        k4, (B, cfg["prev_buf"], cfg["act_dim"]), dtype=jnp.float32)

    fwd = jax.jit(functools.partial(action_gpt_forward, cfg=cfg))
    out = fwd(params, rgb_static, language, robot_obs, prev_actions)
    jax.block_until_ready(out)

    assert out["arm_action_preds"].shape == (B, cfg["seq_len"], cfg["chunk"], cfg["act_dim"] - 1)
    assert out["gripper_action_preds"].shape == (B, cfg["seq_len"], cfg["chunk"], 1)
    assert bool(jnp.all(jnp.isfinite(out["arm_action_preds"])))
    assert bool(jnp.all(jnp.isfinite(out["gripper_action_preds"])))
    print("KERNEL_OK")
</pallas_src>

<mosaic_0001>
module attributes {stable_mosaic.version = 11 : i64} {
  func.func @_action_gpt_kernel(%arg0: memref<16x32xf32, #tpu.memory_space<vmem>>, %arg1: memref<32x48xf32, #tpu.memory_space<vmem>>, %arg2: memref<2x7xf32, #tpu.memory_space<vmem>>, %arg3: memref<8x7xf32, #tpu.memory_space<vmem>>, %arg4: memref<304x64xf32, #tpu.memory_space<vmem>>, %arg5: memref<38x304xf32, #tpu.memory_space<vmem>>, %arg6: memref<256x64xf32, #tpu.memory_space<vmem>>, %arg7: memref<12x256xf32, #tpu.memory_space<vmem>>, %arg8: memref<48x24xbf16, #tpu.memory_space<vmem>>, %arg9: memref<1x24xf32, #tpu.memory_space<vmem>>, %arg10: memref<32x64xbf16, #tpu.memory_space<vmem>>, %arg11: memref<1x64xf32, #tpu.memory_space<vmem>>, %arg12: memref<24x64xbf16, #tpu.memory_space<vmem>>, %arg13: memref<1x64xf32, #tpu.memory_space<vmem>>, %arg14: memref<7x32xbf16, #tpu.memory_space<vmem>>, %arg15: memref<1x32xf32, #tpu.memory_space<vmem>>, %arg16: memref<32x64xbf16, #tpu.memory_space<vmem>>, %arg17: memref<1x64xf32, #tpu.memory_space<vmem>>, %arg18: memref<7x32xbf16, #tpu.memory_space<vmem>>, %arg19: memref<1x32xf32, #tpu.memory_space<vmem>>, %arg20: memref<32x64xbf16, #tpu.memory_space<vmem>>, %arg21: memref<1x64xf32, #tpu.memory_space<vmem>>, %arg22: memref<1x64xf32, #tpu.memory_space<vmem>>, %arg23: memref<6x64xf32, #tpu.memory_space<vmem>>, %arg24: memref<1x64xf32, #tpu.memory_space<vmem>>, %arg25: memref<1x64xf32, #tpu.memory_space<vmem>>, %arg26: memref<1x64xf32, #tpu.memory_space<vmem>>, %arg27: memref<1x64xf32, #tpu.memory_space<vmem>>, %arg28: memref<1x64xf32, #tpu.memory_space<vmem>>, %arg29: memref<64x192xbf16, #tpu.memory_space<vmem>>, %arg30: memref<1x192xf32, #tpu.memory_space<vmem>>, %arg31: memref<64x64xbf16, #tpu.memory_space<vmem>>, %arg32: memref<1x64xf32, #tpu.memory_space<vmem>>, %arg33: memref<1x64xf32, #tpu.memory_space<vmem>>, %arg34: memref<1x64xf32, #tpu.memory_space<vmem>>, %arg35: memref<64x128xbf16, #tpu.memory_space<vmem>>, %arg36: memref<1x128xf32, #tpu.memory_space<vmem>>, %arg37: memref<128x64xbf16, #tpu.memory_space<vmem>>, %arg38: memref<1x64xf32, #tpu.memory_space<vmem>>, %arg39: memref<64x64xbf16, #tpu.memory_space<vmem>>, %arg40: memref<1x64xf32, #tpu.memory_space<vmem>>, %arg41: memref<64x128xbf16, #tpu.memory_space<vmem>>, %arg42: memref<1x128xf32, #tpu.memory_space<vmem>>, %arg43: memref<64x64xbf16, #tpu.memory_space<vmem>>, %arg44: memref<1x64xf32, #tpu.memory_space<vmem>>, %arg45: memref<64x32xbf16, #tpu.memory_space<vmem>>, %arg46: memref<1x32xf32, #tpu.memory_space<vmem>>, %arg47: memref<32x32xbf16, #tpu.memory_space<vmem>>, %arg48: memref<1x32xf32, #tpu.memory_space<vmem>>, %arg49: memref<32x128xbf16, #tpu.memory_space<vmem>>, %arg50: memref<1x128xf32, #tpu.memory_space<vmem>>, %arg51: memref<12x128xf32, #tpu.memory_space<vmem>>) attributes {dimension_semantics = [], scalar_prefetch = 0 : i64, scratch_operands = 0 : i64, tpu.core_type = #tpu.core_type<tc>} {
    %c0 = arith.constant 0 : index
    %c0_0 = arith.constant 0 : index
    %0 = vector.load %arg24[%c0, %c0_0] : memref<1x64xf32, #tpu.memory_space<vmem>>, vector<1x64xf32>
    %c0_1 = arith.constant 0 : index
    %c0_2 = arith.constant 0 : index
    %1 = vector.load %arg1[%c0_1, %c0_2] : memref<32x48xf32, #tpu.memory_space<vmem>>, vector<32x48xf32>
    %c0_3 = arith.constant 0 : index
    %c0_4 = arith.constant 0 : index
    %2 = vector.load %arg8[%c0_3, %c0_4] : memref<48x24xbf16, #tpu.memory_space<vmem>>, vector<48x24xbf16>
    %3 = arith.truncf %1 : vector<32x48xf32> to vector<32x48xbf16>
    %cst = arith.constant dense<0.000000e+00> : vector<32x24xf32>
    %4 = tpu.matmul %3, %2, %cst {dimension_numbers = #tpu.dot_dimension_numbers<[1], [0], [0], [1], [0, 0, 1, 1], [], []>} : vector<32x48xbf16>, vector<48x24xbf16>, vector<32x24xf32> -> vector<32x24xf32>
    %c0_5 = arith.constant 0 : index
    %c0_6 = arith.constant 0 : index
    %5 = vector.load %arg9[%c0_5, %c0_6] : memref<1x24xf32, #tpu.memory_space<vmem>>, vector<1x24xf32>
    %6 = vector.broadcast %5 : vector<1x24xf32> to vector<32x24xf32>
    %7 = arith.addf %4, %6 : vector<32x24xf32>
    %c0_7 = arith.constant 0 : index
    %c0_8 = arith.constant 0 : index
    %8 = vector.load %arg12[%c0_7, %c0_8] : memref<24x64xbf16, #tpu.memory_space<vmem>>, vector<24x64xbf16>
    %9 = arith.truncf %7 : vector<32x24xf32> to vector<32x24xbf16>
    %cst_9 = arith.constant dense<0.000000e+00> : vector<32x64xf32>
    %10 = tpu.matmul %9, %8, %cst_9 {dimension_numbers = #tpu.dot_dimension_numbers<[1], [0], [0], [1], [0, 0, 1, 1], [], []>} : vector<32x24xbf16>, vector<24x64xbf16>, vector<32x64xf32> -> vector<32x64xf32>
    %c0_10 = arith.constant 0 : index
    %c0_11 = arith.constant 0 : index
    %11 = vector.load %arg13[%c0_10, %c0_11] : memref<1x64xf32, #tpu.memory_space<vmem>>, vector<1x64xf32>
    %12 = vector.broadcast %11 : vector<1x64xf32> to vector<32x64xf32>
    %13 = arith.addf %10, %12 : vector<32x64xf32>
    %14 = vector.broadcast %0 : vector<1x64xf32> to vector<32x64xf32>
    %15 = arith.addf %13, %14 : vector<32x64xf32>
    %c0_12 = arith.constant 0 : index
    %c0_13 = arith.constant 0 : index
    %16 = vector.load %arg0[%c0_12, %c0_13] : memref<16x32xf32, #tpu.memory_space<vmem>>, vector<16x32xf32>
    %c0_14 = arith.constant 0 : index
    %c0_15 = arith.constant 0 : index
    %17 = vector.load %arg10[%c0_14, %c0_15] : memref<32x64xbf16, #tpu.memory_space<vmem>>, vector<32x64xbf16>
    %18 = arith.truncf %16 : vector<16x32xf32> to vector<16x32xbf16>
    %cst_16 = arith.constant dense<0.000000e+00> : vector<16x64xf32>
    %19 = tpu.matmul %18, %17, %cst_16 {dimension_numbers = #tpu.dot_dimension_numbers<[1], [0], [0], [1], [0, 0, 1, 1], [], []>} : vector<16x32xbf16>, vector<32x64xbf16>, vector<16x64xf32> -> vector<16x64xf32>
    %c0_17 = arith.constant 0 : index
    %c0_18 = arith.constant 0 : index
    %20 = vector.load %arg11[%c0_17, %c0_18] : memref<1x64xf32, #tpu.memory_space<vmem>>, vector<1x64xf32>
    %21 = vector.broadcast %20 : vector<1x64xf32> to vector<16x64xf32>
    %22 = arith.addf %19, %21 : vector<16x64xf32>
    %23 = vector.broadcast %0 : vector<1x64xf32> to vector<16x64xf32>
    %24 = arith.addf %22, %23 : vector<16x64xf32>
    %c0_19 = arith.constant 0 : index
    %c0_20 = arith.constant 0 : index
    %25 = vector.load %arg2[%c0_19, %c0_20] : memref<2x7xf32, #tpu.memory_space<vmem>>, vector<2x7xf32>
    %c0_21 = arith.constant 0 : index
    %c0_22 = arith.constant 0 : index
    %26 = vector.load %arg14[%c0_21, %c0_22] : memref<7x32xbf16, #tpu.memory_space<vmem>>, vector<7x32xbf16>
    %27 = arith.truncf %25 : vector<2x7xf32> to vector<2x7xbf16>
    %cst_23 = arith.constant dense<0.000000e+00> : vector<2x32xf32>
    %28 = tpu.matmul %27, %26, %cst_23 {dimension_numbers = #tpu.dot_dimension_numbers<[1], [0], [0], [1], [0, 0, 1, 1], [], []>} : vector<2x7xbf16>, vector<7x32xbf16>, vector<2x32xf32> -> vector<2x32xf32>
    %c0_24 = arith.constant 0 : index
    %c0_25 = arith.constant 0 : index
    %29 = vector.load %arg15[%c0_24, %c0_25] : memref<1x32xf32, #tpu.memory_space<vmem>>, vector<1x32xf32>
    %30 = vector.broadcast %29 : vector<1x32xf32> to vector<2x32xf32>
    %31 = arith.addf %28, %30 : vector<2x32xf32>
    %cst_26 = arith.constant 0.000000e+00 : f32
    %32 = vector.broadcast %cst_26 : f32 to vector<2x32xf32>
    %33 = arith.maximumf %31, %32 : vector<2x32xf32>
    %c0_27 = arith.constant 0 : index
    %c0_28 = arith.constant 0 : index
    %34 = vector.load %arg16[%c0_27, %c0_28] : memref<32x64xbf16, #tpu.memory_space<vmem>>, vector<32x64xbf16>
    %35 = arith.truncf %33 : vector<2x32xf32> to vector<2x32xbf16>
    %cst_29 = arith.constant dense<0.000000e+00> : vector<2x64xf32>
    %36 = tpu.matmul %35, %34, %cst_29 {dimension_numbers = #tpu.dot_dimension_numbers<[1], [0], [0], [1], [0, 0, 1, 1], [], []>} : vector<2x32xbf16>, vector<32x64xbf16>, vector<2x64xf32> -> vector<2x64xf32>
    %c0_30 = arith.constant 0 : index
    %c0_31 = arith.constant 0 : index
    %37 = vector.load %arg17[%c0_30, %c0_31] : memref<1x64xf32, #tpu.memory_space<vmem>>, vector<1x64xf32>
    %38 = vector.broadcast %37 : vector<1x64xf32> to vector<2x64xf32>
    %39 = arith.addf %36, %38 : vector<2x64xf32>
    %40 = vector.broadcast %0 : vector<1x64xf32> to vector<2x64xf32>
    %41 = arith.addf %39, %40 : vector<2x64xf32>
    %c0_32 = arith.constant 0 : index
    %c0_33 = arith.constant 0 : index
    %42 = vector.load %arg3[%c0_32, %c0_33] : memref<8x7xf32, #tpu.memory_space<vmem>>, vector<8x7xf32>
    %c0_34 = arith.constant 0 : index
    %c0_35 = arith.constant 0 : index
    %43 = vector.load %arg18[%c0_34, %c0_35] : memref<7x32xbf16, #tpu.memory_space<vmem>>, vector<7x32xbf16>
    %44 = arith.truncf %42 : vector<8x7xf32> to vector<8x7xbf16>
    %cst_36 = arith.constant dense<0.000000e+00> : vector<8x32xf32>
    %45 = tpu.matmul %44, %43, %cst_36 {dimension_numbers = #tpu.dot_dimension_numbers<[1], [0], [0], [1], [0, 0, 1, 1], [], []>} : vector<8x7xbf16>, vector<7x32xbf16>, vector<8x32xf32> -> vector<8x32xf32>
    %c0_37 = arith.constant 0 : index
    %c0_38 = arith.constant 0 : index
    %46 = vector.load %arg19[%c0_37, %c0_38] : memref<1x32xf32, #tpu.memory_space<vmem>>, vector<1x32xf32>
    %47 = vector.broadcast %46 : vector<1x32xf32> to vector<8x32xf32>
    %48 = arith.addf %45, %47 : vector<8x32xf32>
    %cst_39 = arith.constant 0.000000e+00 : f32
    %49 = vector.broadcast %cst_39 : f32 to vector<8x32xf32>
    %50 = arith.maximumf %48, %49 : vector<8x32xf32>
    %c0_40 = arith.constant 0 : index
    %c0_41 = arith.constant 0 : index
    %51 = vector.load %arg20[%c0_40, %c0_41] : memref<32x64xbf16, #tpu.memory_space<vmem>>, vector<32x64xbf16>
    %52 = arith.truncf %50 : vector<8x32xf32> to vector<8x32xbf16>
    %cst_42 = arith.constant dense<0.000000e+00> : vector<8x64xf32>
    %53 = tpu.matmul %52, %51, %cst_42 {dimension_numbers = #tpu.dot_dimension_numbers<[1], [0], [0], [1], [0, 0, 1, 1], [], []>} : vector<8x32xbf16>, vector<32x64xbf16>, vector<8x64xf32> -> vector<8x64xf32>
    %c0_43 = arith.constant 0 : index
    %c0_44 = arith.constant 0 : index
    %54 = vector.load %arg21[%c0_43, %c0_44] : memref<1x64xf32, #tpu.memory_space<vmem>>, vector<1x64xf32>
    %55 = vector.broadcast %54 : vector<1x64xf32> to vector<8x64xf32>
    %56 = arith.addf %53, %55 : vector<8x64xf32>
    %57 = vector.broadcast %0 : vector<1x64xf32> to vector<8x64xf32>
    %58 = arith.addf %56, %57 : vector<8x64xf32>
    %c0_45 = arith.constant 0 : index
    %c0_46 = arith.constant 0 : index
    %59 = vector.load %arg23[%c0_45, %c0_46] : memref<6x64xf32, #tpu.memory_space<vmem>>, vector<6x64xf32>
    %c0_47 = arith.constant 0 : index
    %c0_48 = arith.constant 0 : index
    %60 = vector.load %arg22[%c0_47, %c0_48] : memref<1x64xf32, #tpu.memory_space<vmem>>, vector<1x64xf32>
    %61 = vector.broadcast %60 : vector<1x64xf32> to vector<6x64xf32>
    %62 = arith.addf %59, %61 : vector<6x64xf32>
    %63 = vector.extract_strided_slice %24 {offsets = [0, 0], sizes = [8, 64], strides = [1, 1]} : vector<16x64xf32> to vector<8x64xf32>
    %64 = vector.extract_strided_slice %41 {offsets = [0, 0], sizes = [1, 64], strides = [1, 1]} : vector<2x64xf32> to vector<1x64xf32>
    %65 = vector.extract_strided_slice %58 {offsets = [0, 0], sizes = [4, 64], strides = [1, 1]} : vector<8x64xf32> to vector<4x64xf32>
    %66 = vector.extract_strided_slice %24 {offsets = [8, 0], sizes = [8, 64], strides = [1, 1]} : vector<16x64xf32> to vector<8x64xf32>
    %67 = vector.extract_strided_slice %41 {offsets = [1, 0], sizes = [1, 64], strides = [1, 1]} : vector<2x64xf32> to vector<1x64xf32>
    %68 = vector.extract_strided_slice %58 {offsets = [4, 0], sizes = [4, 64], strides = [1, 1]} : vector<8x64xf32> to vector<4x64xf32>
    %69 = tpu.concatenate %63, %64, %65, %62, %66, %67, %68, %62 in 0 : vector<8x64xf32>, vector<1x64xf32>, vector<4x64xf32>, vector<6x64xf32>, vector<8x64xf32>, vector<1x64xf32>, vector<4x64xf32>, vector<6x64xf32> -> vector<38x64xf32>
    %c0_49 = arith.constant 0 : index
    %c0_50 = arith.constant 0 : index
    %70 = vector.load %arg25[%c0_49, %c0_50] : memref<1x64xf32, #tpu.memory_space<vmem>>, vector<1x64xf32>
    %c0_51 = arith.constant 0 : index
    %c0_52 = arith.constant 0 : index
    %71 = vector.load %arg26[%c0_51, %c0_52] : memref<1x64xf32, #tpu.memory_space<vmem>>, vector<1x64xf32>
    %cst_53 = arith.constant dense<0.000000e+00> : vector<38xf32>
    %72 = vector.multi_reduction <add>, %69, %cst_53 [1] : vector<38x64xf32> to vector<38xf32>
    %73 = vector.shape_cast %72 : vector<38xf32> to vector<38x1xf32>
    %cst_54 = arith.constant 6.400000e+01 : f32
    %74 = vector.broadcast %cst_54 : f32 to vector<38x1xf32>
    %75 = arith.divf %73, %74 : vector<38x1xf32>
    %76 = vector.broadcast %75 : vector<38x1xf32> to vector<38x64xf32>
    %77 = arith.subf %69, %76 : vector<38x64xf32>
    %78 = arith.mulf %77, %77 : vector<38x64xf32>
    %cst_55 = arith.constant dense<0.000000e+00> : vector<38xf32>
    %79 = vector.multi_reduction <add>, %78, %cst_55 [1] : vector<38x64xf32> to vector<38xf32>
    %80 = vector.shape_cast %79 : vector<38xf32> to vector<38x1xf32>
    %cst_56 = arith.constant 6.400000e+01 : f32
    %81 = vector.broadcast %cst_56 : f32 to vector<38x1xf32>
    %82 = arith.divf %80, %81 : vector<38x1xf32>
    %83 = vector.broadcast %75 : vector<38x1xf32> to vector<38x64xf32>
    %84 = arith.subf %69, %83 : vector<38x64xf32>
    %cst_57 = arith.constant 9.99999974E-6 : f32
    %85 = vector.broadcast %cst_57 : f32 to vector<38x1xf32>
    %86 = arith.addf %82, %85 : vector<38x1xf32>
    %87 = math.rsqrt %86 : vector<38x1xf32>
    %88 = vector.broadcast %87 : vector<38x1xf32> to vector<38x64xf32>
    %89 = arith.mulf %84, %88 : vector<38x64xf32>
    %90 = vector.broadcast %70 : vector<1x64xf32> to vector<38x64xf32>
    %91 = arith.mulf %89, %90 : vector<38x64xf32>
    %92 = vector.broadcast %71 : vector<1x64xf32> to vector<38x64xf32>
    %93 = arith.addf %91, %92 : vector<38x64xf32>
    %c0_58 = arith.constant 0 : index
    %c0_59 = arith.constant 0 : index
    %94 = vector.load %arg27[%c0_58, %c0_59] : memref<1x64xf32, #tpu.memory_space<vmem>>, vector<1x64xf32>
    %c0_60 = arith.constant 0 : index
    %c0_61 = arith.constant 0 : index
    %95 = vector.load %arg28[%c0_60, %c0_61] : memref<1x64xf32, #tpu.memory_space<vmem>>, vector<1x64xf32>
    %cst_62 = arith.constant dense<0.000000e+00> : vector<38xf32>
    %96 = vector.multi_reduction <add>, %93, %cst_62 [1] : vector<38x64xf32> to vector<38xf32>
    %97 = vector.shape_cast %96 : vector<38xf32> to vector<38x1xf32>
    %cst_63 = arith.constant 6.400000e+01 : f32
    %98 = vector.broadcast %cst_63 : f32 to vector<38x1xf32>
    %99 = arith.divf %97, %98 : vector<38x1xf32>
    %100 = vector.broadcast %99 : vector<38x1xf32> to vector<38x64xf32>
    %101 = arith.subf %93, %100 : vector<38x64xf32>
    %102 = arith.mulf %101, %101 : vector<38x64xf32>
    %cst_64 = arith.constant dense<0.000000e+00> : vector<38xf32>
    %103 = vector.multi_reduction <add>, %102, %cst_64 [1] : vector<38x64xf32> to vector<38xf32>
    %104 = vector.shape_cast %103 : vector<38xf32> to vector<38x1xf32>
    %cst_65 = arith.constant 6.400000e+01 : f32
    %105 = vector.broadcast %cst_65 : f32 to vector<38x1xf32>
    %106 = arith.divf %104, %105 : vector<38x1xf32>
    %107 = vector.broadcast %99 : vector<38x1xf32> to vector<38x64xf32>
    %108 = arith.subf %93, %107 : vector<38x64xf32>
    %cst_66 = arith.constant 9.99999974E-6 : f32
    %109 = vector.broadcast %cst_66 : f32 to vector<38x1xf32>
    %110 = arith.addf %106, %109 : vector<38x1xf32>
    %111 = math.rsqrt %110 : vector<38x1xf32>
    %112 = vector.broadcast %111 : vector<38x1xf32> to vector<38x64xf32>
    %113 = arith.mulf %108, %112 : vector<38x64xf32>
    %114 = vector.broadcast %94 : vector<1x64xf32> to vector<38x64xf32>
    %115 = arith.mulf %113, %114 : vector<38x64xf32>
    %116 = vector.broadcast %95 : vector<1x64xf32> to vector<38x64xf32>
    %117 = arith.addf %115, %116 : vector<38x64xf32>
    %c0_67 = arith.constant 0 : index
    %c0_68 = arith.constant 0 : index
    %118 = vector.load %arg29[%c0_67, %c0_68] : memref<64x192xbf16, #tpu.memory_space<vmem>>, vector<64x192xbf16>
    %119 = arith.truncf %117 : vector<38x64xf32> to vector<38x64xbf16>
    %cst_69 = arith.constant dense<0.000000e+00> : vector<38x192xf32>
    %120 = tpu.matmul %119, %118, %cst_69 {dimension_numbers = #tpu.dot_dimension_numbers<[1], [0], [0], [1], [0, 0, 1, 1], [], []>} : vector<38x64xbf16>, vector<64x192xbf16>, vector<38x192xf32> -> vector<38x192xf32>
    %c0_70 = arith.constant 0 : index
    %c0_71 = arith.constant 0 : index
    %121 = vector.load %arg30[%c0_70, %c0_71] : memref<1x192xf32, #tpu.memory_space<vmem>>, vector<1x192xf32>
    %122 = vector.broadcast %121 : vector<1x192xf32> to vector<38x192xf32>
    %123 = arith.addf %120, %122 : vector<38x192xf32>
    %124 = vector.extract_strided_slice %123 {offsets = [0, 0], sizes = [38, 64], strides = [1, 1]} : vector<38x192xf32> to vector<38x64xf32>
    %125 = vector.extract_strided_slice %123 {offsets = [0, 64], sizes = [38, 64], strides = [1, 1]} : vector<38x192xf32> to vector<38x64xf32>
    %126 = vector.extract_strided_slice %123 {offsets = [0, 128], sizes = [38, 64], strides = [1, 1]} : vector<38x192xf32> to vector<38x64xf32>
    %c0_72 = arith.constant 0 : index
    %c0_73 = arith.constant 0 : index
    %127 = vector.load %arg4[%c0_72, %c0_73] : memref<304x64xf32, #tpu.memory_space<vmem>>, vector<304x64xf32>
    %c0_74 = arith.constant 0 : index
    %c0_75 = arith.constant 0 : index
    %128 = vector.load %arg5[%c0_74, %c0_75] : memref<38x304xf32, #tpu.memory_space<vmem>>, vector<38x304xf32>
    %129 = tpu.concatenate %125, %125, %125, %125, %125, %125, %125, %125 in 0 : vector<38x64xf32>, vector<38x64xf32>, vector<38x64xf32>, vector<38x64xf32>, vector<38x64xf32>, vector<38x64xf32>, vector<38x64xf32>, vector<38x64xf32> -> vector<304x64xf32>
    %130 = arith.mulf %129, %127 : vector<304x64xf32>
    %131 = tpu.concatenate %126, %126, %126, %126, %126, %126, %126, %126 in 0 : vector<38x64xf32>, vector<38x64xf32>, vector<38x64xf32>, vector<38x64xf32>, vector<38x64xf32>, vector<38x64xf32>, vector<38x64xf32>, vector<38x64xf32> -> vector<304x64xf32>
    %132 = arith.mulf %131, %127 : vector<304x64xf32>
    %133 = arith.truncf %124 : vector<38x64xf32> to vector<38x64xbf16>
    %134 = arith.truncf %130 : vector<304x64xf32> to vector<304x64xbf16>
    %cst_76 = arith.constant dense<0.000000e+00> : vector<38x304xf32>
    %135 = tpu.matmul %133, %134, %cst_76 {dimension_numbers = #tpu.dot_dimension_numbers<[1], [1], [0], [0], [0, 0, 1, 0], [], []>} : vector<38x64xbf16>, vector<304x64xbf16>, vector<38x304xf32> -> vector<38x304xf32>
    %cst_77 = arith.constant 0.353553385 : f32
    %136 = vector.broadcast %cst_77 : f32 to vector<38x304xf32>
    %137 = arith.mulf %135, %136 : vector<38x304xf32>
    %138 = arith.addf %137, %128 : vector<38x304xf32>
    %cst_78 = arith.constant dense<0xFF800000> : vector<38xf32>
    %139 = vector.multi_reduction <maximumf>, %138, %cst_78 [1] : vector<38x304xf32> to vector<38xf32>
    %140 = vector.shape_cast %139 : vector<38xf32> to vector<38x1xf32>
    %141 = vector.broadcast %140 : vector<38x1xf32> to vector<38x304xf32>
    %142 = arith.subf %138, %141 : vector<38x304xf32>
    %143 = math.exp %142 : vector<38x304xf32>
    %144 = arith.truncf %143 : vector<38x304xf32> to vector<38x304xbf16>
    %145 = arith.truncf %132 : vector<304x64xf32> to vector<304x64xbf16>
    %cst_79 = arith.constant dense<0.000000e+00> : vector<38x64xf32>
    %146 = tpu.matmul %144, %145, %cst_79 {dimension_numbers = #tpu.dot_dimension_numbers<[1], [0], [0], [1], [0, 0, 1, 1], [], []>} : vector<38x304xbf16>, vector<304x64xbf16>, vector<38x64xf32> -> vector<38x64xf32>
    %147 = arith.truncf %127 : vector<304x64xf32> to vector<304x64xbf16>
    %cst_80 = arith.constant dense<0.000000e+00> : vector<38x64xf32>
    %148 = tpu.matmul %144, %147, %cst_80 {dimension_numbers = #tpu.dot_dimension_numbers<[1], [0], [0], [1], [0, 0, 1, 1], [], []>} : vector<38x304xbf16>, vector<304x64xbf16>, vector<38x64xf32> -> vector<38x64xf32>
    %cst_81 = arith.constant 9.99999968E-21 : f32
    %149 = vector.broadcast %cst_81 : f32 to vector<38x64xf32>
    %150 = arith.maximumf %148, %149 : vector<38x64xf32>
    %151 = arith.divf %146, %150 : vector<38x64xf32>
    %c0_82 = arith.constant 0 : index
    %c0_83 = arith.constant 0 : index
    %152 = vector.load %arg31[%c0_82, %c0_83] : memref<64x64xbf16, #tpu.memory_space<vmem>>, vector<64x64xbf16>
    %153 = arith.truncf %151 : vector<38x64xf32> to vector<38x64xbf16>
    %cst_84 = arith.constant dense<0.000000e+00> : vector<38x64xf32>
    %154 = tpu.matmul %153, %152, %cst_84 {dimension_numbers = #tpu.dot_dimension_numbers<[1], [0], [0], [1], [0, 0, 1, 1], [], []>} : vector<38x64xbf16>, vector<64x64xbf16>, vector<38x64xf32> -> vector<38x64xf32>
    %155 = arith.addf %93, %154 : vector<38x64xf32>
    %c0_85 = arith.constant 0 : index
    %c0_86 = arith.constant 0 : index
    %156 = vector.load %arg32[%c0_85, %c0_86] : memref<1x64xf32, #tpu.memory_space<vmem>>, vector<1x64xf32>
    %157 = vector.broadcast %156 : vector<1x64xf32> to vector<38x64xf32>
    %158 = arith.addf %155, %157 : vector<38x64xf32>
    %c0_87 = arith.constant 0 : index
    %c0_88 = arith.constant 0 : index
    %159 = vector.load %arg33[%c0_87, %c0_88] : memref<1x64xf32, #tpu.memory_space<vmem>>, vector<1x64xf32>
    %c0_89 = arith.constant 0 : index
    %c0_90 = arith.constant 0 : index
    %160 = vector.load %arg34[%c0_89, %c0_90] : memref<1x64xf32, #tpu.memory_space<vmem>>, vector<1x64xf32>
    %cst_91 = arith.constant dense<0.000000e+00> : vector<38xf32>
    %161 = vector.multi_reduction <add>, %158, %cst_91 [1] : vector<38x64xf32> to vector<38xf32>
    %162 = vector.shape_cast %161 : vector<38xf32> to vector<38x1xf32>
    %cst_92 = arith.constant 6.400000e+01 : f32
    %163 = vector.broadcast %cst_92 : f32 to vector<38x1xf32>
    %164 = arith.divf %162, %163 : vector<38x1xf32>
    %165 = vector.broadcast %164 : vector<38x1xf32> to vector<38x64xf32>
    %166 = arith.subf %158, %165 : vector<38x64xf32>
    %167 = arith.mulf %166, %166 : vector<38x64xf32>
    %cst_93 = arith.constant dense<0.000000e+00> : vector<38xf32>
    %168 = vector.multi_reduction <add>, %167, %cst_93 [1] : vector<38x64xf32> to vector<38xf32>
    %169 = vector.shape_cast %168 : vector<38xf32> to vector<38x1xf32>
    %cst_94 = arith.constant 6.400000e+01 : f32
    %170 = vector.broadcast %cst_94 : f32 to vector<38x1xf32>
    %171 = arith.divf %169, %170 : vector<38x1xf32>
    %172 = vector.broadcast %164 : vector<38x1xf32> to vector<38x64xf32>
    %173 = arith.subf %158, %172 : vector<38x64xf32>
    %cst_95 = arith.constant 9.99999974E-6 : f32
    %174 = vector.broadcast %cst_95 : f32 to vector<38x1xf32>
    %175 = arith.addf %171, %174 : vector<38x1xf32>
    %176 = math.rsqrt %175 : vector<38x1xf32>
    %177 = vector.broadcast %176 : vector<38x1xf32> to vector<38x64xf32>
    %178 = arith.mulf %173, %177 : vector<38x64xf32>
    %179 = vector.broadcast %159 : vector<1x64xf32> to vector<38x64xf32>
    %180 = arith.mulf %178, %179 : vector<38x64xf32>
    %181 = vector.broadcast %160 : vector<1x64xf32> to vector<38x64xf32>
    %182 = arith.addf %180, %181 : vector<38x64xf32>
    %c0_96 = arith.constant 0 : index
    %c0_97 = arith.constant 0 : index
    %183 = vector.load %arg35[%c0_96, %c0_97] : memref<64x128xbf16, #tpu.memory_space<vmem>>, vector<64x128xbf16>
    %184 = arith.truncf %182 : vector<38x64xf32> to vector<38x64xbf16>
    %cst_98 = arith.constant dense<0.000000e+00> : vector<38x128xf32>
    %185 = tpu.matmul %184, %183, %cst_98 {dimension_numbers = #tpu.dot_dimension_numbers<[1], [0], [0], [1], [0, 0, 1, 1], [], []>} : vector<38x64xbf16>, vector<64x128xbf16>, vector<38x128xf32> -> vector<38x128xf32>
    %c0_99 = arith.constant 0 : index
    %c0_100 = arith.constant 0 : index
    %186 = vector.load %arg36[%c0_99, %c0_100] : memref<1x128xf32, #tpu.memory_space<vmem>>, vector<1x128xf32>
    %187 = vector.broadcast %186 : vector<1x128xf32> to vector<38x128xf32>
    %188 = arith.addf %185, %187 : vector<38x128xf32>
    %cst_101 = arith.constant 0.000000e+00 : f32
    %189 = vector.broadcast %cst_101 : f32 to vector<38x128xf32>
    %190 = arith.maximumf %188, %189 : vector<38x128xf32>
    %c0_102 = arith.constant 0 : index
    %c0_103 = arith.constant 0 : index
    %191 = vector.load %arg37[%c0_102, %c0_103] : memref<128x64xbf16, #tpu.memory_space<vmem>>, vector<128x64xbf16>
    %192 = arith.truncf %190 : vector<38x128xf32> to vector<38x128xbf16>
    %cst_104 = arith.constant dense<0.000000e+00> : vector<38x64xf32>
    %193 = tpu.matmul %192, %191, %cst_104 {dimension_numbers = #tpu.dot_dimension_numbers<[1], [0], [0], [1], [0, 0, 1, 1], [], []>} : vector<38x128xbf16>, vector<128x64xbf16>, vector<38x64xf32> -> vector<38x64xf32>
    %194 = arith.addf %158, %193 : vector<38x64xf32>
    %c0_105 = arith.constant 0 : index
    %c0_106 = arith.constant 0 : index
    %195 = vector.load %arg38[%c0_105, %c0_106] : memref<1x64xf32, #tpu.memory_space<vmem>>, vector<1x64xf32>
    %196 = vector.broadcast %195 : vector<1x64xf32> to vector<38x64xf32>
    %197 = arith.addf %194, %196 : vector<38x64xf32>
    %198 = vector.extract_strided_slice %197 {offsets = [13, 0], sizes = [6, 64], strides = [1, 1]} : vector<38x64xf32> to vector<6x64xf32>
    %199 = vector.extract_strided_slice %197 {offsets = [32, 0], sizes = [6, 64], strides = [1, 1]} : vector<38x64xf32> to vector<6x64xf32>
    %200 = tpu.concatenate %198, %199 in 0 : vector<6x64xf32>, vector<6x64xf32> -> vector<12x64xf32>
    %c0_107 = arith.constant 0 : index
    %c0_108 = arith.constant 0 : index
    %201 = vector.load %arg39[%c0_107, %c0_108] : memref<64x64xbf16, #tpu.memory_space<vmem>>, vector<64x64xbf16>
    %202 = arith.truncf %200 : vector<12x64xf32> to vector<12x64xbf16>
    %cst_109 = arith.constant dense<0.000000e+00> : vector<12x64xf32>
    %203 = tpu.matmul %202, %201, %cst_109 {dimension_numbers = #tpu.dot_dimension_numbers<[1], [0], [0], [1], [0, 0, 1, 1], [], []>} : vector<12x64xbf16>, vector<64x64xbf16>, vector<12x64xf32> -> vector<12x64xf32>
    %c0_110 = arith.constant 0 : index
    %c0_111 = arith.constant 0 : index
    %204 = vector.load %arg40[%c0_110, %c0_111] : memref<1x64xf32, #tpu.memory_space<vmem>>, vector<1x64xf32>
    %205 = vector.broadcast %204 : vector<1x64xf32> to vector<12x64xf32>
    %206 = arith.addf %203, %205 : vector<12x64xf32>
    %c0_112 = arith.constant 0 : index
    %c0_113 = arith.constant 0 : index
    %207 = vector.load %arg41[%c0_112, %c0_113] : memref<64x128xbf16, #tpu.memory_space<vmem>>, vector<64x128xbf16>
    %208 = arith.truncf %15 : vector<32x64xf32> to vector<32x64xbf16>
    %cst_114 = arith.constant dense<0.000000e+00> : vector<32x128xf32>
    %209 = tpu.matmul %208, %207, %cst_114 {dimension_numbers = #tpu.dot_dimension_numbers<[1], [0], [0], [1], [0, 0, 1, 1], [], []>} : vector<32x64xbf16>, vector<64x128xbf16>, vector<32x128xf32> -> vector<32x128xf32>
    %c0_115 = arith.constant 0 : index
    %c0_116 = arith.constant 0 : index
    %210 = vector.load %arg42[%c0_115, %c0_116] : memref<1x128xf32, #tpu.memory_space<vmem>>, vector<1x128xf32>
    %211 = vector.broadcast %210 : vector<1x128xf32> to vector<32x128xf32>
    %212 = arith.addf %209, %211 : vector<32x128xf32>
    %213 = vector.extract_strided_slice %212 {offsets = [0, 0], sizes = [32, 64], strides = [1, 1]} : vector<32x128xf32> to vector<32x64xf32>
    %214 = vector.extract_strided_slice %212 {offsets = [0, 64], sizes = [32, 64], strides = [1, 1]} : vector<32x128xf32> to vector<32x64xf32>
    %c0_117 = arith.constant 0 : index
    %c0_118 = arith.constant 0 : index
    %215 = vector.load %arg6[%c0_117, %c0_118] : memref<256x64xf32, #tpu.memory_space<vmem>>, vector<256x64xf32>
    %c0_119 = arith.constant 0 : index
    %c0_120 = arith.constant 0 : index
    %216 = vector.load %arg7[%c0_119, %c0_120] : memref<12x256xf32, #tpu.memory_space<vmem>>, vector<12x256xf32>
    %217 = tpu.concatenate %213, %213, %213, %213, %213, %213, %213, %213 in 0 : vector<32x64xf32>, vector<32x64xf32>, vector<32x64xf32>, vector<32x64xf32>, vector<32x64xf32>, vector<32x64xf32>, vector<32x64xf32>, vector<32x64xf32> -> vector<256x64xf32>
    %218 = arith.mulf %217, %215 : vector<256x64xf32>
    %219 = tpu.concatenate %214, %214, %214, %214, %214, %214, %214, %214 in 0 : vector<32x64xf32>, vector<32x64xf32>, vector<32x64xf32>, vector<32x64xf32>, vector<32x64xf32>, vector<32x64xf32>, vector<32x64xf32>, vector<32x64xf32> -> vector<256x64xf32>
    %220 = arith.mulf %219, %215 : vector<256x64xf32>
    %221 = arith.truncf %206 : vector<12x64xf32> to vector<12x64xbf16>
    %222 = arith.truncf %218 : vector<256x64xf32> to vector<256x64xbf16>
    %cst_121 = arith.constant dense<0.000000e+00> : vector<12x256xf32>
    %223 = tpu.matmul %221, %222, %cst_121 {dimension_numbers = #tpu.dot_dimension_numbers<[1], [1], [0], [0], [0, 0, 1, 0], [], []>} : vector<12x64xbf16>, vector<256x64xbf16>, vector<12x256xf32> -> vector<12x256xf32>
    %cst_122 = arith.constant 0.353553385 : f32
    %224 = vector.broadcast %cst_122 : f32 to vector<12x256xf32>
    %225 = arith.mulf %223, %224 : vector<12x256xf32>
    %226 = arith.addf %225, %216 : vector<12x256xf32>
    %cst_123 = arith.constant dense<0xFF800000> : vector<12xf32>
    %227 = vector.multi_reduction <maximumf>, %226, %cst_123 [1] : vector<12x256xf32> to vector<12xf32>
    %228 = vector.shape_cast %227 : vector<12xf32> to vector<12x1xf32>
    %229 = vector.broadcast %228 : vector<12x1xf32> to vector<12x256xf32>
    %230 = arith.subf %226, %229 : vector<12x256xf32>
    %231 = math.exp %230 : vector<12x256xf32>
    %232 = arith.truncf %231 : vector<12x256xf32> to vector<12x256xbf16>
    %233 = arith.truncf %220 : vector<256x64xf32> to vector<256x64xbf16>
    %cst_124 = arith.constant dense<0.000000e+00> : vector<12x64xf32>
    %234 = tpu.matmul %232, %233, %cst_124 {dimension_numbers = #tpu.dot_dimension_numbers<[1], [0], [0], [1], [0, 0, 1, 1], [], []>} : vector<12x256xbf16>, vector<256x64xbf16>, vector<12x64xf32> -> vector<12x64xf32>
    %235 = arith.truncf %215 : vector<256x64xf32> to vector<256x64xbf16>
    %cst_125 = arith.constant dense<0.000000e+00> : vector<12x64xf32>
    %236 = tpu.matmul %232, %235, %cst_125 {dimension_numbers = #tpu.dot_dimension_numbers<[1], [0], [0], [1], [0, 0, 1, 1], [], []>} : vector<12x256xbf16>, vector<256x64xbf16>, vector<12x64xf32> -> vector<12x64xf32>
    %cst_126 = arith.constant 9.99999968E-21 : f32
    %237 = vector.broadcast %cst_126 : f32 to vector<12x64xf32>
    %238 = arith.maximumf %236, %237 : vector<12x64xf32>
    %239 = arith.divf %234, %238 : vector<12x64xf32>
    %c0_127 = arith.constant 0 : index
    %c0_128 = arith.constant 0 : index
    %240 = vector.load %arg43[%c0_127, %c0_128] : memref<64x64xbf16, #tpu.memory_space<vmem>>, vector<64x64xbf16>
    %241 = arith.truncf %239 : vector<12x64xf32> to vector<12x64xbf16>
    %cst_129 = arith.constant dense<0.000000e+00> : vector<12x64xf32>
    %242 = tpu.matmul %241, %240, %cst_129 {dimension_numbers = #tpu.dot_dimension_numbers<[1], [0], [0], [1], [0, 0, 1, 1], [], []>} : vector<12x64xbf16>, vector<64x64xbf16>, vector<12x64xf32> -> vector<12x64xf32>
    %c0_130 = arith.constant 0 : index
    %c0_131 = arith.constant 0 : index
    %243 = vector.load %arg44[%c0_130, %c0_131] : memref<1x64xf32, #tpu.memory_space<vmem>>, vector<1x64xf32>
    %244 = vector.broadcast %243 : vector<1x64xf32> to vector<12x64xf32>
    %245 = arith.addf %242, %244 : vector<12x64xf32>
    %246 = arith.addf %245, %200 : vector<12x64xf32>
    %c0_132 = arith.constant 0 : index
    %c0_133 = arith.constant 0 : index
    %247 = vector.load %arg45[%c0_132, %c0_133] : memref<64x32xbf16, #tpu.memory_space<vmem>>, vector<64x32xbf16>
    %248 = arith.truncf %246 : vector<12x64xf32> to vector<12x64xbf16>
    %cst_134 = arith.constant dense<0.000000e+00> : vector<12x32xf32>
    %249 = tpu.matmul %248, %247, %cst_134 {dimension_numbers = #tpu.dot_dimension_numbers<[1], [0], [0], [1], [0, 0, 1, 1], [], []>} : vector<12x64xbf16>, vector<64x32xbf16>, vector<12x32xf32> -> vector<12x32xf32>
    %c0_135 = arith.constant 0 : index
    %c0_136 = arith.constant 0 : index
    %250 = vector.load %arg46[%c0_135, %c0_136] : memref<1x32xf32, #tpu.memory_space<vmem>>, vector<1x32xf32>
    %251 = vector.broadcast %250 : vector<1x32xf32> to vector<12x32xf32>
    %252 = arith.addf %249, %251 : vector<12x32xf32>
    %cst_137 = arith.constant 0.000000e+00 : f32
    %253 = vector.broadcast %cst_137 : f32 to vector<12x32xf32>
    %254 = arith.maximumf %252, %253 : vector<12x32xf32>
    %c0_138 = arith.constant 0 : index
    %c0_139 = arith.constant 0 : index
    %255 = vector.load %arg47[%c0_138, %c0_139] : memref<32x32xbf16, #tpu.memory_space<vmem>>, vector<32x32xbf16>
    %256 = arith.truncf %254 : vector<12x32xf32> to vector<12x32xbf16>
    %cst_140 = arith.constant dense<0.000000e+00> : vector<12x32xf32>
    %257 = tpu.matmul %256, %255, %cst_140 {dimension_numbers = #tpu.dot_dimension_numbers<[1], [0], [0], [1], [0, 0, 1, 1], [], []>} : vector<12x32xbf16>, vector<32x32xbf16>, vector<12x32xf32> -> vector<12x32xf32>
    %c0_141 = arith.constant 0 : index
    %c0_142 = arith.constant 0 : index
    %258 = vector.load %arg48[%c0_141, %c0_142] : memref<1x32xf32, #tpu.memory_space<vmem>>, vector<1x32xf32>
    %259 = vector.broadcast %258 : vector<1x32xf32> to vector<12x32xf32>
    %260 = arith.addf %257, %259 : vector<12x32xf32>
    %c0_143 = arith.constant 0 : index
    %c0_144 = arith.constant 0 : index
    %261 = vector.load %arg49[%c0_143, %c0_144] : memref<32x128xbf16, #tpu.memory_space<vmem>>, vector<32x128xbf16>
    %262 = arith.truncf %260 : vector<12x32xf32> to vector<12x32xbf16>
    %cst_145 = arith.constant dense<0.000000e+00> : vector<12x128xf32>
    %263 = tpu.matmul %262, %261, %cst_145 {dimension_numbers = #tpu.dot_dimension_numbers<[1], [0], [0], [1], [0, 0, 1, 1], [], []>} : vector<12x32xbf16>, vector<32x128xbf16>, vector<12x128xf32> -> vector<12x128xf32>
    %c0_146 = arith.constant 0 : index
    %c0_147 = arith.constant 0 : index
    %264 = vector.load %arg50[%c0_146, %c0_147] : memref<1x128xf32, #tpu.memory_space<vmem>>, vector<1x128xf32>
    %265 = vector.broadcast %264 : vector<1x128xf32> to vector<12x128xf32>
    %266 = arith.addf %263, %265 : vector<12x128xf32>
    %c0_148 = arith.constant 0 : index
    %c0_149 = arith.constant 0 : index
    %267 = vector.load %arg51[%c0_148, %c0_149] : memref<12x128xf32, #tpu.memory_space<vmem>>, vector<12x128xf32>
    tpu.vector_store %arg51[%c0_148, %c0_149], %266 {strides = array<i32>} : memref<12x128xf32, #tpu.memory_space<vmem>>, vector<12x128xf32>,
    return
  }
}

</mosaic_0001>

<bundles_post_ra>
// kernel: action_gpt_forward.1
= control target key start
LH: loop header
LB: loop body
LE: loop exit
PB: predicated region body
PF: predicated region fallthrough
CT: control target
= control target key end

     0   :  { %s4961_s6 = smov 1   ;;  %s4962_s10 = smov 2   ;;  %s7098_s0 = inlined_call_operand.smem [shape: u32[52], index: -1, kind: input, shape index: {}] }
   0x1   :  { %s5037_s5 = sld [smem:[%s7098_s0]]   ;;  %s4963_s14 = smov 3  }
   0x2   :  { %s5042_s9 = sld [smem:[%s7098_s0 + %s4961_s6]]   ;;  %s4964_s18 = smov 4  }
   0x3   :  { %s5047_s13 = sld [smem:[%s7098_s0 + %s4962_s10]]   ;;  %s4965_s22 = smov 5  }
   0x4   :  { %s5052_s17 = sld [smem:[%s7098_s0 + %s4963_s14]]   ;;  %s4966_s26 = smov 6  }
   0x5   :  { %s5057_s21 = sld [smem:[%s7098_s0 + %s4964_s18]]   ;;  %s4967_s30 = smov 7  }
   0x6   :  { %s5062_s25 = sld [smem:[%s7098_s0 + %s4965_s22]]   ;;  %s4968_s4 = smov 8  }
   0x7   :  { %7205 = sst [smem:[#allocation28_spill]] %s5037_s5  ;;  %s4969_s10 = smov 9  }
   0x8   :  { %s5067_s29 = sld [smem:[%s7098_s0 + %s4966_s26]]   ;;  %s4970_s15 = smov 10  }
   0x9   :  { %s5072_s3 = sld [smem:[%s7098_s0 + %s4967_s30]]   ;;  %s4971_s20 = smov 11  }
   0xa   :  { %7206 = sst [smem:[#allocation29_spill]] %s5052_s17  ;;  %s4972_s26 = smov 12  }
   0xb   :  { %7207 = sst [smem:[#allocation30_spill]] %s5057_s21  ;;  %s4973_s1 = smov 13  }
   0xc   :  { %7208 = sst [smem:[#allocation31_spill]] %s5062_s25  ;;  %s4974_s7 = smov 14  }
   0xd   :  { %s5077_s8 = sld [smem:[%s7098_s0 + %s4968_s4]]   ;;  %s4976_s22 = smov 16  }
   0xe   :  { %7209 = sst [smem:[#allocation32_spill]] %s5067_s29  ;;  %s4977_s28 = smov 17  }
   0xf   :  { %7210 = sst [smem:[#allocation33_spill]] %s5072_s3 }
  0x10   :  { %s5082_s14 = sld [smem:[%s7098_s0 + %s4969_s10]]  }
  0x11   :  { %s5087_s19 = sld [smem:[%s7098_s0 + %s4970_s15]]   ;;  %s4975_s15 = smov 15  }
  0x12   :  { %s5092_s24 = sld [smem:[%s7098_s0 + %s4971_s20]]  }
  0x13   :  { %s5097_s30 = sld [smem:[%s7098_s0 + %s4972_s26]]  }
  0x14   :  { %s5102_s6 = sld [smem:[%s7098_s0 + %s4973_s1]]  }
  0x15   :  { %s5107_s12 = sld [smem:[%s7098_s0 + %s4974_s7]]   ;;  %s4978_s7 = smov 18  }
  0x16   :  { %7211 = sst [smem:[#allocation34_spill]] %s5082_s14 }
  0x17   :  { %7212 = sst [smem:[#allocation35_spill]] %s5087_s19 }
  0x18   :  { %7213 = sst [smem:[#allocation36_spill]] %s5092_s24 }
  0x19   :  { %7214 = sst [smem:[#allocation37_spill]] %s5097_s30 }
  0x1a   :  { %7215 = sst [smem:[#allocation38_spill]] %s5102_s6 }
  0x1b   :  { %s5112_s20 = sld [smem:[%s7098_s0 + %s4975_s15]]   ;;  %s4979_s15 = smov 19  }
  0x1c   :  { %s5117_s27 = sld [smem:[%s7098_s0 + %s4976_s22]]   ;;  %s4980_s22 = smov 20  }
  0x1d   :  { %s5122_s4 = sld [smem:[%s7098_s0 + %s4977_s28]]   ;;  %s4981_s28 = smov 21  }
  0x1e   :  { %s5127_s3 = sld [smem:[%s7098_s0 + %s4978_s7]]   ;;  %s4982_s7 = smov 22  }
  0x1f   :  { %s5132_s29 = sld [smem:[%s7098_s0 + %s4979_s15]]   ;;  %s4983_s15 = smov 23  }
  0x20   :  { %s5137_s25 = sld [smem:[%s7098_s0 + %s4980_s22]]   ;;  %s4984_s22 = smov 24  }
  0x21   :  { %7216 = sst [smem:[#allocation39_spill]] %s5112_s20 }
  0x22   :  { %7217 = sst [smem:[#allocation40_spill]] %s5117_s27 }
  0x23   :  { %7218 = sst [smem:[#allocation41_spill]] %s5122_s4 }
  0x24   :  { %7219 = sst [smem:[#allocation42_spill]] %s5127_s3 }
  0x25   :  { %7220 = sst [smem:[#allocation43_spill]] %s5132_s29 }
  0x26   :  { %7221 = sst [smem:[#allocation44_spill]] %s5137_s25 }
  0x27   :  { %s5142_s21 = sld [smem:[%s7098_s0 + %s4981_s28]]   ;;  %s4985_s28 = smov 25  }
  0x28   :  { %s5147_s4 = sld [smem:[%s7098_s0 + %s4982_s7]]   ;;  %s4986_s7 = smov 26  }
  0x29   :  { %s5152_s24 = sld [smem:[%s7098_s0 + %s4983_s15]]   ;;  %s4987_s15 = smov 27  }
  0x2a   :  { %s5157_s6 = sld [smem:[%s7098_s0 + %s4984_s22]]   ;;  %s4988_s22 = smov 28  }
  0x2d   :  { %7222 = sst [smem:[#allocation45_spill]] %s5142_s21 }
  0x2e   :  { %7223 = sst [smem:[#allocation46_spill]] %s5147_s4 }
  0x2f   :  { %7224 = sst [smem:[#allocation47_spill]] %s5152_s24 }
  0x30   :  { %7225 = sst [smem:[#allocation48_spill]] %s5157_s6 }
  0x31   :  { %s5162_s21 = sld [smem:[%s7098_s0 + %s4985_s28]]   ;;  %s4989_s28 = smov 29  }
  0x32   :  { %s5167_s4 = sld [smem:[%s7098_s0 + %s4986_s7]]   ;;  %s4990_s7 = smov 30  }
  0x33   :  { %s5172_s24 = sld [smem:[%s7098_s0 + %s4987_s15]]   ;;  %s4991_s15 = smov 31  }
  0x34   :  { %s5177_s6 = sld [smem:[%s7098_s0 + %s4988_s22]]   ;;  %s4992_s22 = smov 32  }
  0x35   :  { %s5197_s25 = sld [smem:[%s7098_s0 + %s4992_s22]]   ;;  %s4996_s22 = smov 36  }
  0x36   :  { %s5217_s29 = sld [smem:[%s7098_s0 + %s4996_s22]]   ;;  %s5000_s22 = smov 40  }
  0x37   :  { %7226 = sst [smem:[#allocation49_spill]] %s5162_s21 }
  0x38   :  { %7227 = sst [smem:[#allocation50_spill]] %s5167_s4 }
  0x39   :  { %7228 = sst [smem:[#allocation51_spill]] %s5172_s24 }
  0x3a   :  { %s5182_s21 = sld [smem:[%s7098_s0 + %s4989_s28]]   ;;  %s4993_s28 = smov 33  }
  0x3b   :  { %s5187_s4 = sld [smem:[%s7098_s0 + %s4990_s7]]   ;;  %s4994_s7 = smov 34  }
  0x3c   :  { %s5192_s24 = sld [smem:[%s7098_s0 + %s4991_s15]]   ;;  %s4995_s15 = smov 35  }
  0x3d   :  { %s5237_s20 = sld [smem:[%s7098_s0 + %s5000_s22]]   ;;  %s5004_s22 = smov 44  }
  0x3e   :  { %s5257_s14 = sld [smem:[%s7098_s0 + %s5004_s22]]   ;;  %s5008_s22 = smov 48  }
  0x3f   :  { %s5277_s17 = sld [smem:[%s7098_s0 + %s5008_s22]]  }
  0x40   :  { %7229 = sst [smem:[#allocation52_spill]] %s5182_s21 }
  0x41   :  { %7230 = sst [smem:[#allocation53_spill]] %s5187_s4 }
  0x42   :  { %7231 = sst [smem:[#allocation54_spill]] %s5192_s24 }
  0x43   :  { %s5202_s21 = sld [smem:[%s7098_s0 + %s4993_s28]]   ;;  %s4997_s28 = smov 37  }
  0x44   :  { %s5207_s4 = sld [smem:[%s7098_s0 + %s4994_s7]]   ;;  %s4998_s7 = smov 38  }
  0x45   :  { %s5212_s24 = sld [smem:[%s7098_s0 + %s4995_s15]]   ;;  %s4999_s15 = smov 39  }
  0x46   :  { %s5222_s27 = sld [smem:[%s7098_s0 + %s4997_s28]]   ;;  %s5001_s28 = smov 41  }
  0x47   :  { %s5227_s5 = sld [smem:[%s7098_s0 + %s4998_s7]]   ;;  %s5002_s7 = smov 42  }
  0x48   :  { %s5247_s19 = sld [smem:[%s7098_s0 + %s5002_s7]]   ;;  %s5006_s7 = smov 46  }
  0x49   :  { %s5267_s30 = sld [smem:[%s7098_s0 + %s5006_s7]]   ;;  %s5010_s7 = smov 50  }
  0x4a   :  { %s5287_s3 = sld [smem:[%s7098_s0 + %s5010_s7]]  }
  0x4b   :  { %7232 = sst [smem:[#allocation55_spill]] %s5212_s24 }
  0x4c   :  { %7233 = sst [smem:[#allocation56_spill]] %s5222_s27 }
  0x4d   :  { %s5232_s24 = sld [smem:[%s7098_s0 + %s4999_s15]]   ;;  %s5003_s15 = smov 43  }
  0x4e   :  { %s5242_s27 = sld [smem:[%s7098_s0 + %s5001_s28]]   ;;  %s5005_s28 = smov 45  }
  0x53   :  { %7234 = sst [smem:[#allocation57_spill]] %s5232_s24 }
  0x54   :  { %7235 = sst [smem:[#allocation58_spill]] %s5242_s27 }
  0x55   :  { %s5252_s24 = sld [smem:[%s7098_s0 + %s5003_s15]]   ;;  %s5007_s15 = smov 47  }
  0x56   :  { %s5262_s27 = sld [smem:[%s7098_s0 + %s5005_s28]]   ;;  %s5009_s28 = smov 49  }
  0x5b   :  { %7236 = sst [smem:[#allocation59_spill]] %s5252_s24 }
  0x5c   :  { %7237 = sst [smem:[#allocation60_spill]] %s5262_s27 }
  0x5d   :  { %s5272_s24 = sld [smem:[%s7098_s0 + %s5007_s15]]   ;;  %s5011_s15 = smov 51  }
  0x5e   :  { %s5282_s27 = sld [smem:[%s7098_s0 + %s5009_s28]]  }
  0x63   :  { %7238 = sst [smem:[#allocation61_spill]] %s5272_s24 }
  0x64   :  { %s5292_s24 = sld [smem:[%s7098_s0 + %s5011_s15]]  }
  0x65   :  { %108 = vsyncpa [#allocation3], 0 }
  0x66   :  { %109 = vsyncpa [#allocation5], 0 }
  0x67   :  { %110 = vsyncpa [#allocation8], 0 }
  0x68   :  { %111 = vsyncpa [#allocation11], 0 }
  0x69   :  { %112 = vsyncpa [#allocation14], 0 }
  0x6a   :  { %113 = vsyncpa [#allocation17], 0 }
  0x6b   :  { %114 = vsyncpa [#allocation20], 0  ;;  %s5012_s22 = smov [#allocation4]   ;;  %s5013_s26 = smov [#allocation7]  }
  0x6c   :  { %s193_s23 = sshll.u32 %s5012_s22, 4  ;;  %s213_s28 = sshll.u32 %s5013_s26, 4  ;;  %s194_s23 = int_to_ptr.vmem [resolvable:$true] %s193_s23  ;;  %s214_s28 = int_to_ptr.vmem [resolvable:$true] %s213_s28 }
  0x6d   :  { %s4683_s1 = scalar_lea.hbm %s5197_s25, 16 }
  0x6e   :  { %p4684_p0 = scmp.ne.s32.totalorder %s5197_s25, %s4683_s1  ;;  %p4687_p1 = scmp.lt.u32.totalorder %s4683_s1, %s5197_s25 }
  0x70   :  { %p4689_p2 = pnand %p4687_p1, %p4684_p0 }
  0x72   :  { %4692 = shalt.err (!%p4689_p2)
}
  0x73   :  { %s4693_s0 = scalar_lea.vmem %s194_s23, 16  ;;  %s4697_s2 = scalar_lea.vmem %s194_s23, 32 }
  0x74   :  { %p4694_p3 = scmp.ne.s32.totalorder %s194_s23, %s4693_s0  ;;  %p4698_p4 = scmp.lt.s32.totalorder %s194_s23, %s194_s23 }
  0x75   :  { %p4699_p5 = scmp.lt.s32.totalorder %s4697_s2, %s4693_s0 }
  0x77   :  { %p4700_p6 = por %p4699_p5, %p4698_p4 }
  0x79   :  { %p4701_p7 = pnand %p4700_p6, %p4694_p3 }
  0x7b   :  { %4704 = shalt.err (!%p4701_p7)
}
  0x7c   :  { %196 = dma.hbm_to_vmem [thread:$0]  %s5197_s25, 16, %s194_s23, [#allocation5]  }
  0x7d   :  { %s4705_s7 = scalar_lea.hbm %s5207_s4, 16 }
  0x7e   :  { %p4706_p8 = scmp.ne.s32.totalorder %s5207_s4, %s4705_s7  ;;  %p4709_p9 = scmp.lt.u32.totalorder %s4705_s7, %s5207_s4 }
  0x80   :  { %p4711_p10 = pnand %p4709_p9, %p4706_p8 }
  0x82   :  { %4714 = shalt.err (!%p4711_p10)
}
  0x83   :  { %s4715_s10 = scalar_lea.vmem %s214_s28, 16  ;;  %s4719_s11 = scalar_lea.vmem %s214_s28, 32 }
  0x84   :  { %p4716_p11 = scmp.ne.s32.totalorder %s214_s28, %s4715_s10  ;;  %p4720_p12 = scmp.lt.s32.totalorder %s214_s28, %s214_s28 }
  0x85   :  { %p4721_p13 = scmp.lt.s32.totalorder %s4719_s11, %s4715_s10 }
  0x87   :  { %p4722_p0 = por %p4721_p13, %p4720_p12 }
  0x89   :  { %p4723_p1 = pnand %p4722_p0, %p4716_p11 }
  0x8b   :  { %4726 = shalt.err (!%p4723_p1)
}
  0x8c   :  { %216 = dma.hbm_to_vmem [thread:$0]  %s5207_s4, 16, %s214_s28, [#allocation8]  }
  0x8d   :  { %s5014_s15 = smov [#allocation10]   ;;  %s5015_s16 = smov [#allocation13]  }
  0x8e   :  { %s237_s25 = sshll.u32 %s5014_s15, 4  ;;  %s261_s18 = sshll.u32 %s5015_s16, 4  ;;  %s238_s25 = int_to_ptr.vmem [resolvable:$true] %s237_s25  ;;  %s262_s18 = int_to_ptr.vmem [resolvable:$true] %s261_s18 }
  0x8f   :  { %s4727_s22 = scalar_lea.hbm %s5227_s5, 16 }
  0x90   :  { %p4728_p2 = scmp.ne.s32.totalorder %s5227_s5, %s4727_s22  ;;  %p4731_p3 = scmp.lt.u32.totalorder %s4727_s22, %s5227_s5 }
  0x92   :  { %p4733_p4 = pnand %p4731_p3, %p4728_p2 }
  0x94   :  { %4736 = shalt.err (!%p4733_p4)
}
  0x95   :  { %s4737_s23 = scalar_lea.vmem %s238_s25, 16  ;;  %s4741_s26 = scalar_lea.vmem %s238_s25, 32 }
  0x96   :  { %p4738_p5 = scmp.ne.s32.totalorder %s238_s25, %s4737_s23  ;;  %p4742_p6 = scmp.lt.s32.totalorder %s238_s25, %s238_s25 }
  0x97   :  { %p4743_p7 = scmp.lt.s32.totalorder %s4741_s26, %s4737_s23 }
  0x99   :  { %p4744_p8 = por %p4743_p7, %p4742_p6 }
  0x9b   :  { %p4745_p9 = pnand %p4744_p8, %p4738_p5 }
  0x9d   :  { %4748 = shalt.err (!%p4745_p9)
}
  0x9e   :  { %240 = dma.hbm_to_vmem [thread:$0]  %s5227_s5, 16, %s238_s25, [#allocation11]  }
  0x9f   :  { %s4749_s4 = scalar_lea.hbm %s5247_s19, 16 }
  0xa0   :  { %p4750_p10 = scmp.ne.s32.totalorder %s5247_s19, %s4749_s4  ;;  %p4753_p11 = scmp.lt.u32.totalorder %s4749_s4, %s5247_s19 }
  0xa2   :  { %p4755_p12 = pnand %p4753_p11, %p4750_p10 }
  0xa4   :  { %4758 = shalt.err (!%p4755_p12)
}
  0xa5   :  { %s4759_s28 = scalar_lea.vmem %s262_s18, 16  ;;  %s4763_s1 = scalar_lea.vmem %s262_s18, 32 }
  0xa6   :  { %p4760_p13 = scmp.ne.s32.totalorder %s262_s18, %s4759_s28  ;;  %p4764_p0 = scmp.lt.s32.totalorder %s262_s18, %s262_s18 }
  0xa7   :  { %p4765_p1 = scmp.lt.s32.totalorder %s4763_s1, %s4759_s28 }
  0xa9   :  { %p4766_p2 = por %p4765_p1, %p4764_p0 }
  0xab   :  { %p4767_p3 = pnand %p4766_p2, %p4760_p13 }
  0xad   :  { %4770 = shalt.err (!%p4767_p3)
}
  0xae   :  { %264 = dma.hbm_to_vmem [thread:$0]  %s5247_s19, 16, %s262_s18, [#allocation14]  }
  0xaf   :  { %s5016_s0 = smov [#allocation16]   ;;  %s5017_s2 = smov [#allocation2]  }
  0xb0   :  { %s285_s5 = sshll.u32 %s5016_s0, 4  ;;  %s177_s7 = sshll.u32 %s5017_s2, 4  ;;  %s286_s5 = int_to_ptr.vmem [resolvable:$true] %s285_s5  ;;  %s178_s7 = int_to_ptr.vmem [resolvable:$true] %s177_s7 }
  0xb1   :  { %s4771_s10 = scalar_lea.hbm %s5267_s30, 16 }
  0xb2   :  { %p4772_p4 = scmp.ne.s32.totalorder %s5267_s30, %s4771_s10  ;;  %p4775_p5 = scmp.lt.u32.totalorder %s4771_s10, %s5267_s30 }
  0xb4   :  { %p4777_p6 = pnand %p4775_p5, %p4772_p4 }
  0xb6   :  { %4780 = shalt.err (!%p4777_p6)
}
  0xb7   :  { %s4781_s11 = scalar_lea.vmem %s286_s5, 16  ;;  %s4785_s15 = scalar_lea.vmem %s286_s5, 32 }
  0xb8   :  { %p4782_p7 = scmp.ne.s32.totalorder %s286_s5, %s4781_s11  ;;  %p4786_p8 = scmp.lt.s32.totalorder %s286_s5, %s286_s5 }
  0xb9   :  { %p4787_p9 = scmp.lt.s32.totalorder %s4785_s15, %s4781_s11 }
  0xbb   :  { %p4788_p10 = por %p4787_p9, %p4786_p8 }
  0xbd   :  { %p4789_p11 = pnand %p4788_p10, %p4782_p7 }
  0xbf   :  { %4792 = shalt.err (!%p4789_p11)
}
  0xc0   :  { %288 = dma.hbm_to_vmem [thread:$0]  %s5267_s30, 16, %s286_s5, [#allocation17]  }
  0xc1   :  { %s4793_s19 = scalar_lea.hbm %s5177_s6, 16 }
  0xc2   :  { %p4794_p12 = scmp.ne.s32.totalorder %s5177_s6, %s4793_s19  ;;  %p4797_p13 = scmp.lt.u32.totalorder %s4793_s19, %s5177_s6 }
  0xc4   :  { %p4799_p0 = pnand %p4797_p13, %p4794_p12 }
  0xc6   :  { %4802 = shalt.err (!%p4799_p0)
}
  0xc7   :  { %s4803_s25 = scalar_lea.vmem %s178_s7, 16  ;;  %s4807_s16 = scalar_lea.vmem %s178_s7, 32 }
  0xc8   :  { %p4804_p1 = scmp.ne.s32.totalorder %s178_s7, %s4803_s25  ;;  %p4808_p2 = scmp.lt.s32.totalorder %s178_s7, %s178_s7 }
  0xc9   :  { %p4809_p3 = scmp.lt.s32.totalorder %s4807_s16, %s4803_s25 }
  0xcb   :  { %p4810_p4 = por %p4809_p3, %p4808_p2 }
  0xcd   :  { %p4811_p5 = pnand %p4810_p4, %p4804_p1 }
  0xcf   :  { %4814 = shalt.err (!%p4811_p5)
}
  0xd0   :  { %180 = dma.hbm_to_vmem [thread:$0]  %s5177_s6, 16, %s178_s7, [#allocation3]  }
  0xd1   :  { %s5018_s18 = smov [#allocation6]   ;;  %s5019_s22 = smov [#allocation9]  }
  0xd2   :  { %s203_s30 = sshll.u32 %s5018_s18, 4  ;;  %s225_s23 = sshll.u32 %s5019_s22, 4  ;;  %s204_s30 = int_to_ptr.vmem [resolvable:$true] %s203_s30  ;;  %s226_s23 = int_to_ptr.vmem [resolvable:$true] %s225_s23 }
  0xd3   :  { %s4815_s26 = scalar_lea.hbm %s5202_s21, 16 }
  0xd4   :  { %p4816_p6 = scmp.ne.s32.totalorder %s5202_s21, %s4815_s26  ;;  %p4819_p7 = scmp.lt.u32.totalorder %s4815_s26, %s5202_s21 }
  0xd6   :  { %p4821_p8 = pnand %p4819_p7, %p4816_p6 }
  0xd8   :  { %4824 = shalt.err (!%p4821_p8)
}
  0xd9   :  { %s4825_s4 = scalar_lea.vmem %s204_s30, 16  ;;  %s4829_s28 = scalar_lea.vmem %s204_s30, 32 }
  0xda   :  { %p4826_p9 = scmp.ne.s32.totalorder %s204_s30, %s4825_s4  ;;  %p4830_p10 = scmp.lt.s32.totalorder %s204_s30, %s204_s30 }
  0xdb   :  { %p4831_p11 = scmp.lt.s32.totalorder %s4829_s28, %s4825_s4 }
  0xdd   :  { %p4832_p12 = por %p4831_p11, %p4830_p10 }
  0xdf   :  { %p4833_p13 = pnand %p4832_p12, %p4826_p9 }
  0xe1   :  { %4836 = shalt.err (!%p4833_p13)
}
  0xe2   :  { %206 = dma.hbm_to_vmem [thread:$0]  %s5202_s21, 16, %s204_s30, [#allocation5]  }
  0xe3   :  { %s4837_s6 = scalar_lea.hbm %s5217_s29, 16 }
  0xe4   :  { %p4838_p0 = scmp.ne.s32.totalorder %s5217_s29, %s4837_s6  ;;  %p4841_p1 = scmp.lt.u32.totalorder %s4837_s6, %s5217_s29 }
  0xe6   :  { %p4843_p2 = pnand %p4841_p1, %p4838_p0 }
  0xe8   :  { %4846 = shalt.err (!%p4843_p2)
}
  0xe9   :  { %s4847_s1 = scalar_lea.vmem %s226_s23, 16  ;;  %s4851_s0 = scalar_lea.vmem %s226_s23, 32 }
  0xea   :  { %p4848_p3 = scmp.ne.s32.totalorder %s226_s23, %s4847_s1  ;;  %p4852_p4 = scmp.lt.s32.totalorder %s226_s23, %s226_s23 }
  0xeb   :  { %p4853_p5 = scmp.lt.s32.totalorder %s4851_s0, %s4847_s1 }
  0xed   :  { %p4854_p6 = por %p4853_p5, %p4852_p4 }
  0xef   :  { %p4855_p7 = pnand %p4854_p6, %p4848_p3 }
  0xf1   :  { %4858 = shalt.err (!%p4855_p7)
}
  0xf2   :  { %228 = dma.hbm_to_vmem [thread:$0]  %s5217_s29, 16, %s226_s23, [#allocation8]  }
  0xf3   :  { %s5020_s5 = smov [#allocation12]   ;;  %s5021_s2 = smov [#allocation15]  }
  0xf4   :  { %s249_s21 = sshll.u32 %s5020_s5, 4  ;;  %s273_s7 = sshll.u32 %s5021_s2, 4  ;;  %s250_s21 = int_to_ptr.vmem [resolvable:$true] %s249_s21  ;;  %s274_s7 = int_to_ptr.vmem [resolvable:$true] %s273_s7 }
  0xf5   :  { %s4859_s10 = scalar_lea.hbm %s5237_s20, 16 }
  0xf6   :  { %p4860_p8 = scmp.ne.s32.totalorder %s5237_s20, %s4859_s10  ;;  %p4863_p9 = scmp.lt.u32.totalorder %s4859_s10, %s5237_s20 }
  0xf8   :  { %p4865_p10 = pnand %p4863_p9, %p4860_p8 }
  0xfa   :  { %4868 = shalt.err (!%p4865_p10)
}
  0xfb   :  { %s4869_s11 = scalar_lea.vmem %s250_s21, 16  ;;  %s4873_s15 = scalar_lea.vmem %s250_s21, 32 }
  0xfc   :  { %p4870_p11 = scmp.ne.s32.totalorder %s250_s21, %s4869_s11  ;;  %p4874_p12 = scmp.lt.s32.totalorder %s250_s21, %s250_s21 }
  0xfd   :  { %p4875_p13 = scmp.lt.s32.totalorder %s4873_s15, %s4869_s11 }
  0xff   :  { %p4876_p0 = por %p4875_p13, %p4874_p12 }
 0x101   :  { %p4877_p1 = pnand %p4876_p0, %p4870_p11 }
 0x103   :  { %4880 = shalt.err (!%p4877_p1)
}
 0x104   :  { %252 = dma.hbm_to_vmem [thread:$0]  %s5237_s20, 16, %s250_s21, [#allocation11]  }
 0x105   :  { %s4881_s29 = scalar_lea.hbm %s5257_s14, 16 }
 0x106   :  { %p4882_p2 = scmp.ne.s32.totalorder %s5257_s14, %s4881_s29  ;;  %p4885_p3 = scmp.lt.u32.totalorder %s4881_s29, %s5257_s14 }
 0x108   :  { %p4887_p4 = pnand %p4885_p3, %p4882_p2 }
 0x10a   :  { %4890 = shalt.err (!%p4887_p4)
}
 0x10b   :  { %s4891_s19 = scalar_lea.vmem %s274_s7, 16  ;;  %s4895_s25 = scalar_lea.vmem %s274_s7, 32 }
 0x10c   :  { %p4892_p5 = scmp.ne.s32.totalorder %s274_s7, %s4891_s19  ;;  %p4896_p6 = scmp.lt.s32.totalorder %s274_s7, %s274_s7 }
 0x10d   :  { %p4897_p7 = scmp.lt.s32.totalorder %s4895_s25, %s4891_s19 }
 0x10f   :  { %p4898_p8 = por %p4897_p7, %p4896_p6 }
 0x111   :  { %p4899_p9 = pnand %p4898_p8, %p4892_p5 }
 0x113   :  { %4902 = shalt.err (!%p4899_p9)
}
 0x114   :  { %276 = dma.hbm_to_vmem [thread:$0]  %s5257_s14, 16, %s274_s7, [#allocation14]  }
 0x115   :  { %s5022_s16 = smov [#allocation18]   ;;  %s5023_s18 = smov [#allocation19]  }
 0x116   :  { %s297_s20 = sshll.u32 %s5022_s16, 4  ;;  %s309_s30 = sshll.u32 %s5023_s18, 4  ;;  %s298_s20 = int_to_ptr.vmem [resolvable:$true] %s297_s20  ;;  %s310_s30 = int_to_ptr.vmem [resolvable:$true] %s309_s30 }
 0x117   :  { %s4903_s22 = scalar_lea.hbm %s5277_s17, 16 }
 0x118   :  { %p4904_p10 = scmp.ne.s32.totalorder %s5277_s17, %s4903_s22  ;;  %p4907_p11 = scmp.lt.u32.totalorder %s4903_s22, %s5277_s17 }
 0x11a   :  { %p4909_p12 = pnand %p4907_p11, %p4904_p10 }
 0x11c   :  { %4912 = shalt.err (!%p4909_p12)
}
 0x11d   :  { %s4913_s23 = scalar_lea.vmem %s298_s20, 16  ;;  %s4917_s26 = scalar_lea.vmem %s298_s20, 32 }
 0x11e   :  { %p4914_p13 = scmp.ne.s32.totalorder %s298_s20, %s4913_s23  ;;  %p4918_p0 = scmp.lt.s32.totalorder %s298_s20, %s298_s20 }
 0x11f   :  { %p4919_p1 = scmp.lt.s32.totalorder %s4917_s26, %s4913_s23 }
 0x121   :  { %p4920_p2 = por %p4919_p1, %p4918_p0 }
 0x123   :  { %p4921_p3 = pnand %p4920_p2, %p4914_p13 }
 0x125   :  { %4924 = shalt.err (!%p4921_p3)
}
 0x126   :  { %300 = dma.hbm_to_vmem [thread:$0]  %s5277_s17, 16, %s298_s20, [#allocation17]  }
 0x127   :  { %s4925_s14 = scalar_lea.hbm %s5287_s3, 16 }
 0x128   :  { %p4926_p4 = scmp.ne.s32.totalorder %s5287_s3, %s4925_s14  ;;  %p4929_p5 = scmp.lt.u32.totalorder %s4925_s14, %s5287_s3 }
 0x12a   :  { %p4931_p6 = pnand %p4929_p5, %p4926_p4 }
 0x12c   :  { %4934 = shalt.err (!%p4931_p6)
}
 0x12d   :  { %s4935_s4 = scalar_lea.vmem %s310_s30, 16  ;;  %s4939_s28 = scalar_lea.vmem %s310_s30, 32 }
 0x12e   :  { %p4936_p7 = scmp.ne.s32.totalorder %s310_s30, %s4935_s4  ;;  %p4940_p8 = scmp.lt.s32.totalorder %s310_s30, %s310_s30 }
 0x12f   :  { %p4941_p9 = scmp.lt.s32.totalorder %s4939_s28, %s4935_s4 }
 0x131   :  { %p4942_p10 = por %p4941_p9, %p4940_p8 }
 0x133   :  { %p4943_p11 = pnand %p4942_p10, %p4936_p7 }
 0x135   :  { %4946 = shalt.err (!%p4943_p11)
}
 0x136   :  { %312 = dma.hbm_to_vmem [thread:$0]  %s5287_s3, 16, %s310_s30, [#allocation20]  }
 0x137   :  { %4947 = dma.done.wait [#allocation3], 16  }
 0x138   :  { %4948 = vsyncadd [#allocation3], 4294967280 }
 0x139   :  { %4949 = dma.done.wait [#allocation5], 32  }
 0x13a   :  { %4950 = vsyncadd [#allocation5], 4294967264 }
 0x13b   :  { %4951 = dma.done.wait [#allocation8], 32  }
 0x13c   :  { %4952 = vsyncadd [#allocation8], 4294967264 }
 0x13d   :  { %4953 = dma.done.wait [#allocation11], 32  }
 0x13e   :  { %4954 = vsyncadd [#allocation11], 4294967264 }
 0x13f   :  { %4955 = dma.done.wait [#allocation14], 32  }
 0x140   :  { %4956 = vsyncadd [#allocation14], 4294967264 }
 0x141   :  { %4957 = dma.done.wait [#allocation17], 32  }
 0x142   :  { %4958 = vsyncadd [#allocation17], 4294967264 }
 0x143   :  { %4959 = dma.done.wait [#allocation20], 16  }
 0x144   :  { %4960 = vsyncadd [#allocation20], 4294967280  ;;  %vm622_vm0 = vcmask 1042432   ;;  %v4504_v0 = vld [vmem:[%s5077_s8] sm:$0xff]   ;;  %v4505_v1 = vld [vmem:[%s5077_s8 + $0x8] sm:$0xff]   ;;  %vm472_vm1 = vcmask 1043456  }
 0x145   :  { %4179 = vmatprep.subr.bf16.mxu0 %v4504_v0  ;;  %v5024_v2 = vmov 65535   ;;  %v351_v4 = vld [vmem:[%s5042_s9] sm:$0xff]  ;;  %v352_v5 = vld [vmem:[%s5042_s9 + $0x8] sm:$0xff]  ;;  %vm388_vm2 = vcmask 392192   ;;  %v4506_v6 = vld [vmem:[%s5077_s8 + $0x10] sm:$0xff]   ;;  %s7239_s17 = sld [smem:[#allocation42_spill]] }
 0x146   :  { %v623_v3 = vsel %vm622_vm0, 4294967295, %v5024_v2  ;;  %4180 = vmatpush3.bf16.msra.mxu0 %v4504_v0  ;;  %v361_v7 = vpack.c.bf16 %v352_v5, %v351_v4  ;;  %v353_v8 = vld [vmem:[%s5042_s9 + $0x10] sm:$0xff]  ;;  %v354_v9 = vld [vmem:[%s5042_s9 + $0x18] sm:$0xff]  ;;  %v609_v11 = vld [vmem:[%s5107_s12] sm:$0xf]  ;;  %s7240_s3 = sld [smem:[#allocation29_spill]] }
 0x147   :  { %4181 = vmatprep.subr.bf16.mxu0 %v4505_v1  ;;  %v624_v10 = vsel %vm472_vm1, %v623_v3, 0  ;;  %v362_v12 = vpack.c.bf16 %v354_v9, %v353_v8  ;;  %v7117_v14 = vmov 0.0   ;;  %v608_v15 = vld [vmem:[%s5047_s13] sm:$0x3]  ;;  %s7241_s8 = sld [smem:[#allocation37_spill]]  ;;  %vm618_vm3 = vcmask 56320  }
 0x148   :  { %4185 = vmatprep.mubr.msk.bf16.mxu0 %vm388_vm2, %v361_v7  ;;  %v626_v13 = vand.u32 %v624_v10, %v609_v11  ;;  %vm5026_vm4 = vmmov 0   ;;  %v610_v17 = vpack.c.bf16 %v608_v15, %v608_v15  ;;  %s7242_s9 = sld [smem:[#allocation34_spill]]  ;;  %s7243_s13 = sld [smem:[#allocation35_spill]]  ;;  %vm465_vm5 = vcmask 195584  }
 0x149   :  { %s7244_s12 = sld [smem:[#allocation39_spill]]  ;;  %s7245_s6 = sld [smem:[#allocation28_spill]]  ;;  %vm561_vm6 = vcmask 261120   ;;  %vm892_vm7 = vcmask 523264   ;;  %vm883_vm8 = vcmask 1040384   ;;  %vm885_vm9 = vcmask 1044480  }
 0x14a   :  { %4182 = vmatpush3.bf16.msra.mxu0 %v4505_v1  ;;  %s7246_s1 = sld [smem:[#allocation40_spill]]  ;;  %s7247_s0 = sld [smem:[#allocation43_spill]]  ;;  %vm905_vm10 = vcmask 521216   ;;  %vm1293_vm11 = vcmask 1041408   ;;  %vm1262_vm12 = vcmask 1045504   ;;  %vm1906_vm13 = vcmask 390144  }
 0x14b   :  { %4183 = vmatprep.subr.bf16.mxu0 %v4506_v6  ;;  %v738_v16 = vld [vmem:[%s7239_s17] sm:$0xf]  ;;  %s7248_s5 = sld [smem:[#allocation44_spill]]  ;;  %s7249_s21 = sld [smem:[#allocation38_spill]] }
 0x14c   :  { %v751_v18 = vand.u32 %v738_v16, %v624_v10  ;;  %v737_v19 = vld [vmem:[%s7240_s3] sm:$0xff]  ;;  %s7250_s2 = sld [smem:[#allocation48_spill]]  ;;  %s7251_s7 = sld [smem:[#allocation36_spill]] }
 0x14d   :  { %v739_v20 = vpack.c.bf16 %v737_v19, %v737_v19  ;;  %v4507_v21 = vld [vmem:[%s7241_s8] sm:$0xff]   ;;  %v4508_v22 = vld [vmem:[%s7241_s8 + $0x8] ss:$0 sps:$4 sm:$0xff]   ;;  %s7252_s10 = sld [smem:[#allocation47_spill]]  ;;  %s7253_s11 = sld [smem:[#allocation46_spill]] }
 0x14e   :  { %4184 = vmatpush3.bf16.msra.mxu0 %v4506_v6  ;;  %4189 = vmatprep.subr.bf16.mxu1 %v4507_v21  ;;  %v474_v23 = vsel %vm472_vm1, %v4508_v22, 0  ;;  %v3818_v25 = vld [vmem:[%s7242_s9] ss:$0 sm:$0xff]  ;;  %v4510_v37 = vld [vmem:[%s7243_s13 + $0x8] sm:$0xff]   ;;  %s7258_s15 = sld [smem:[#allocation41_spill]]  ;;  %s7259_s29 = sld [smem:[#allocation45_spill]] }
 0x14f   :  { %4205 = vmatprep.subr.bf16.mxu0 %v7117_v14  ;;  %4190 = vmatpush3.bf16.msra.mxu1 %v4507_v21  ;;  %v4509_v35 = vld [vmem:[%s7243_s13] sm:$0xff]   ;;  %v536_v41 = vld [vmem:[%s7245_s6 + $0x8] sm:$0xff]  ;;  %s7260_s19 = sld [smem:[#allocation49_spill]]  ;;  %s7261_s25 = sld [smem:[#allocation50_spill]] }
 0x150   :  { %4419 = vmatprep.subr.msk.bf16.mxu1 %vm472_vm1, %v4508_v22  ;;  %v3834_v39 = vld [vmem:[%s7244_s12] ss:$0 sm:$0xff]  ;;  %v4512_v50 = vld [vmem:[%s7246_s1 + $0x8] sm:$0xff]   ;;  %s7267_s16 = sld [smem:[#allocation52_spill]]  ;;  %s7268_s20 = sld [smem:[#allocation30_spill]] }
 0x151   :  { %4186 = vmatmul.mubr.msk.bf16.vlgmr.msra.gmra.mrb[0].mxu0 %vm388_vm2, %v362_v12  ;;  %v535_v40 = vld [vmem:[%s7245_s6] sm:$0xff]  ;;  %v4514_v58 = vld [vmem:[%s7248_s5 + $0x8] sm:$0xff]   ;;  %s5028_s18 = smov 64   ;;  %s7304_s30 = sld [smem:[#allocation51_spill]] }
 0x152   :  { %4206 = vmatpush3.bf16.msra.mxu0 %v626_v13  ;;  %4207 = vmatprep.mubr.msk.bf16.mxu0 %vm5026_vm4, %v7117_v14  ;;  %v541_v45 = vpack.c.bf16 %v536_v41, %v535_v40  ;;  %v4511_v46 = vld [vmem:[%s7246_s1] sm:$0xff]   ;;  %s7307_s22 = sld [smem:[#allocation53_spill]]  ;;  %s7387_s23 = sld [smem:[#allocation31_spill]] }
 0x153   :  { %4219 = vmatprep.subr.bf16.mxu0 %v7117_v14  ;;  %4192 = vmatpush3.bf16.msra.mxu1 %v474_v23  ;;  %v3840_v51 = vld [vmem:[%s7247_s0] ss:$0 sm:$0xff]  ;;  %s7388_s26 = sld [smem:[#allocation54_spill]]  ;;  %s7394_s14 = sld [smem:[#allocation55_spill]] }
 0x154   :  { %4197 = vmatprep.subr.bf16.mxu1 %v7117_v14  ;;  %v4513_v56 = vld [vmem:[%s7248_s5] sm:$0xff]   ;;  %s7395_s4 = sld [smem:[#allocation56_spill]]  ;;  %s7396_s28 = sld [smem:[#allocation57_spill]] }
 0x155   :  { %v3824_v60 = vld [vmem:[%s7249_s21] ss:$0 sm:$0xff]  ;;  %s7397_s17 = sld [smem:[#allocation58_spill]]  ;;  %s7398_s3 = sld [smem:[#allocation32_spill]] }
 0x156   :  { %v3829_v61 = vld [vmem:[%s7250_s2] ss:$0 sm:$0xff]  ;;  %s7446_s8 = sld [smem:[#allocation33_spill]]  ;;  %s7452_s9 = sld [smem:[#allocation59_spill]] }
 0x157   :  { %v3830_v10 = vld [vmem:[%s7251_s7] ss:$0 sm:$0xff]  ;;  %s7453_s13 = sld [smem:[#allocation60_spill]]  ;;  %s7454_s12 = sld [smem:[#allocation61_spill]] }
 0x158   :  { %v862_v11 = vld [vmem:[%s7252_s10] sm:$0x3f] }
 0x159   :  { %4208 = vmatmul.mubr.msk.bf16.vlgmr.msra.gmra.mrb[4].mxu0 %vm618_vm3, %v610_v17  ;;  %v3846_v12 = vld [vmem:[%s7253_s11] ss:$0 sm:$0xff] }
 0x15a   :  { %4220 = vmatpush3.bf16.msra.mxu0 %v751_v18  ;;  %4221 = vmatprep.mubr.msk.bf16.mxu0 %vm5026_vm4, %v7117_v14  ;;  %v5410_v19 = vadd.f32 %v3846_v12, %v862_v11 }
 0x161   :  { %4222 = vmatmul.mubr.msk.bf16.vlgmr.msra.gmra.mrb[8].mxu0 %vm618_vm3, %v739_v20 }
 0x224   :  { %v4187_v24 = vpop.f32.mrb[0].mxu0 }
 0x225   :  { %v429_v26 = vpop.f32.mrb[1].mxu0  ;;  %v438_v28 = vadd.f32 %v4187_v24, %v3818_v25 }
 0x226   :  { %v4188_v27 = vpop.f32.mrb[2].mxu0  ;;  %v430_v31 = vadd.f32 %v3818_v25, %v429_v26  ;;  %v875_v26 = vrot.slane %v5410_v19, 3 }
 0x227   :  { %v441_v29 = vadd.f32 %v4188_v27, %v3818_v25  ;;  %v432_v30 = vpop.f32.mrb[3].mxu0  ;;  %v3836_v27 = vld [vmem:[%s7258_s15] ss:$0 sm:$0xff] }
 0x228   :  { %v433_v32 = vadd.f32 %v3818_v25, %v432_v30 }
 0x229   :  { %v448_v33 = vpack.c.bf16 %v441_v29, %v438_v28 }
 0x22a   :  { %v447_v34 = vpack.c.bf16 %v433_v32, %v430_v31 }
 0x22c   :  { %4193 = vmatprep.mubr.msk.bf16.mxu1 %vm465_vm5, %v447_v34  ;;  %v662_v36 = vpop.f32.mrb[4].mxu0 }
 0x22d   :  { %4194 = vmatmul.mubr.msk.bf16.vlgmr.msra.gmra.mrb[0].mxu1 %vm465_vm5, %v448_v33  ;;  %v4209_v38 = vpop.f32.mrb[5].mxu0  ;;  %v663_v44 = vadd.f32 %v3834_v39, %v662_v36 }
 0x22e   :  { %4198 = vmatpush3.bf16.msra.mxu1 %v4509_v35  ;;  %4201 = vmatprep.mubr.msk.bf16.mxu1 %vm5026_vm4, %v7117_v14  ;;  %v665_v42 = vpop.f32.mrb[6].mxu0  ;;  %v3842_v38 = vld [vmem:[%s7259_s29] ss:$0 sm:$0xff] }
 0x22f   :  { %4199 = vmatprep.subr.bf16.mxu1 %v7117_v14  ;;  %v4210_v43 = vpop.f32.mrb[7].mxu0  ;;  %v668_v48 = vmax.f32 %v663_v44, 0.0 }
 0x231   :  { %v673_v54 = vpack.c.bf16 %v668_v48, %v668_v48 }
 0x232   :  { %4200 = vmatpush3.bf16.msra.mxu1 %v4510_v37 }
 0x233   :  { %4211 = vmatprep.subr.bf16.mxu1 %v7117_v14 }
 0x234   :  { %v787_v47 = vpop.f32.mrb[8].mxu0 }
 0x235   :  { %4202 = vmatmul.mubr.msk.bf16.vlgmr.msra.gmra.mrb[4].mxu1 %vm561_vm6, %v541_v45  ;;  %v4223_v49 = vpop.f32.mrb[9].mxu0  ;;  %v788_v55 = vadd.f32 %v3840_v51, %v787_v47 }
 0x236   :  { %4212 = vmatpush3.bf16.msra.mxu1 %v4511_v46  ;;  %4215 = vmatprep.mubr.msk.bf16.mxu1 %vm5026_vm4, %v7117_v14  ;;  %v790_v52 = vpop.f32.mrb[10].mxu0 }
 0x237   :  { %4213 = vmatprep.subr.bf16.mxu1 %v7117_v14  ;;  %v4224_v53 = vpop.f32.mrb[11].mxu0  ;;  %v793_v57 = vmax.f32 %v788_v55, 0.0  ;;  %v906_v52 = vsel %vm905_vm10, %v5410_v19, 0.0 }
 0x239   :  { %v798_v59 = vpack.c.bf16 %v793_v57, %v793_v57 }
 0x23a   :  { %4214 = vmatpush3.bf16.msra.mxu1 %v4512_v50 }
 0x23b   :  { %4225 = vmatprep.subr.bf16.mxu1 %v7117_v14 }
 0x23d   :  { %4216 = vmatmul.mubr.msk.bf16.vlgmr.msra.gmra.mrb[8].mxu1 %vm561_vm6, %v673_v54 }
 0x23e   :  { %4226 = vmatpush3.bf16.msra.mxu1 %v4513_v56  ;;  %4229 = vmatprep.mubr.msk.bf16.mxu1 %vm5026_vm4, %v7117_v14 }
 0x23f   :  { %4227 = vmatprep.subr.bf16.mxu1 %v7117_v14 }
 0x242   :  { %4228 = vmatpush3.bf16.msra.mxu1 %v4514_v58 }
 0x245   :  { %4230 = vmatmul.mubr.msk.bf16.vlgmr.msra.gmra.mrb[12].mxu1 %vm561_vm6, %v798_v59 }
 0x300   :  { %v4195_v62 = vpop.f32.mrb[0].mxu1 }
 0x301   :  { %v519_v63 = vadd.f32 %v4195_v62, %v3824_v60  ;;  %v510_v0 = vpop.f32.mrb[1].mxu1 }
 0x302   :  { %v511_v1 = vadd.f32 %v3824_v60, %v510_v0  ;;  %v4196_v2 = vpop.f32.mrb[2].mxu1 }
 0x303   :  { %v5395_v3 = vadd.f32 %v3829_v61, %v519_v63  ;;  %v522_v4 = vadd.f32 %v4196_v2, %v3824_v60  ;;  %v513_v5 = vpop.f32.mrb[3].mxu1 }
 0x304   :  { %v5397_v6 = vadd.f32 %v3829_v61, %v511_v1  ;;  %v514_v7 = vadd.f32 %v3824_v60, %v513_v5 }
 0x305   :  { %7254 = vst [vmem:[#allocation62_spill] sm:$0xff] %v5395_v3  ;;  %v5399_v8 = vadd.f32 %v3829_v61, %v522_v4 }
 0x306   :  { %7255 = vst [vmem:[#allocation63_spill] sm:$0xff] %v5397_v6  ;;  %v5401_v9 = vadd.f32 %v3829_v61, %v514_v7 }
 0x307   :  { %7256 = vst [vmem:[#allocation64_spill] sm:$0xff] %v5399_v8 }
 0x308   :  { %7257 = vst [vmem:[#allocation65_spill] sm:$0xff] %v5401_v9  ;;  %v599_v16 = vpop.f32.mrb[4].mxu1 }
 0x309   :  { %v600_v17 = vadd.f32 %v3830_v10, %v599_v16  ;;  %v4203_v18 = vpop.f32.mrb[5].mxu1 }
 0x30a   :  { %v602_v20 = vpop.f32.mrb[6].mxu1 }
 0x30b   :  { %v603_v21 = vadd.f32 %v3830_v10, %v602_v20  ;;  %v4204_v22 = vpop.f32.mrb[7].mxu1  ;;  %v606_v23 = vadd.f32 %v3829_v61, %v600_v17 }
 0x30d   :  { %v607_v24 = vadd.f32 %v3829_v61, %v603_v21  ;;  %v893_v25 = vsel %vm892_vm7, %v606_v23, 0.0 }
 0x30e   :  { %894 = vadd.xlane.f32.xlu0 %v893_v25 }
 0x30f   :  { %v878_v28 = vrot.slane %v607_v24, 5 }
 0x310   :  { %v730_v29 = vpop.f32.mrb[8].mxu1 }
 0x311   :  { %v731_v30 = vadd.f32 %v3836_v27, %v730_v29  ;;  %v4217_v31 = vpop.f32.mrb[9].mxu1  ;;  %v887_v32 = vsel %vm622_vm0, %v875_v26, %v878_v28 }
 0x312   :  { %v733_v33 = vpop.f32.mrb[10].mxu1  ;;  %v899_v34 = vsel %vm892_vm7, %v887_v32, 0.0 }
 0x313   :  { %v736_v35 = vadd.f32 %v3829_v61, %v731_v30  ;;  %v4218_v36 = vpop.f32.mrb[11].mxu1  ;;  %900 = vadd.xlane.f32.xlu1 %v899_v34  ;;  %v3848_v30 = vld [vmem:[%s7261_s25] ss:$0 sm:$0xff] }
 0x315   :  { %v881_v37 = vrot.slane %v736_v35, 6 }
 0x317   :  { %v888_v39 = vsel %vm622_vm0, %v878_v28, %v881_v37  ;;  %v3847_v28 = vld [vmem:[%s7260_s19] ss:$0 sm:$0xff] }
 0x318   :  { %v855_v40 = vpop.f32.mrb[12].mxu1 }
 0x319   :  { %v856_v41 = vadd.f32 %v3842_v38, %v855_v40  ;;  %v4231_v42 = vpop.f32.mrb[13].mxu1 }
 0x31a   :  { %v858_v43 = vpop.f32.mrb[14].mxu1 }
 0x31b   :  { %v861_v44 = vadd.f32 %v3829_v61, %v856_v41  ;;  %v4232_v45 = vpop.f32.mrb[15].mxu1 }
 0x31d   :  { %v872_v46 = vrot.slane %v861_v44, 7  ;;  %v889_v47 = vsel %vm472_vm1, %v888_v39, %v861_v44 }
 0x31e   :  { %v902_v48 = vsel %vm892_vm7, %v889_v47, 0.0 }
 0x31f   :  { %903 = vadd.xlane.f32.xlu1 %v902_v48  ;;  %v884_v49 = vsel %vm883_vm8, %v736_v35, %v872_v46 }
 0x320   :  { %v886_v50 = vsel %vm885_vm9, %v884_v49, %v875_v26 }
 0x321   :  { %v896_v51 = vsel %vm892_vm7, %v886_v50, 0.0 }
 0x322   :  { %897 = vadd.xlane.f32.xlu0 %v896_v51 }
 0x326   :  { %907 = vadd.xlane.f32.xlu0 %v906_v52 }
 0x39b   :  { %v895_v53 = vpop.xlane.xlu0 %894 }
 0x39c   :  { %v910_v54 = vmul.f32 0.015625, %v895_v53 }
 0x39e   :  { %v915_v55 = vsub.f32 %v606_v23, %v910_v54 }
 0x3a0   :  { %v901_v56 = vpop.xlane.xlu1 %900  ;;  %v920_v57 = vmul.f32 %v915_v55, %v915_v55 }
 0x3a1   :  { %v912_v58 = vmul.f32 0.015625, %v901_v56 }
 0x3a2   :  { %v925_v59 = vsel %vm892_vm7, %v920_v57, 0.0 }
 0x3a3   :  { %v917_v60 = vsub.f32 %v887_v32, %v912_v58  ;;  %926 = vadd.xlane.f32.xlu1 %v925_v59 }
 0x3a5   :  { %v922_v61 = vmul.f32 %v917_v60, %v917_v60 }
 0x3a7   :  { %v931_v62 = vsel %vm892_vm7, %v922_v61, 0.0 }
 0x3a8   :  { %932 = vadd.xlane.f32.xlu1 %v931_v62 }
 0x3ac   :  { %v904_v63 = vpop.xlane.xlu1 %903 }
 0x3ad   :  { %v913_v0 = vmul.f32 0.015625, %v904_v63 }
 0x3af   :  { %v898_v1 = vpop.xlane.xlu0 %897  ;;  %v918_v4 = vsub.f32 %v889_v47, %v913_v0 }
 0x3b0   :  { %v911_v2 = vmul.f32 0.015625, %v898_v1 }
 0x3b1   :  { %v923_v17 = vmul.f32 %v918_v4, %v918_v4 }
 0x3b2   :  { %v916_v5 = vsub.f32 %v886_v50, %v911_v2 }
 0x3b3   :  { %v908_v7 = vpop.xlane.xlu0 %907  ;;  %v934_v20 = vsel %vm892_vm7, %v923_v17, 0.0 }
 0x3b4   :  { %v914_v10 = vmul.f32 0.015625, %v908_v7  ;;  %v921_v11 = vmul.f32 %v916_v5, %v916_v5 }
 0x3b6   :  { %v919_v12 = vsub.f32 %v5410_v19, %v914_v10  ;;  %v928_v16 = vsel %vm892_vm7, %v921_v11, 0.0 }
 0x3b7   :  { %929 = vadd.xlane.f32.xlu0 %v928_v16 }
 0x3b8   :  { %v924_v18 = vmul.f32 %v919_v12, %v919_v12 }
 0x3ba   :  { %v937_v21 = vsel %vm905_vm10, %v924_v18, 0.0 }
 0x3bb   :  { %935 = vadd.xlane.f32.xlu0 %v934_v20  ;;  %938 = vadd.xlane.f32.xlu1 %v937_v21 }
 0x430   :  { %v927_v22 = vpop.xlane.xlu1 %926 }
 0x431   :  { %v940_v23 = vmul.f32 0.015625, %v927_v22 }
 0x433   :  { %v945_v24 = vadd.f32 1e-05, %v940_v23 }
 0x435   :  { %4563 = vrsqrt.f32 %v945_v24  ;;  %v933_v25 = vpop.xlane.xlu1 %932 }
 0x436   :  { %v942_v26 = vmul.f32 0.015625, %v933_v25 }
 0x438   :  { %v947_v19 = vadd.f32 1e-05, %v942_v26 }
 0x43a   :  { %4565 = vrsqrt.f32 %v947_v19 }
 0x43f   :  { %v4564_v27 = vpop.eup %4563 }
 0x440   :  { %v955_v29 = vmul.f32 %v4564_v27, %v915_v55 }
 0x442   :  { %v966_v31 = vmul.f32 %v3847_v28, %v955_v29 }
 0x444   :  { %v4566_v32 = vpop.eup %4565  ;;  %v930_v33 = vpop.xlane.xlu0 %929  ;;  %v5432_v34 = vadd.f32 %v3848_v30, %v966_v31  ;;  %v4517_v31 = vld [vmem:[%s7267_s16 + $0x4] ss:$8 sps:$4 sm:$0xff]  }
 0x445   :  { %v941_v35 = vmul.f32 0.015625, %v930_v33  ;;  %v957_v36 = vmul.f32 %v4566_v32, %v917_v60  ;;  %v4515_v32 = vld [vmem:[%s7267_s16] ss:$8 sps:$4 sm:$0xff]   ;;  %1143 = vmatprep.subr.bf16.mxu0 %v4517_v31  ;;  %v4520_v33 = vld [vmem:[%s7267_s16 + $0x14] ss:$8 sps:$4 sm:$0xff]  }
 0x446   :  { %7262 = vst [vmem:[#allocation66_spill] sm:$0xff] %v5432_v34  ;;  %v984_v37 = vsel %vm892_vm7, %v5432_v34, 0.0  ;;  %1144 = vmatpush1.bf16.msra.mxu0 %v4515_v32 }
 0x447   :  { %v946_v38 = vadd.f32 1e-05, %v941_v35  ;;  %985 = vadd.xlane.f32.xlu0 %v984_v37  ;;  %v968_v39 = vmul.f32 %v3847_v28, %v957_v36  ;;  %v4518_v35 = vld [vmem:[%s7267_s16 + $0x10] ss:$8 sps:$4 sm:$0xff]   ;;  %1145 = vmatprep.subr.bf16.mxu0 %v4520_v33  ;;  %v4523_v36 = vld [vmem:[%s7267_s16 + $0x24] ss:$8 sps:$4 sm:$0xff]  }
 0x448   :  { %v939_v40 = vpop.xlane.xlu1 %938  ;;  %v936_v41 = vpop.xlane.xlu0 %935  ;;  %v4521_v37 = vld [vmem:[%s7267_s16 + $0x20] ss:$8 sps:$4 sm:$0xff]  }
 0x449   :  { %4567 = vrsqrt.f32 %v946_v38  ;;  %v944_v42 = vmul.f32 0.015625, %v939_v40  ;;  %v943_v43 = vmul.f32 0.015625, %v936_v41  ;;  %v5436_v44 = vadd.f32 %v3848_v30, %v968_v39  ;;  %v4524_v38 = vld [vmem:[%s7267_s16 + $0x30] ss:$8 sps:$4 sm:$0xff]   ;;  %v4526_v39 = vld [vmem:[%s7267_s16 + $0x34] ss:$8 sps:$4 sm:$0xff]  }
 0x44a   :  { %1146 = vmatpush1.bf16.msra.mxu0 %v4518_v35  ;;  %v7119_v40 = vmov 0   ;;  %v5493_v41 = vld [vmem:[%s7268_s20 + $0x8] sm:$0xff] }
 0x44b   :  { %7263 = vst [vmem:[#allocation67_spill] sm:$0xff] %v5436_v44  ;;  %v949_v45 = vadd.f32 1e-05, %v944_v42  ;;  %v948_v46 = vadd.f32 1e-05, %v943_v43  ;;  %v990_v47 = vsel %vm892_vm7, %v5436_v44, 0.0  ;;  %1147 = vmatprep.subr.bf16.mxu0 %v4523_v36  ;;  %1175 = vmatprep.mubr.bf16.mxu0 %v7119_v40 }
 0x44c   :  { %991 = vadd.xlane.f32.xlu0 %v990_v47  ;;  %v5496_v42 = vld [vmem:[%s7268_s20] sm:$0xff]  ;;  %v5516_v47 = vld [vmem:[%s7268_s20 + $0x90] sm:$0xff] }
 0x44d   :  { %4569 = vrsqrt.f32 %v949_v45  ;;  %v5503_v43 = vld [vmem:[%s7268_s20 + $0x80] sm:$0xff]  ;;  %v5506_v45 = vld [vmem:[%s7268_s20 + $0x10] sm:$0xff]  ;;  %7271 = vst [vmem:[#allocation73_spill] sm:$0xff] %v5516_v47 }
 0x44e   :  { %4571 = vrsqrt.f32 %v948_v46  ;;  %1148 = vmatpush1.bf16.msra.mxu0 %v4521_v37  ;;  %7269 = vst [vmem:[#allocation71_spill] sm:$0xff] %v5506_v45  ;;  %v5513_v46 = vld [vmem:[%s7268_s20 + $0x88] sm:$0xff] }
 0x44f   :  { %1149 = vmatprep.subr.bf16.mxu0 %v4526_v39  ;;  %7270 = vst [vmem:[#allocation72_spill] sm:$0xff] %v5513_v46 }
 0x452   :  { %1150 = vmatpush1.bf16.msra.mxu0 %v4524_v38 }
 0x453   :  { %v4568_v48 = vpop.eup %4567  ;;  %4233 = vmatprep.subr.bf16.mxu0 %v7117_v14 }
 0x454   :  { %v956_v49 = vmul.f32 %v4568_v48, %v916_v5  ;;  %v5523_v48 = vld [vmem:[%s7268_s20 + $0x18] sm:$0xff] }
 0x455   :  { %7272 = vst [vmem:[#allocation74_spill] sm:$0xff] %v5523_v48 }
 0x456   :  { %v967_v50 = vmul.f32 %v3847_v28, %v956_v49  ;;  %v5526_v49 = vld [vmem:[%s7268_s20 + $0x20] sm:$0xff] }
 0x457   :  { %v4570_v51 = vpop.eup %4569  ;;  %7273 = vst [vmem:[#allocation75_spill] sm:$0xff] %v5526_v49 }
 0x458   :  { %v4572_v52 = vpop.eup %4571  ;;  %v5440_v53 = vadd.f32 %v3848_v30, %v967_v50  ;;  %v959_v54 = vmul.f32 %v4570_v51, %v919_v12  ;;  %v5533_v50 = vld [vmem:[%s7268_s20 + $0x98] sm:$0xff]  ;;  %v5536_v51 = vld [vmem:[%s7268_s20 + $0xa0] sm:$0xff] }
 0x459   :  { %v958_v55 = vmul.f32 %v4572_v52, %v918_v4  ;;  %7274 = vst [vmem:[#allocation76_spill] sm:$0xff] %v5533_v50  ;;  %7275 = vst [vmem:[#allocation77_spill] sm:$0xff] %v5536_v51  ;;  %v5543_v52 = vld [vmem:[%s7268_s20 + $0x28] sm:$0xff] }
 0x45a   :  { %7264 = vst [vmem:[#allocation68_spill] sm:$0xff] %v5440_v53  ;;  %v987_v56 = vsel %vm892_vm7, %v5440_v53, 0.0  ;;  %v970_v57 = vmul.f32 %v3847_v28, %v959_v54  ;;  %7276 = vst [vmem:[#allocation78_spill] sm:$0xff] %v5543_v52  ;;  %v5546_v54 = vld [vmem:[%s7268_s20 + $0x30] sm:$0xff] }
 0x45b   :  { %988 = vadd.xlane.f32.xlu1 %v987_v56  ;;  %v969_v58 = vmul.f32 %v3847_v28, %v958_v55  ;;  %7277 = vst [vmem:[#allocation79_spill] sm:$0xff] %v5546_v54  ;;  %v5553_v55 = vld [vmem:[%s7268_s20 + $0xa8] sm:$0xff]  ;;  %v5556_v56 = vld [vmem:[%s7268_s20 + $0xb0] sm:$0xff] }
 0x45c   :  { %v5444_v59 = vadd.f32 %v3848_v30, %v970_v57  ;;  %7278 = vst [vmem:[#allocation80_spill] sm:$0xff] %v5553_v55  ;;  %7279 = vst [vmem:[#allocation81_spill] sm:$0xff] %v5556_v56  ;;  %v5563_v57 = vld [vmem:[%s7268_s20 + $0x38] sm:$0xff] }
 0x45d   :  { %v5446_v60 = vadd.f32 %v3848_v30, %v969_v58  ;;  %7280 = vst [vmem:[#allocation82_spill] sm:$0xff] %v5563_v57  ;;  %v5566_v58 = vld [vmem:[%s7268_s20 + $0x40] sm:$0xff] }
 0x45e   :  { %7265 = vst [vmem:[#allocation69_spill] sm:$0xff] %v5444_v59  ;;  %v996_v61 = vsel %vm905_vm10, %v5444_v59, 0.0  ;;  %7281 = vst [vmem:[#allocation83_spill] sm:$0xff] %v5566_v58 }
 0x45f   :  { %7266 = vst [vmem:[#allocation70_spill] sm:$0xff] %v5446_v60  ;;  %997 = vadd.xlane.f32.xlu0 %v996_v61  ;;  %v993_v62 = vsel %vm892_vm7, %v5446_v60, 0.0  ;;  %v5573_v61 = vld [vmem:[%s7268_s20 + $0xb8] sm:$0xff] }
 0x460   :  { %994 = vadd.xlane.f32.xlu1 %v993_v62  ;;  %7282 = vst [vmem:[#allocation84_spill] sm:$0xff] %v5573_v61  ;;  %v5576_v62 = vld [vmem:[%s7268_s20 + $0xc0] sm:$0xff] }
 0x461   :  { %7283 = vst [vmem:[#allocation85_spill] sm:$0xff] %v5576_v62 }
 0x4d4   :  { %v986_v63 = vpop.xlane.xlu0 %985 }
 0x4d5   :  { %v999_v0 = vmul.f32 0.015625, %v986_v63  ;;  %v5583_v63 = vld [vmem:[%s7268_s20 + $0x48] sm:$0xff] }
 0x4d6   :  { %7284 = vst [vmem:[#allocation86_spill] sm:$0xff] %v5583_v63 }
 0x4d7   :  { %v5453_v1 = vsub.f32 %v5432_v34, %v999_v0  ;;  %v5586_v0 = vld [vmem:[%s7268_s20 + $0x50] sm:$0xff] }
 0x4d8   :  { %7285 = vst [vmem:[#allocation87_spill] sm:$0xff] %v5586_v0 }
 0x4d9   :  { %v992_v2 = vpop.xlane.xlu0 %991  ;;  %v1009_v4 = vmul.f32 %v5453_v1, %v5453_v1 }
 0x4da   :  { %v1001_v5 = vmul.f32 0.015625, %v992_v2  ;;  %v5593_v2 = vld [vmem:[%s7268_s20 + $0xc8] sm:$0xff] }
 0x4db   :  { %v1014_v7 = vsel %vm892_vm7, %v1009_v4, 0.0  ;;  %7286 = vst [vmem:[#allocation88_spill] sm:$0xff] %v5593_v2  ;;  %v5596_v4 = vld [vmem:[%s7268_s20 + $0xd0] sm:$0xff] }
 0x4dc   :  { %v5459_v10 = vsub.f32 %v5436_v44, %v1001_v5  ;;  %1015 = vadd.xlane.f32.xlu1 %v1014_v7  ;;  %7287 = vst [vmem:[#allocation89_spill] sm:$0xff] %v5596_v4  ;;  %v5603_v5 = vld [vmem:[%s7268_s20 + $0x58] sm:$0xff]  ;;  %v5606_v7 = vld [vmem:[%s7268_s20 + $0x100] sm:$0xff] }
 0x4dd   :  { %7288 = vst [vmem:[#allocation90_spill] sm:$0xff] %v5603_v5  ;;  %7289 = vst [vmem:[#allocation91_spill] sm:$0xff] %v5606_v7 }
 0x4de   :  { %v1011_v11 = vmul.f32 %v5459_v10, %v5459_v10 }
 0x4e0   :  { %v1020_v12 = vsel %vm892_vm7, %v1011_v11, 0.0  ;;  %v5613_v11 = vld [vmem:[%s7268_s20 + $0xd8] sm:$0xff] }
 0x4e1   :  { %1021 = vadd.xlane.f32.xlu1 %v1020_v12  ;;  %7290 = vst [vmem:[#allocation92_spill] sm:$0xff] %v5613_v11  ;;  %v5616_v12 = vld [vmem:[%s7268_s20 + $0x60] sm:$0xff] }
 0x4e2   :  { %7291 = vst [vmem:[#allocation93_spill] sm:$0xff] %v5616_v12 }
 0x4e8   :  { %v989_v16 = vpop.xlane.xlu1 %988 }
 0x4e9   :  { %v1000_v17 = vmul.f32 0.015625, %v989_v16  ;;  %v5623_v16 = vld [vmem:[%s7268_s20 + $0x108] sm:$0xff] }
 0x4ea   :  { %7292 = vst [vmem:[#allocation94_spill] sm:$0xff] %v5623_v16 }
 0x4eb   :  { %v5465_v18 = vsub.f32 %v5440_v53, %v1000_v17  ;;  %v5626_v17 = vld [vmem:[%s7268_s20 + $0xe0] sm:$0xff] }
 0x4ec   :  { %v998_v20 = vpop.xlane.xlu0 %997  ;;  %7293 = vst [vmem:[#allocation95_spill] sm:$0xff] %v5626_v17 }
 0x4ed   :  { %v995_v21 = vpop.xlane.xlu1 %994  ;;  %v1003_v22 = vmul.f32 0.015625, %v998_v20  ;;  %v1010_v23 = vmul.f32 %v5465_v18, %v5465_v18  ;;  %v5633_v20 = vld [vmem:[%s7268_s20 + $0x68] sm:$0xff] }
 0x4ee   :  { %v1002_v24 = vmul.f32 0.015625, %v995_v21  ;;  %7294 = vst [vmem:[#allocation96_spill] sm:$0xff] %v5633_v20  ;;  %v5636_v21 = vld [vmem:[%s7268_s20 + $0x110] sm:$0xff] }
 0x4ef   :  { %v5470_v25 = vsub.f32 %v5444_v59, %v1003_v22  ;;  %v1017_v26 = vsel %vm892_vm7, %v1010_v23, 0.0  ;;  %7295 = vst [vmem:[#allocation97_spill] sm:$0xff] %v5636_v21  ;;  %v5643_v22 = vld [vmem:[%s7268_s20 + $0xe8] sm:$0xff]  ;;  %v5646_v23 = vld [vmem:[%s7268_s20 + $0x70] sm:$0xff] }
 0x4f0   :  { %v5474_v19 = vsub.f32 %v5446_v60, %v1002_v24  ;;  %1018 = vadd.xlane.f32.xlu0 %v1017_v26  ;;  %7296 = vst [vmem:[#allocation98_spill] sm:$0xff] %v5643_v22  ;;  %7297 = vst [vmem:[#allocation99_spill] sm:$0xff] %v5646_v23  ;;  %v5653_v24 = vld [vmem:[%s7268_s20 + $0x118] sm:$0xff]  ;;  %v5656_v26 = vld [vmem:[%s7268_s20 + $0xf0] sm:$0xff] }
 0x4f1   :  { %v1013_v27 = vmul.f32 %v5470_v25, %v5470_v25  ;;  %7298 = vst [vmem:[#allocation100_spill] sm:$0xff] %v5653_v24  ;;  %7299 = vst [vmem:[#allocation101_spill] sm:$0xff] %v5656_v26 }
 0x4f2   :  { %v1012_v28 = vmul.f32 %v5474_v19, %v5474_v19 }
 0x4f3   :  { %v1026_v29 = vsel %vm905_vm10, %v1013_v27, 0.0  ;;  %v5663_v27 = vld [vmem:[%s7268_s20 + $0x78] sm:$0xff] }
 0x4f4   :  { %v1023_v30 = vsel %vm892_vm7, %v1012_v28, 0.0  ;;  %1027 = vadd.xlane.f32.xlu1 %v1026_v29  ;;  %7300 = vst [vmem:[#allocation102_spill] sm:$0xff] %v5663_v27  ;;  %v5666_v28 = vld [vmem:[%s7268_s20 + $0x120] sm:$0xff]  ;;  %v5673_v29 = vld [vmem:[%s7268_s20 + $0xf8] sm:$0xff] }
 0x4f5   :  { %1024 = vadd.xlane.f32.xlu0 %v1023_v30  ;;  %7301 = vst [vmem:[#allocation103_spill] sm:$0xff] %v5666_v28  ;;  %7302 = vst [vmem:[#allocation104_spill] sm:$0xff] %v5673_v29  ;;  %v5678_v30 = vld [vmem:[%s7268_s20 + $0x128] sm:$0xff] }
 0x4f6   :  { %7303 = vst [vmem:[#allocation105_spill] sm:$0xff] %v5678_v30 }
 0x505   :  { %1351 = vrot.lane.b32.xlu1 %v5493_v41, %s5028_s18 }
 0x509   :  { %1381 = vrot.lane.b32.xlu1 %v5503_v43, %s5028_s18 }
 0x50b   :  { %1349 = vrot.lane.b32.xlu0 %v5496_v42, %s5028_s18 }
 0x50d   :  { %1383 = vrot.lane.b32.xlu1 %v5513_v46, %s5028_s18 }
 0x50f   :  { %1353 = vrot.lane.b32.xlu0 %v5506_v45, %s5028_s18 }
 0x511   :  { %1355 = vrot.lane.b32.xlu1 %v5523_v48, %s5028_s18 }
 0x513   :  { %1385 = vrot.lane.b32.xlu0 %v5516_v47, %s5028_s18 }
 0x515   :  { %1387 = vrot.lane.b32.xlu1 %v5533_v50, %s5028_s18 }
 0x517   :  { %1357 = vrot.lane.b32.xlu0 %v5526_v49, %s5028_s18 }
 0x519   :  { %1359 = vrot.lane.b32.xlu1 %v5543_v52, %s5028_s18 }
 0x51b   :  { %1389 = vrot.lane.b32.xlu0 %v5536_v51, %s5028_s18 }
 0x51d   :  { %1391 = vrot.lane.b32.xlu1 %v5553_v55, %s5028_s18 }
 0x51f   :  { %1361 = vrot.lane.b32.xlu0 %v5546_v54, %s5028_s18 }
 0x521   :  { %1363 = vrot.lane.b32.xlu1 %v5563_v57, %s5028_s18 }
 0x523   :  { %1393 = vrot.lane.b32.xlu0 %v5556_v56, %s5028_s18 }
 0x525   :  { %1395 = vrot.lane.b32.xlu1 %v5573_v61, %s5028_s18 }
 0x527   :  { %1365 = vrot.lane.b32.xlu0 %v5566_v58, %s5028_s18 }
 0x529   :  { %1367 = vrot.lane.b32.xlu1 %v5583_v63, %s5028_s18 }
 0x52b   :  { %1397 = vrot.lane.b32.xlu0 %v5576_v62, %s5028_s18 }
 0x52d   :  { %1399 = vrot.lane.b32.xlu1 %v5593_v2, %s5028_s18 }
 0x52f   :  { %1369 = vrot.lane.b32.xlu0 %v5586_v0, %s5028_s18 }
 0x531   :  { %1371 = vrot.lane.b32.xlu1 %v5603_v5, %s5028_s18 }
 0x533   :  { %1401 = vrot.lane.b32.xlu0 %v5596_v4, %s5028_s18 }
 0x535   :  { %1403 = vrot.lane.b32.xlu1 %v5613_v11, %s5028_s18 }
 0x537   :  { %1413 = vrot.lane.b32.xlu0 %v5606_v7, %s5028_s18 }
 0x539   :  { %1415 = vrot.lane.b32.xlu1 %v5623_v16, %s5028_s18 }
 0x53b   :  { %1373 = vrot.lane.b32.xlu0 %v5616_v12, %s5028_s18 }
 0x53d   :  { %1375 = vrot.lane.b32.xlu1 %v5633_v20, %s5028_s18 }
 0x53f   :  { %1405 = vrot.lane.b32.xlu0 %v5626_v17, %s5028_s18 }
 0x541   :  { %1407 = vrot.lane.b32.xlu1 %v5643_v22, %s5028_s18  ;;  %v1082_v22 = vld [vmem:[%s7307_s22] sm:$0x3] }
 0x543   :  { %1417 = vrot.lane.b32.xlu0 %v5636_v21, %s5028_s18 }
 0x545   :  { %1419 = vrot.lane.b32.xlu1 %v5653_v24, %s5028_s18 }
 0x547   :  { %1377 = vrot.lane.b32.xlu0 %v5646_v23, %s5028_s18  ;;  %v1084_v23 = vlaneseq }
 0x549   :  { %1379 = vrot.lane.b32.xlu1 %v5663_v27, %s5028_s18 }
 0x54b   :  { %1409 = vrot.lane.b32.xlu0 %v5656_v26, %s5028_s18  ;;  %v1085_v26 = vshrl.u32 %v1084_v23, 7 }
 0x54d   :  { %1411 = vrot.lane.b32.xlu1 %v5673_v29, %s5028_s18  ;;  %v1086_v20 = vsub.s32 0, %v1085_v26  ;;  %v1090_v17 = vsub.s32 1, %v1085_v26 }
 0x54f   :  { %1421 = vrot.lane.b32.xlu0 %v5666_v28, %s5028_s18  ;;  %v5748_v5 = vrot.slane %v1082_v22, %v1086_v20  ;;  %v5750_v16 = vrot.slane %v1082_v22, %v1090_v17 }
 0x551   :  { %1423 = vrot.lane.b32.xlu1 %v5678_v30, %s5028_s18 }
 0x569   :  { %v1016_v31 = vpop.xlane.xlu1 %1015 }
 0x56a   :  { %v1029_v32 = vmul.f32 0.015625, %v1016_v31 }
 0x56c   :  { %v1034_v33 = vadd.f32 1e-05, %v1029_v32  ;;  %v3849_v32 = vld [vmem:[%s7304_s30] ss:$0 sm:$0xff] }
 0x56e   :  { %v1022_v35 = vpop.xlane.xlu1 %1021  ;;  %4573 = vrsqrt.f32 %v1034_v33 }
 0x56f   :  { %v1031_v36 = vmul.f32 0.015625, %v1022_v35 }
 0x571   :  { %v1036_v39 = vadd.f32 1e-05, %v1031_v36 }
 0x578   :  { %v4574_v6 = vpop.eup %4573 }
 0x579   :  { %v1044_v31 = vmul.f32 %v4574_v6, %v5453_v1 }
 0x57b   :  { %v1055_v35 = vmul.f32 %v3849_v32, %v1044_v31 }
 0x57d   :  { %v1019_v37 = vpop.xlane.xlu0 %1018 }
 0x57e   :  { %v1030_v38 = vmul.f32 0.015625, %v1019_v37 }
 0x580   :  { %v1035_v13 = vadd.f32 1e-05, %v1030_v38  ;;  %v3850_v38 = vld [vmem:[#allocation2] ss:$0 sm:$0xff] }
 0x581   :  { %v1028_v15 = vpop.xlane.xlu1 %1027 }
 0x582   :  { %4575 = vrsqrt.f32 %v1035_v13  ;;  %v1033_v14 = vmul.f32 0.015625, %v1028_v15  ;;  %v1025_v40 = vpop.xlane.xlu0 %1024  ;;  %v1066_v15 = vadd.f32 %v3850_v38, %v1055_v35 }
 0x583   :  { %v1032_v3 = vmul.f32 0.015625, %v1025_v40  ;;  %4577 = vrsqrt.f32 %v1036_v39 }
 0x584   :  { %v1038_v9 = vadd.f32 1e-05, %v1033_v14 }
 0x585   :  { %v1037_v8 = vadd.f32 1e-05, %v1032_v3 }
 0x587   :  { %4579 = vrsqrt.f32 %v1037_v8 }
 0x588   :  { %4581 = vrsqrt.f32 %v1038_v9  ;;  %v7305_v9 = vmov 0  }
 0x58c   :  { %v4576_v33 = vpop.eup %4575 }
 0x58d   :  { %v1045_v37 = vmul.f32 %v4576_v33, %v5465_v18  ;;  %v4578_v36 = vpop.eup %4577 }
 0x58e   :  { %v1046_v40 = vmul.f32 %v4578_v36, %v5459_v10  ;;  %v1350_v36 = vpop.permute.xlu0 %1349 }
 0x58f   :  { %v1056_v59 = vmul.f32 %v3849_v32, %v1045_v37 }
 0x590   :  { %v1057_v6 = vmul.f32 %v3849_v32, %v1046_v40 }
 0x591   :  { %v4580_v13 = vpop.eup %4579  ;;  %v1067_v60 = vadd.f32 %v3850_v38, %v1056_v59 }
 0x592   :  { %v1047_v3 = vmul.f32 %v4580_v13, %v5474_v19  ;;  %v4582_v8 = vpop.eup %4581  ;;  %v1068_v31 = vadd.f32 %v3850_v38, %v1057_v6  ;;  %v1352_v19 = vpop.permute.xlu1 %1351 }
 0x593   :  { %v1079_v14 = vpack.c.bf16 %v1067_v60, %v1066_v15  ;;  %v1048_v18 = vmul.f32 %v4582_v8, %v5470_v25  ;;  %v7306_v60 = vmov 0.0   ;;  %v5699_v25 = vpop.permute.xlu0 %1353 }
 0x594   :  { %v1058_v39 = vmul.f32 %v3849_v32, %v1047_v3 }
 0x595   :  { %3859 = vmatmul.mubr.msk.bf16.vlgmr.msra.gmra.mrb[12].mxu0 %vm892_vm7, %v1079_v14  ;;  %v1059_v37 = vmul.f32 %v3849_v32, %v1048_v18 }
 0x596   :  { %1185 = vmatprep.mubr.bf16.mxu0 %v7305_v9  ;;  %v1069_v1 = vadd.f32 %v3850_v38, %v1058_v39  ;;  %v5695_v35 = vpop.permute.xlu1 %1381 }
 0x597   :  { %v1070_v59 = vadd.f32 %v3850_v38, %v1059_v37  ;;  %v5703_v15 = vpop.permute.xlu0 %1385 }
 0x598   :  { %v1080_v33 = vpack.c.bf16 %v1069_v1, %v1068_v31 }
 0x599   :  { %v1081_v10 = vpack.c.bf16 %v1070_v59, %v1070_v59 }
 0x59a   :  { %v5697_v13 = vpop.permute.xlu1 %1383 }
 0x59b   :  { %v5705_v38 = vpop.permute.xlu0 %1357 }
 0x59d   :  { %3860 = vmatmul.mubr.msk.bf16.gmra.mrb[16].mxu0 %vm892_vm7, %v1080_v33 }
 0x59e   :  { %1195 = vmatprep.mubr.bf16.mxu0 %v7305_v9  ;;  %v5701_v32 = vpop.permute.xlu1 %1355 }
 0x59f   :  { %v5709_v14 = vpop.permute.xlu0 %1389 }
 0x5a2   :  { %v1388_v40 = vpop.permute.xlu1 %1387 }
 0x5a3   :  { %v5713_v39 = vpop.permute.xlu0 %1361 }
 0x5a5   :  { %3861 = vmatmul.mubr.msk.bf16.gmra.mrb[20].mxu0 %vm892_vm7, %v1081_v10 }
 0x5a6   :  { %4239 = vmatprep.mubr.msk.bf16.mxu0 %vm5026_vm4, %v7306_v60  ;;  %v5707_v3 = vpop.permute.xlu1 %1359 }
 0x5a7   :  { %v5717_v9 = vpop.permute.xlu0 %1393 }
 0x5aa   :  { %v5711_v8 = vpop.permute.xlu1 %1391 }
 0x5ab   :  { %v5721_v18 = vpop.permute.xlu0 %1365 }
 0x5ae   :  { %v5715_v6 = vpop.permute.xlu1 %1363 }
 0x5af   :  { %v5725_v33 = vpop.permute.xlu0 %1397 }
 0x5b2   :  { %v5719_v1 = vpop.permute.xlu1 %1395 }
 0x5b3   :  { %v5729_v59 = vpop.permute.xlu0 %1369 }
 0x5b6   :  { %v5723_v31 = vpop.permute.xlu1 %1367 }
 0x5b7   :  { %v5733_v44 = vpop.permute.xlu0 %1401 }
 0x5ba   :  { %v5727_v37 = vpop.permute.xlu1 %1399 }
 0x5bb   :  { %v5737_v34 = vpop.permute.xlu0 %1413 }
 0x5be   :  { %v5731_v10 = vpop.permute.xlu1 %1371 }
 0x5bf   :  { %v5741_v27 = vpop.permute.xlu0 %1373 }
 0x5c2   :  { %v5735_v53 = vpop.permute.xlu1 %1403 }
 0x5c3   :  { %v5745_v12 = vpop.permute.xlu0 %1405 }
 0x5c6   :  { %v5739_v60 = vpop.permute.xlu1 %1415 }
 0x5c7   :  { %v1418_v0 = vpop.permute.xlu0 %1417 }
 0x5ca   :  { %v5743_v29 = vpop.permute.xlu1 %1375 }
 0x5cb   :  { %v5764_v17 = vpop.permute.xlu0 %1377 }
 0x5ce   :  { %v1408_v21 = vpop.permute.xlu1 %1407 }
 0x5d2   :  { %v5752_v7 = vpop.permute.xlu1 %1419 }
 0x5d6   :  { %v1380_v62 = vpop.permute.xlu1 %1379 }
 0x668   :  { %v1177_v11 = vpop.f32.mrb[12].mxu0 }
 0x669   :  { %v5755_v63 = vadd.f32 %v1177_v11, %v5748_v5  ;;  %v1179_v58 = vpop.f32.mrb[13].mxu0 }
 0x66a   :  { %v5758_v23 = vadd.f32 %v1179_v58, %v5750_v16  ;;  %v1181_v4 = vpop.f32.mrb[14].mxu0 }
 0x66b   :  { %v5761_v57 = vadd.f32 %v1181_v4, %v5748_v5  ;;  %v1183_v20 = vpop.f32.mrb[15].mxu0  ;;  %v1463_v22 = vmul.f32 %v1350_v36, %v5755_v63  ;;  %v7309_v2 = vrot.slane %v5755_v63, 6  ;;  %v7160_v49 = vrot.slane %v5755_v63, 4 }
 0x66c   :  { %v5770_v58 = vadd.f32 %v1183_v20, %v5750_v16  ;;  %v7310_v55 = vrot.slane %v5755_v63, 2 }
 0x66d   :  { %v1295_v4 = vrot.slane %v5761_v57, 6  ;;  %v5776_v26 = vpack.c.bf16 %v5761_v57, %v5755_v63  ;;  %v1464_v30 = vmul.f32 %v1352_v19, %v5761_v57  ;;  %v1279_v36 = vrot.slane %v5761_v57, 4 }
 0x66e   :  { %v1264_v61 = vrot.slane %v5761_v57, 2  ;;  %v5790_v19 = vmul.f32 %v1388_v40, %v5755_v63 }
 0x66f   :  { %7308 = vst [vmem:[#allocation106_spill] sm:$0xff] %v5776_v26  ;;  %v1296_v52 = vsel %vm1293_vm11, %v7309_v2, %v1295_v4  ;;  %3973 = vmatprep.mubr.msk.bf16.mxu1 %vm892_vm7, %v5776_v26  ;;  %v1594_v56 = vpack.c.bf16 %v1464_v30, %v1463_v22  ;;  %v5802_v2 = vmul.f32 %v5709_v14, %v5761_v57  ;;  %v1410_v22 = vpop.permute.xlu0 %1409 }
 0x670   :  { %v5793_v11 = vmul.f32 %v1418_v0, %v1296_v52  ;;  %v5795_v54 = vmul.f32 %v1380_v62, %v1296_v52  ;;  %v1187_v20 = vpop.f32.mrb[16].mxu0  ;;  %v1265_v51 = vsel %vm1262_vm12, %v7310_v55, %v1264_v61  ;;  %v1280_v52 = vsel %vm472_vm1, %v7160_v49, %v1279_v36 }
 0x671   :  { %v5805_v30 = vadd.f32 %v1187_v20, %v5748_v5  ;;  %v1189_v40 = vpop.f32.mrb[17].mxu0  ;;  %1632 = vrot.lane.b32.xlu0 %v1594_v56, %s5028_s18  ;;  %v5809_v0 = vmul.f32 %v5707_v3, %v1265_v51  ;;  %v5819_v14 = vmul.f32 %v5729_v59, %v1280_v52  ;;  %v5822_v20 = vmul.f32 %v5725_v33, %v1265_v51 }
 0x672   :  { %v5816_v62 = vadd.f32 %v1189_v40, %v5750_v16  ;;  %v1191_v57 = vpop.f32.mrb[18].mxu0  ;;  %v5824_v56 = vmul.f32 %v1408_v21, %v1280_v52  ;;  %v5833_v40 = vmul.f32 %v5496_v42, %v5758_v23  ;;  %v1412_v52 = vpop.permute.xlu1 %1411 }
 0x673   :  { %v5827_v3 = vadd.f32 %v1191_v57, %v5748_v5  ;;  %v1193_v26 = vpop.f32.mrb[19].mxu0  ;;  %v1281_v49 = vrot.slane %v5805_v30, 4  ;;  %v1297_v55 = vrot.slane %v5805_v30, 6  ;;  %v1465_v51 = vmul.f32 %v5699_v25, %v5805_v30  ;;  %v1422_v47 = vpop.permute.xlu0 %1421 }
 0x674   :  { %7311 = vst [vmem:[#allocation107_spill] sm:$0xff] %v5833_v40  ;;  %v5837_v48 = vadd.f32 %v1193_v26, %v5750_v16  ;;  %v1266_v21 = vrot.slane %v5805_v30, 2 }
 0x675   :  { %v1282_v33 = vsel %vm472_vm1, %v1279_v36, %v1281_v49  ;;  %v1283_v57 = vrot.slane %v5827_v3, 4  ;;  %v1299_v45 = vrot.slane %v5827_v3, 6  ;;  %v1466_v42 = vmul.f32 %v5701_v32, %v5827_v3 }
 0x676   :  { %v5851_v25 = vmul.f32 %v5731_v10, %v1282_v33  ;;  %v1298_v46 = vsel %vm1293_vm11, %v1295_v4, %v1297_v55  ;;  %v5858_v32 = vmul.f32 %v1410_v22, %v1282_v33  ;;  %v1267_v4 = vsel %vm1262_vm12, %v1264_v61, %v1266_v21 }
 0x677   :  { %v1284_v36 = vsel %vm472_vm1, %v1281_v49, %v1283_v57  ;;  %v1300_v50 = vsel %vm1293_vm11, %v1297_v55, %v1299_v45  ;;  %v1595_v24 = vpack.c.bf16 %v1466_v42, %v1465_v51  ;;  %v1479_v51 = vmul.f32 %v5695_v35, %v1298_v46 }
 0x678   :  { %v5861_v59 = vmul.f32 %v5741_v27, %v1284_v36  ;;  %v5863_v26 = vmul.f32 %v1412_v52, %v1284_v36  ;;  %v1480_v10 = vmul.f32 %v5697_v13, %v1300_v50  ;;  %v1197_v28 = vpop.f32.mrb[20].mxu0  ;;  %v1268_v22 = vrot.slane %v5827_v3, 2  ;;  %v1424_v52 = vpop.permute.xlu1 %1423 }
 0x679   :  { %v5867_v40 = vadd.f32 %v1197_v28, %v5748_v5  ;;  %v1199_v49 = vpop.f32.mrb[21].mxu0  ;;  %1634 = vrot.lane.b32.xlu0 %v1595_v24, %s5028_s18  ;;  %v5875_v55 = vmul.f32 %v1422_v47, %v1300_v50  ;;  %v1484_v5 = vmul.f32 %v5711_v8, %v5805_v30  ;;  %v7312_v61 = vrot.slane %v5755_v63, 2 }
 0x67a   :  { %v5878_v13 = vadd.f32 %v1199_v49, %v5750_v16  ;;  %v1201_v33 = vpop.f32.mrb[22].mxu0  ;;  %v1602_v24 = vpack.c.bf16 %v1480_v10, %v1479_v51  ;;  %v1269_v47 = vsel %vm1262_vm12, %v1266_v21, %v1268_v22  ;;  %v7313_v36 = vrot.slane %v5758_v23, 2 }
 0x67b   :  { %v1202_v28 = vpop.f32.mrb[23].mxu0  ;;  %v1301_v35 = vrot.slane %v5867_v40, 6  ;;  %v1308_v42 = vsel %vm1262_vm12, %v5867_v40, %v7312_v61  ;;  %v1469_v10 = vmul.f32 %v5713_v39, %v1267_v4  ;;  %v1470_v21 = vmul.f32 %v5715_v6, %v1269_v47 }
 0x67c   :  { %v1513_v50 = vrot.slane %v5878_v13, 2  ;;  %v1543_v16 = vrot.slane %v5878_v13, 6  ;;  %v5894_v8 = vsel %vm1262_vm12, %v5878_v13, %v7313_v36  ;;  %1648 = vrot.lane.b32.xlu1 %v1602_v24, %s5028_s18  ;;  %v1467_v51 = vmul.f32 %v5705_v38, %v1308_v42 }
 0x67d   :  { %v1302_v49 = vsel %vm1293_vm11, %v1299_v45, %v1301_v35  ;;  %v1604_v33 = vpack.c.bf16 %v1484_v5, %v5802_v2  ;;  %v1270_v27 = vrot.slane %v5867_v40, 2  ;;  %v1485_v36 = vmul.f32 %v5717_v9, %v5827_v3 }
 0x67e   :  { %v1481_v28 = vmul.f32 %v5703_v15, %v1302_v49  ;;  %v5903_v61 = vmul.f32 %v1424_v52, %v1302_v49  ;;  %v1596_v39 = vpack.c.bf16 %v5809_v0, %v1467_v51  ;;  %v1597_v24 = vpack.c.bf16 %v1470_v21, %v1469_v10 }
 0x67f   :  { %v1486_v45 = vmul.f32 %v5719_v1, %v1308_v42  ;;  %v1599_v38 = vpack.c.bf16 %v5851_v25, %v5819_v14  ;;  %v1271_v2 = vsel %vm1262_vm12, %v1268_v22, %v1270_v27  ;;  %v7314_v5 = vrot.slane %v5755_v63, 4 }
 0x680   :  { %v1603_v15 = vpack.c.bf16 %v5790_v19, %v1481_v28  ;;  %1636 = vrot.lane.b32.xlu0 %v1596_v39, %s5028_s18  ;;  %v1471_v9 = vmul.f32 %v5721_v18, %v1271_v2  ;;  %v1488_v14 = vmul.f32 %v5727_v37, %v1267_v4  ;;  %v1285_v25 = vrot.slane %v5867_v40, 4  ;;  %v7317_v28 = vld [vmem:[#allocation107_spill] sm:$0xff]  ;;  %v7318_v39 = vld [vmem:[#allocation72_spill] sm:$0xff] }
 0x681   :  { %v1309_v52 = vsel %vm472_vm1, %v1270_v27, %v7314_v5  ;;  %v1605_v0 = vpack.c.bf16 %v1486_v45, %v1485_v36  ;;  %v5926_v19 = vmul.f32 %v5733_v44, %v1269_v47  ;;  %v5929_v22 = vmul.f32 %v5735_v53, %v1271_v2  ;;  %v7319_v45 = vld [vmem:[#allocation100_spill] sm:$0xff]  ;;  %v7320_v2 = vld [vmem:[#allocation73_spill] sm:$0xff] }
 0x682   :  { %v1472_v1 = vmul.f32 %v5723_v31, %v1309_v52  ;;  %1650 = vrot.lane.b32.xlu1 %v1603_v15, %s5028_s18  ;;  %v5932_v27 = vmul.f32 %v5745_v12, %v1309_v52  ;;  %v1606_v18 = vpack.c.bf16 %v1488_v14, %v5822_v20  ;;  %v5936_v31 = vmul.f32 %v5752_v7, %v1298_v46  ;;  %v7321_v52 = vld [vmem:[#allocation76_spill] sm:$0xff] }
 0x683   :  { %v1539_v37 = vrot.slane %v5816_v62, 6  ;;  %v1286_v4 = vsel %vm472_vm1, %v1283_v57, %v1285_v25  ;;  %v7315_v44 = vrot.slane %v5755_v63, 6  ;;  %v1607_v12 = vpack.c.bf16 %v5929_v22, %v5926_v19  ;;  %v7325_v22 = vld [vmem:[#allocation77_spill] sm:$0xff]  ;;  %v7358_v63 = vld [vmem:[#allocation95_spill] sm:$0xff] }
 0x684   :  { %v1598_v35 = vpack.c.bf16 %v1472_v1, %v1471_v9  ;;  %v1608_v42 = vpack.c.bf16 %v5824_v56, %v5932_v27  ;;  %1638 = vrot.lane.b32.xlu0 %v1597_v24, %s5028_s18  ;;  %v1495_v46 = vmul.f32 %v5737_v34, %v1286_v4  ;;  %v5953_v20 = vmul.f32 %v5743_v29, %v1286_v4  ;;  %v7322_v9 = vld [vmem:[#allocation103_spill] sm:$0xff]  ;;  %v7326_v4 = vld [vmem:[#allocation80_spill] sm:$0xff]  ;;  %v7365_v56 = vld [vmem:[#allocation97_spill] sm:$0xff] }
 0x685   :  { %v1310_v53 = vsel %vm1293_vm11, %v1285_v25, %v7315_v44  ;;  %v7316_v47 = vrot.slane %v5770_v58, 6  ;;  %v1541_v49 = vrot.slane %v5837_v48, 6  ;;  %v5967_v34 = vmul.f32 %v5493_v41, %v5770_v58  ;;  %v7324_v25 = vld [vmem:[#allocation74_spill] sm:$0xff] }
 0x686   :  { %v1496_v7 = vmul.f32 %v5739_v60, %v1310_v53  ;;  %v5956_v57 = vmul.f32 %v5764_v17, %v1310_v53  ;;  %1652 = vrot.lane.b32.xlu1 %v1604_v33, %s5028_s18  ;;  %v1528_v29 = vrot.slane %v5878_v13, 4  ;;  %v1600_v17 = vpack.c.bf16 %v5953_v20, %v5861_v59  ;;  %v7369_v20 = vld [vmem:[#allocation99_spill] sm:$0xff] }
 0x687   :  { %v1540_v10 = vsel %vm1293_vm11, %v7316_v47, %v1539_v37  ;;  %v1542_v21 = vsel %vm1293_vm11, %v1539_v37, %v1541_v49  ;;  %v1544_v41 = vsel %vm1293_vm11, %v1541_v49, %v1543_v16  ;;  %v7323_v16 = vld [vmem:[#allocation71_spill] sm:$0xff]  ;;  %v6005_v19 = vmul.f32 %v7324_v25, %v5837_v48 }
 0x688   :  { %v1610_v60 = vpack.c.bf16 %v1496_v7, %v1495_v46  ;;  %v1601_v51 = vpack.c.bf16 %v5795_v54, %v5956_v57  ;;  %v5976_v33 = vmul.f32 %v1540_v10, %v5503_v43  ;;  %1640 = vrot.lane.b32.xlu0 %v1598_v35, %s5028_s18  ;;  %v5983_v24 = vmul.f32 %v1542_v21, %v7318_v39  ;;  %v7329_v49 = vld [vmem:[#allocation75_spill] sm:$0xff]  ;;  %v7330_v39 = vld [vmem:[#allocation81_spill] sm:$0xff] }
 0x689   :  { %v5986_v15 = vmul.f32 %v1540_v10, %v7319_v45  ;;  %v5989_v5 = vmul.f32 %v1544_v41, %v7320_v2  ;;  %v5993_v43 = vmul.f32 %v7321_v52, %v5758_v23  ;;  %v5997_v1 = vmul.f32 %v1542_v21, %v7322_v9  ;;  %v7332_v52 = vld [vmem:[#allocation84_spill] sm:$0xff]  ;;  %v7356_v37 = vld [vmem:[#allocation87_spill] sm:$0xff] }
 0x68a   :  { %1654 = vrot.lane.b32.xlu1 %v1605_v0, %s5028_s18  ;;  %v6001_v14 = vmul.f32 %v7323_v16, %v5816_v62  ;;  %v6009_v35 = vmul.f32 %v7325_v22, %v5770_v58  ;;  %v6017_v44 = vmul.f32 %v7326_v4, %v5816_v62  ;;  %v6021_v53 = vpack.c.bf16 %v5827_v3, %v5805_v30  ;;  %v7331_v3 = vld [vmem:[#allocation78_spill] sm:$0xff]  ;;  %v7335_v4 = vld [vmem:[#allocation105_spill] sm:$0xff] }
 0x68b   :  { %v7327_v7 = vrot.slane %v5770_v58, 2  ;;  %v7328_v47 = vrot.slane %v5758_v23, 2  ;;  %v6032_v21 = vmul.f32 %v5894_v8, %v7329_v49  ;;  %v6036_v45 = vmul.f32 %v7330_v39, %v5837_v48  ;;  %v7338_v39 = vld [vmem:[#allocation85_spill] sm:$0xff] }
 0x68c   :  { %1642 = vrot.lane.b32.xlu0 %v1599_v38, %s5028_s18  ;;  %v6046_v9 = vmul.f32 %v5894_v8, %v7332_v52  ;;  %v7333_v16 = vrot.slane %v5816_v62, 2  ;;  %v6055_v38 = vmul.f32 %v1544_v41, %v7335_v4  ;;  %v7340_v41 = vld [vmem:[#allocation79_spill] sm:$0xff]  ;;  %v7341_v4 = vld [vmem:[#allocation82_spill] sm:$0xff]  ;;  %v7348_v13 = vrot.slane %v5837_v48, 4 }
 0x68d   :  { %v1508_v10 = vsel %vm1262_vm12, %v7328_v47, %v7327_v7  ;;  %v7334_v25 = vmov %v7327_v7  ;;  %v7336_v7 = vrot.slane %v5837_v48, 2  ;;  %v7373_v54 = vpack.c.bf16 %v5863_v26, %v5858_v32 }
 0x68e   :  { %v6042_v2 = vmul.f32 %v1508_v10, %v7331_v3  ;;  %v1510_v22 = vsel %vm1262_vm12, %v7334_v25, %v7333_v16  ;;  %1656 = vrot.lane.b32.xlu1 %v1606_v18, %s5028_s18  ;;  %v7337_v47 = vmov %v7333_v16  ;;  %v6063_v8 = vmul.f32 %v1508_v10, %v7338_v39  ;;  %v7339_v3 = vld [vmem:[#allocation88_spill] sm:$0xff]  ;;  %v7346_v16 = vld [vmem:[#allocation86_spill] sm:$0xff] }
 0x68f   :  { %v1512_v49 = vsel %vm1262_vm12, %v7337_v47, %v7336_v7  ;;  %v6066_v52 = vmul.f32 %v1510_v22, %v7339_v3  ;;  %v6073_v25 = vmul.f32 %v1510_v22, %v7340_v41  ;;  %v7342_v10 = vmov %v7336_v7  ;;  %v7344_v22 = vld [vmem:[#allocation89_spill] sm:$0xff]  ;;  %v7345_v7 = vld [vmem:[#allocation83_spill] sm:$0xff] }
 0x690   :  { %v6076_v30 = vmul.f32 %v1512_v49, %v7341_v4  ;;  %v1514_v47 = vsel %vm1262_vm12, %v7342_v10, %v1513_v50  ;;  %v7343_v39 = vrot.slane %v5758_v23, 4  ;;  %v6091_v41 = vmul.f32 %v1512_v49, %v7344_v22  ;;  %1664 = vrot.lane.b32.xlu0 %v1610_v60, %s5028_s18  ;;  %v7347_v10 = vld [vmem:[#allocation92_spill] sm:$0xff]  ;;  %v7354_v4 = vld [vmem:[#allocation91_spill] sm:$0xff] }
 0x691   :  { %v6097_v18 = vmul.f32 %v1514_v47, %v7345_v7  ;;  %v6103_v0 = vmul.f32 %v1514_v47, %v7347_v10  ;;  %v7349_v60 = vrot.slane %v5758_v23, 6  ;;  %v7351_v7 = vrot.slane %v5758_v23, 4 }
 0x692   :  { %v1551_v3 = vsel %vm472_vm1, %v1513_v50, %v7343_v39  ;;  %1658 = vrot.lane.b32.xlu1 %v1607_v12, %s5028_s18  ;;  %v1529_v50 = vsel %vm472_vm1, %v7348_v13, %v1528_v29  ;;  %v7350_v39 = vrot.slane %v5770_v58, 4  ;;  %v7352_v22 = vrot.slane %v5816_v62, 4 }
 0x693   :  { %v6100_v46 = vmul.f32 %v1551_v3, %v7346_v16  ;;  %v1552_v49 = vsel %vm1293_vm11, %v1528_v29, %v7349_v60  ;;  %v6127_v29 = vmul.f32 %v1529_v50, %v7354_v4  ;;  %v7355_v60 = vld [vmem:[#allocation94_spill] sm:$0xff]  ;;  %v1983_v59 = vpack.c.bf16 %v6055_v38, %v5997_v1  ;;  %v1244_v38 = vld [vmem:[%s7387_s23 + $0x10] sm:$0xff] }
 0x694   :  { %v1523_v16 = vsel %vm472_vm1, %v7351_v7, %v7350_v39  ;;  %v7353_v47 = vmov %v7350_v39  ;;  %v6130_v36 = vmul.f32 %v1552_v49, %v7355_v60  ;;  %v7357_v7 = vld [vmem:[#allocation90_spill] sm:$0xff]  ;;  %1660 = vrot.lane.b32.xlu0 %v1608_v42, %s5028_s18  ;;  %v7361_v60 = vrot.slane %v5758_v23, 6  ;;  %v7367_v42 = vld [vmem:[#allocation101_spill] sm:$0xff] }
 0x695   :  { %v1525_v12 = vsel %vm472_vm1, %v7353_v47, %v7352_v22  ;;  %v6133_v39 = vmul.f32 %v1523_v16, %v7356_v37  ;;  %v6139_v22 = vmul.f32 %v1551_v3, %v7358_v63  ;;  %v7359_v47 = vld [vmem:[#allocation98_spill] sm:$0xff]  ;;  %v7360_v37 = vrot.slane %v5770_v58, 6 }
 0x696   :  { %v6136_v6 = vmul.f32 %v1525_v12, %v7357_v7  ;;  %v6142_v10 = vmul.f32 %v1523_v16, %v7359_v47  ;;  %v1981_v4 = vpack.c.bf16 %v6130_v36, %v6127_v29  ;;  %v7362_v63 = vmov %v7348_v13  ;;  %v7364_v47 = vld [vmem:[#allocation96_spill] sm:$0xff]  ;;  %1644 = vrot.lane.b32.xlu1 %v1600_v17, %s5028_s18 }
 0x697   :  { %v1538_v7 = vsel %vm1293_vm11, %v7361_v60, %v7360_v37  ;;  %v7363_v3 = vrot.slane %v5816_v62, 4  ;;  %v6161_v13 = vmul.f32 %v1529_v50, %v7364_v47  ;;  %v7366_v62 = vld [vmem:[#allocation93_spill] sm:$0xff]  ;;  %v6178_v50 = vmul.f32 %v1525_v12, %v7367_v42  ;;  %v7368_v37 = vld [vmem:[#allocation104_spill] sm:$0xff]  ;;  %v7370_v47 = vld [vmem:[#allocation102_spill] sm:$0xff] }
 0x698   :  { %v1970_v58 = vpack.c.bf16 %v6136_v6, %v6133_v39  ;;  %v1979_v23 = vpack.c.bf16 %v6142_v10, %v6139_v22  ;;  %v6172_v48 = vmul.f32 %v1538_v7, %v7365_v56  ;;  %v6186_v17 = vmul.f32 %v1552_v49, %v7369_v20  ;;  %1646 = vrot.lane.b32.xlu0 %v1601_v51, %s5028_s18  ;;  %v1243_v10 = vld [vmem:[%s7387_s23 + $0x8] sm:$0xff]  ;;  %v1245_v22 = vld [vmem:[%s7387_s23 + $0x18] sm:$0xff] }
 0x699   :  { %v1527_v16 = vsel %vm472_vm1, %v7363_v3, %v7362_v63  ;;  %v6193_v56 = vmul.f32 %v1538_v7, %v7370_v47  ;;  %v7371_v49 = vpack.c.bf16 %v5936_v31, %v5793_v11  ;;  %v7372_v7 = vpack.c.bf16 %v5903_v61, %v5875_v55  ;;  %v1247_v29 = vld [vmem:[%s7387_s23 + $0x28] sm:$0xff] }
 0x69a   :  { %v6175_v27 = vmul.f32 %v1527_v16, %v7366_v62  ;;  %v6181_v60 = vmul.f32 %v1527_v16, %v7368_v37  ;;  %v1982_v63 = vpack.c.bf16 %v5986_v15, %v6172_v48 }
 0x69b   :  { %1666 = vrot.lane.b32.xlu1 %v7371_v49, %s5028_s18  ;;  %v1972_v16 = vpack.c.bf16 %v6193_v56, %v6186_v17 }
 0x69c   :  { %v1971_v3 = vpack.c.bf16 %v6161_v13, %v6175_v27  ;;  %v1980_v12 = vpack.c.bf16 %v6181_v60, %v6178_v50  ;;  %1668 = vrot.lane.b32.xlu0 %v7372_v7, %s5028_s18  ;;  %v1246_v27 = vld [vmem:[%s7387_s23 + $0x20] sm:$0xff] }
 0x69f   :  { %1662 = vrot.lane.b32.xlu1 %v7373_v54, %s5028_s18 }
 0x6e3   :  { %v1633_v57 = vpop.permute.xlu0 %1632 }
 0x6e4   :  { %v1680_v42 = vsel %vm892_vm7, %v1633_v57, 0 }
 0x6eb   :  { %v1635_v51 = vpop.permute.xlu0 %1634 }
 0x6ec   :  { %v1683_v55 = vsel %vm892_vm7, %v1635_v51, 0 }
 0x6ee   :  { %v1649_v62 = vpop.permute.xlu1 %1648 }
 0x6ef   :  { %4420 = vmatprep.subr.msk.bf16.mxu1 %vm892_vm7, %v1649_v62  ;;  %v7374_v62 = vmov 0.0  }
 0x6f0   :  { %3958 = vmatpush3.bf16.xpose.msra.mxu1 %v1680_v42 }
 0x6f2   :  { %v1637_v11 = vpop.permute.xlu0 %1636 }
 0x6f3   :  { %v1686_v47 = vsel %vm892_vm7, %v1637_v11, 0 }
 0x6f4   :  { %v1651_v31 = vpop.permute.xlu1 %1650 }
 0x6f5   :  { %4421 = vmatprep.subr.msk.bf16.mxu1 %vm892_vm7, %v1651_v31 }
 0x6f6   :  { %v1639_v37 = vpop.permute.xlu0 %1638 }
 0x6f7   :  { %v1689_v42 = vsel %vm892_vm7, %v1639_v37, 0  ;;  %v7375_v37 = vpack.c.bf16 %v5983_v24, %v5976_v33 }
 0x6f8   :  { %v1653_v61 = vpop.permute.xlu1 %1652  ;;  %3960 = vmatpush3.bf16.xpose.msra.mxu1 %v1683_v55 }
 0x6f9   :  { %4422 = vmatprep.subr.msk.bf16.mxu1 %vm892_vm7, %v1653_v61 }
 0x6fa   :  { %v1641_v26 = vpop.permute.xlu0 %1640 }
 0x6fc   :  { %v1655_v32 = vpop.permute.xlu1 %1654 }
 0x6fe   :  { %v1643_v20 = vpop.permute.xlu0 %1642 }
 0x700   :  { %v1657_v49 = vpop.permute.xlu1 %1656  ;;  %3962 = vmatpush3.bf16.xpose.msra.mxu1 %v1686_v47 }
 0x701   :  { %4423 = vmatprep.subr.msk.bf16.mxu1 %vm892_vm7, %v1655_v32  ;;  %v1692_v32 = vsel %vm892_vm7, %v1641_v26, 0  ;;  %v7377_v26 = vpack.c.bf16 %v5967_v34, %v7317_v28  ;;  %v7380_v34 = vpack.c.bf16 %v6017_v44, %v6009_v35  ;;  %v7381_v28 = vpack.c.bf16 %v6042_v2, %v6032_v21 }
 0x702   :  { %v1665_v7 = vpop.permute.xlu0 %1664  ;;  %v1593_v35 = vpack.c.bf16 %v5867_v40, %v5867_v40  ;;  %v7385_v44 = vpack.c.bf16 %v6100_v46, %v6097_v18  ;;  %v7386_v21 = vpack.c.bf16 %v6103_v0, %v6091_v41 }
 0x703   :  { %v1728_v54 = vsel %vm892_vm7, %v1665_v7, 0 }
 0x704   :  { %v1659_v57 = vpop.permute.xlu1 %1658  ;;  %4234 = vmatpush3.bf16.xpose.msra.mxu0 %v1728_v54  ;;  %v7376_v54 = vld [vmem:[#allocation106_spill] sm:$0xff] }
 0x705   :  { %4235 = vmatprep.subr.bf16.mxu0 %v7374_v62 }
 0x706   :  { %v1661_v51 = vpop.permute.xlu0 %1660 }
 0x708   :  { %v1645_v31 = vpop.permute.xlu1 %1644  ;;  %3964 = vmatpush3.bf16.xpose.msra.mxu1 %v1689_v42  ;;  %v1248_v42 = vld [vmem:[%s7387_s23 + $0x30] sm:$0xff] }
 0x709   :  { %4424 = vmatprep.subr.msk.bf16.mxu1 %vm892_vm7, %v1657_v49  ;;  %v1695_v49 = vsel %vm892_vm7, %v1643_v20, 0  ;;  %v1698_v33 = vsel %vm892_vm7, %v1645_v31, 0  ;;  %v7379_v20 = vpack.c.bf16 %v6005_v19, %v6001_v14  ;;  %v7383_v14 = vpack.c.bf16 %v6076_v30, %v6073_v25 }
 0x70a   :  { %v1647_v55 = vpop.permute.xlu0 %1646  ;;  %v7384_v19 = vpack.c.bf16 %v6066_v52, %v6063_v8  ;;  %v1242_v8 = vld [vmem:[%s7387_s23] sm:$0xff] }
 0x70d   :  { %v1667_v11 = vpop.permute.xlu1 %1666 }
 0x70e   :  { %v1731_v61 = vsel %vm892_vm7, %v1667_v11, 0  ;;  %v1669_v47 = vpop.permute.xlu0 %1668 }
 0x70f   :  { %4236 = vmatpush3.bf16.xpose.msra.mxu0 %v1731_v61  ;;  %v1734_v7 = vsel %vm892_vm7, %v1669_v47, 0 }
 0x710   :  { %4237 = vmatprep.subr.bf16.mxu0 %v7374_v62  ;;  %3966 = vmatpush3.bf16.xpose.msra.mxu1 %v1692_v32  ;;  %v1249_v32 = vld [vmem:[%s7387_s23 + $0x38] sm:$0xff] }
 0x711   :  { %4425 = vmatprep.subr.msk.bf16.mxu1 %vm892_vm7, %v1659_v57  ;;  %v7378_v57 = vpack.c.bf16 %v5993_v43, %v5989_v5  ;;  %v1663_v24 = vpop.permute.xlu1 %1662  ;;  %v7382_v5 = vpack.c.bf16 %v6046_v9, %v6036_v45  ;;  %v1701_v43 = vsel %vm892_vm7, %v1647_v55, 0 }
 0x717   :  { %4238 = vmatpush3.bf16.xpose.msra.mxu0 %v1734_v7 }
 0x718   :  { %3985 = vmatprep.subr.bf16.mxu0 %v7375_v37  ;;  %3968 = vmatpush3.bf16.xpose.msra.mxu1 %v1695_v49  ;;  %v1251_v49 = vld [vmem:[%s7387_s23 + $0x48] sm:$0xff] }
 0x719   :  { %4426 = vmatprep.subr.msk.bf16.mxu1 %vm892_vm7, %v1661_v51  ;;  %v1250_v51 = vld [vmem:[%s7387_s23 + $0x40] sm:$0xff] }
 0x71e   :  { %4240 = vmatmul.mubr.msk.bf16.vlgmr.msra.gmra.mrb[24].mxu0 %vm892_vm7, %v7376_v54 }
 0x71f   :  { %3986 = vmatpush3.bf16.msra.mxu0 %v7377_v26  ;;  %4243 = vmatprep.mubr.msk.bf16.mxu0 %vm5026_vm4, %v7374_v62 }
 0x720   :  { %3987 = vmatprep.subr.bf16.mxu0 %v7378_v57  ;;  %3970 = vmatpush3.bf16.xpose.msra.mxu1 %v1698_v33 }
 0x721   :  { %4427 = vmatprep.subr.msk.bf16.mxu1 %vm892_vm7, %v1663_v24 }
 0x723   :  { %3988 = vmatpush3.bf16.msra.mxu0 %v7379_v20 }
 0x724   :  { %3989 = vmatprep.subr.bf16.mxu0 %v7380_v34  ;;  %v1252_v34 = vld [vmem:[%s7387_s23 + $0x50] sm:$0xff] }
 0x726   :  { %4244 = vmatmul.mubr.msk.bf16.gmra.mrb[28].mxu0 %vm892_vm7, %v6021_v53 }
 0x727   :  { %3990 = vmatpush3.bf16.msra.mxu0 %v7381_v28  ;;  %4247 = vmatprep.mubr.msk.bf16.mxu0 %vm5026_vm4, %v7374_v62 }
 0x728   :  { %3991 = vmatprep.subr.bf16.mxu0 %v7382_v5  ;;  %3972 = vmatpush3.bf16.xpose.msra.mxu1 %v1701_v43  ;;  %v1253_v5 = vld [vmem:[%s7387_s23 + $0x58] sm:$0xff] }
 0x729   :  { %4251 = vmatprep.subr.bf16.mxu1 %v7374_v62 }
 0x72b   :  { %3992 = vmatpush3.bf16.msra.mxu0 %v7383_v14 }
 0x72c   :  { %3993 = vmatprep.subr.bf16.mxu0 %v7384_v19 }
 0x72e   :  { %4248 = vmatmul.mubr.msk.bf16.gmra.mrb[32].mxu0 %vm892_vm7, %v1593_v35 }
 0x72f   :  { %3994 = vmatpush3.bf16.msra.mxu0 %v7385_v44  ;;  %3974 = vmatmul.mubr.msk.bf16.vlgmr.msra.gmra.mrb[16].mxu1 %vm892_vm7, %v7376_v54 }
 0x730   :  { %3995 = vmatprep.subr.bf16.mxu0 %v7386_v21  ;;  %3975 = vmatprep.mubr.msk.bf16.mxu1 %vm892_vm7, %v6021_v53 }
 0x731   :  { %4252 = vmatpush3.bf16.msra.mxu1 %v1981_v4 }
 0x732   :  { %4253 = vmatprep.subr.bf16.mxu1 %v7374_v62 }
 0x733   :  { %3996 = vmatpush3.bf16.msra.mxu0 %v1970_v58 }
 0x734   :  { %3997 = vmatprep.subr.bf16.mxu0 %v1979_v23 }
 0x735   :  { %4254 = vmatpush3.bf16.msra.mxu1 %v1982_v63 }
 0x736   :  { %4255 = vmatprep.subr.bf16.mxu1 %v7374_v62 }
 0x737   :  { %3998 = vmatpush3.bf16.msra.mxu0 %v1971_v3  ;;  %3976 = vmatmul.mubr.msk.bf16.gmra.mrb[20].mxu1 %vm892_vm7, %v6021_v53 }
 0x738   :  { %3999 = vmatprep.subr.bf16.mxu0 %v1980_v12  ;;  %3977 = vmatprep.mubr.msk.bf16.mxu1 %vm892_vm7, %v1593_v35 }
 0x739   :  { %4256 = vmatpush3.bf16.msra.mxu1 %v1983_v59 }
 0x73a   :  { %4269 = vmatprep.subr.bf16.mxu1 %v7374_v62 }
 0x73b   :  { %4000 = vmatpush3.bf16.msra.mxu0 %v1972_v16 }
 0x73f   :  { %3978 = vmatmul.mubr.msk.bf16.gmra.mrb[24].mxu1 %vm892_vm7, %v1593_v35 }
 0x740   :  { %4257 = vmatprep.mubr.msk.bf16.mxu1 %vm5026_vm4, %v7374_v62 }
 0x7f1   :  { %v1831_v40 = vpop.f32.mrb[24].mxu0 }
 0x7f2   :  { %v4241_v6 = vpop.f32.mrb[25].mxu0  ;;  %v1855_v2 = vmul.f32 0.35355338, %v1831_v40  ;;  %v1256_v40 = vld [vmem:[%s7387_s23 + $0x70] sm:$0x3f] }
 0x7f3   :  { %v1834_v36 = vpop.f32.mrb[26].mxu0 }
 0x7f4   :  { %v4242_v15 = vpop.f32.mrb[27].mxu0  ;;  %v1858_v25 = vmul.f32 0.35355338, %v1834_v36  ;;  %v6323_v58 = vadd.f32 %v1855_v2, %v1244_v38 }
 0x7f5   :  { %v1254_v15 = vld [vmem:[%s7387_s23 + $0x60] sm:$0x3f] }
 0x7f6   :  { %v6330_v17 = vadd.f32 %v1858_v25, %v1247_v29  ;;  %v1884_v16 = vsel %vm388_vm2, %v6323_v58, -inf }
 0x7f8   :  { %v1889_v7 = vsel %vm388_vm2, %v6330_v17, -inf }
 0x7f9   :  { %v1839_v1 = vpop.f32.mrb[28].mxu0 }
 0x7fa   :  { %v4245_v0 = vpop.f32.mrb[29].mxu0  ;;  %v1861_v12 = vmul.f32 0.35355338, %v1839_v1 }
 0x7fb   :  { %v1842_v53 = vpop.f32.mrb[30].mxu0 }
 0x7fc   :  { %v4246_v46 = vpop.f32.mrb[31].mxu0  ;;  %v6348_v57 = vadd.f32 %v1861_v12, %v1250_v51  ;;  %v1864_v33 = vmul.f32 0.35355338, %v1842_v53 }
 0x7fe   :  { %v6362_v21 = vadd.f32 %v1864_v33, %v1253_v5  ;;  %v1894_v6 = vsel %vm388_vm2, %v6348_v57, -inf }
 0x801   :  { %v1847_v45 = vpop.f32.mrb[32].mxu0 }
 0x802   :  { %v4249_v30 = vpop.f32.mrb[33].mxu0  ;;  %v1770_v52 = vpop.f32.mrb[16].mxu1  ;;  %v1867_v36 = vmul.f32 0.35355338, %v1847_v45  ;;  %v1899_v45 = vsel %vm388_vm2, %v6362_v21, -inf }
 0x803   :  { %v1850_v9 = vpop.f32.mrb[34].mxu0  ;;  %v1853_v41 = vmul.f32 0.35355338, %v1770_v52  ;;  %v1772_v13 = vpop.f32.mrb[17].mxu1  ;;  %v1255_v30 = vld [vmem:[%s7387_s23 + $0x68] sm:$0x3f] }
 0x804   :  { %v4250_v18 = vpop.f32.mrb[35].mxu0  ;;  %v1854_v39 = vmul.f32 0.35355338, %v1772_v13  ;;  %v1774_v4 = vpop.f32.mrb[18].mxu1 }
 0x805   :  { %v6325_v23 = vadd.f32 %v1853_v41, %v1242_v8  ;;  %v1856_v48 = vmul.f32 0.35355338, %v1774_v4  ;;  %v1776_v50 = vpop.f32.mrb[19].mxu1  ;;  %v6375_v18 = vadd.f32 %v1867_v36, %v1256_v40  ;;  %v4645_v4 = vld [vmem:[%s7268_s20 + $0x80] sm:$0xff]  ;;  %v4647_v36 = vld [vmem:[%s7268_s20 + $0x8] sm:$0xff] }
 0x806   :  { %v6328_v60 = vadd.f32 %v1854_v39, %v1243_v10  ;;  %v1857_v59 = vmul.f32 0.35355338, %v1776_v50 }
 0x807   :  { %v6332_v63 = vadd.f32 %v1856_v48, %v1245_v22  ;;  %v1907_v39 = vsel %vm1906_vm13, %v6375_v18, -inf  ;;  %v4646_v48 = vld [vmem:[%s7268_s20 + $0x88] sm:$0xff] }
 0x808   :  { %v6334_v3 = vadd.f32 %v1857_v59, %v1246_v27  ;;  %v1883_v56 = vmax.f32 %v6325_v23, %v6328_v60  ;;  %v2113_v27 = vpack.c.bf16 %v4646_v48, %v4645_v4  ;;  %v4657_v48 = vld [vmem:[%s7268_s20 + $0xa0] sm:$0xff] }
 0x80a   :  { %v1780_v31 = vpop.f32.mrb[20].mxu1  ;;  %v1885_v55 = vmax.f32 %v1883_v56, %v1884_v16  ;;  %v1888_v11 = vmax.f32 %v6332_v63, %v6334_v3  ;;  %4025 = vmatprep.subr.bf16.mxu0 %v2113_v27  ;;  %v4658_v27 = vld [vmem:[%s7268_s20 + $0xa8] sm:$0xff] }
 0x80b   :  { %v1859_v61 = vmul.f32 0.35355338, %v1780_v31  ;;  %v1782_v47 = vpop.f32.mrb[21].mxu1 }
 0x80c   :  { %v1860_v37 = vmul.f32 0.35355338, %v1782_v47  ;;  %v1784_v54 = vpop.f32.mrb[22].mxu1  ;;  %1886 = vmax.xlane.f32.xlu1 %v1885_v55  ;;  %v1890_v26 = vmax.f32 %v1888_v11, %v1889_v7 }
 0x80d   :  { %v6350_v24 = vadd.f32 %v1859_v61, %v1248_v42  ;;  %v1862_v20 = vmul.f32 0.35355338, %v1784_v54  ;;  %v1786_v28 = vpop.f32.mrb[23].mxu1 }
 0x80e   :  { %v6354_v43 = vadd.f32 %v1860_v37, %v1249_v32  ;;  %v1863_v14 = vmul.f32 0.35355338, %v1786_v28  ;;  %1891 = vmax.xlane.f32.xlu0 %v1890_v26 }
 0x80f   :  { %v6356_v19 = vadd.f32 %v1862_v20, %v1251_v49 }
 0x810   :  { %v6358_v35 = vadd.f32 %v1863_v14, %v1252_v34  ;;  %v1893_v44 = vmax.f32 %v6350_v24, %v6354_v43 }
 0x812   :  { %v1790_v1 = vpop.f32.mrb[24].mxu1  ;;  %v1895_v0 = vmax.f32 %v1893_v44, %v1894_v6  ;;  %v1898_v53 = vmax.f32 %v6356_v19, %v6358_v35 }
 0x813   :  { %v1865_v46 = vmul.f32 0.35355338, %v1790_v1  ;;  %v1792_v2 = vpop.f32.mrb[25].mxu1 }
 0x814   :  { %v1866_v9 = vmul.f32 0.35355338, %v1792_v2  ;;  %v1794_v38 = vpop.f32.mrb[26].mxu1  ;;  %1896 = vmax.xlane.f32.xlu0 %v1895_v0  ;;  %v1900_v41 = vmax.f32 %v1898_v53, %v1899_v45 }
 0x815   :  { %v6371_v8 = vadd.f32 %v1865_v46, %v1254_v15  ;;  %v1795_v52 = vpop.f32.mrb[27].mxu1  ;;  %v4648_v15 = vld [vmem:[%s7268_s20] sm:$0xff] }
 0x816   :  { %v6377_v25 = vadd.f32 %v1866_v9, %v1255_v30  ;;  %v2105_v1 = vpack.c.bf16 %v4647_v36, %v4648_v15  ;;  %v4649_v46 = vld [vmem:[%s7268_s20 + $0x100] sm:$0xff]  ;;  %v4650_v30 = vld [vmem:[%s7268_s20 + $0x108] sm:$0xff]  ;;  %v4652_v52 = vld [vmem:[%s7268_s20 + $0x98] sm:$0xff] }
 0x817   :  { %v1903_v10 = vsel %vm1262_vm12, %v6371_v8, -inf  ;;  %v2121_v2 = vpack.c.bf16 %v4650_v30, %v4649_v46  ;;  %v4675_v36 = vld [vmem:[%s7268_s20 + $0xe0] sm:$0xff]  ;;  %v4676_v15 = vld [vmem:[%s7268_s20 + $0xe8] sm:$0xff] }
 0x818   :  { %1901 = vmax.xlane.f32.xlu0 %v1900_v41  ;;  %v1904_v13 = vsel %vm1262_vm12, %v6377_v25, -inf  ;;  %v4653_v41 = vld [vmem:[%s7268_s20 + $0x10] sm:$0xff]  ;;  %v4678_v46 = vld [vmem:[%s7268_s20 + $0x68] sm:$0xff] }
 0x819   :  { %v1905_v29 = vmax.f32 %v1903_v10, %v1904_v13  ;;  %v4654_v10 = vld [vmem:[%s7268_s20 + $0x18] sm:$0xff] }
 0x81a   :  { %v2106_v13 = vpack.c.bf16 %v4654_v10, %v4653_v41 }
 0x81b   :  { %v1908_v22 = vmax.f32 %v1905_v29, %v1907_v39  ;;  %v4655_v39 = vld [vmem:[%s7268_s20 + $0x110] sm:$0xff] }
 0x81d   :  { %1909 = vmax.xlane.f32.xlu1 %v1908_v22  ;;  %v4656_v22 = vld [vmem:[%s7268_s20 + $0x118] sm:$0xff] }
 0x81e   :  { %v2122_v4 = vpack.c.bf16 %v4656_v22, %v4655_v39 }
 0x899   :  { %v1887_v50 = vpop.xlane.xlu1 %1886 }
 0x89a   :  { %v1911_v59 = vsub.f32 %v6325_v23, %v1887_v50  ;;  %v1912_v56 = vsub.f32 %v6328_v60, %v1887_v50  ;;  %v1913_v12 = vsub.f32 %v6323_v58, %v1887_v50  ;;  %v2115_v50 = vpack.c.bf16 %v4658_v27, %v4657_v48 }
 0x89b   :  { %v1892_v16 = vpop.xlane.xlu0 %1891 }
 0x89c   :  { %v1926_v51 = vmul.f32 1.442695, %v1911_v59  ;;  %v1928_v42 = vmul.f32 1.442695, %v1912_v56  ;;  %v1930_v31 = vmul.f32 1.442695, %v1913_v12  ;;  %v1914_v55 = vsub.f32 %v6332_v63, %v1892_v16 }
 0x89d   :  { %v1915_v11 = vsub.f32 %v6334_v3, %v1892_v16  ;;  %v1916_v61 = vsub.f32 %v6330_v17, %v1892_v16  ;;  %v4659_v16 = vld [vmem:[%s7268_s20 + $0x20] sm:$0xff] }
 0x89e   :  { %4583 = vpow2.f32 %v1926_v51  ;;  %v1932_v32 = vmul.f32 1.442695, %v1914_v55  ;;  %v4660_v51 = vld [vmem:[%s7268_s20 + $0x28] sm:$0xff] }
 0x89f   :  { %4585 = vpow2.f32 %v1928_v42  ;;  %v1934_v47 = vmul.f32 1.442695, %v1915_v11  ;;  %v1936_v7 = vmul.f32 1.442695, %v1916_v61  ;;  %v2107_v42 = vpack.c.bf16 %v4660_v51, %v4659_v16  ;;  %v4661_v61 = vld [vmem:[%s7268_s20 + $0xb0] sm:$0xff] }
 0x8a0   :  { %4587 = vpow2.f32 %v1930_v31 }
 0x8a1   :  { %4589 = vpow2.f32 %v1932_v32  ;;  %v1897_v23 = vpop.xlane.xlu0 %1896  ;;  %v4662_v32 = vld [vmem:[%s7268_s20 + $0xb8] sm:$0xff] }
 0x8a2   :  { %4591 = vpow2.f32 %v1934_v47  ;;  %v1917_v58 = vsub.f32 %v6350_v24, %v1897_v23  ;;  %v1918_v60 = vsub.f32 %v6354_v43, %v1897_v23  ;;  %v1919_v37 = vsub.f32 %v6348_v57, %v1897_v23  ;;  %v4664_v23 = vld [vmem:[%s7268_s20 + $0x128] sm:$0xff] }
 0x8a3   :  { %4593 = vpow2.f32 %v1936_v7  ;;  %v2116_v47 = vpack.c.bf16 %v4662_v32, %v4661_v61  ;;  %v4663_v7 = vld [vmem:[%s7268_s20 + $0x120] sm:$0xff] }
 0x8a4   :  { %v1938_v63 = vmul.f32 1.442695, %v1917_v58  ;;  %v1940_v3 = vmul.f32 1.442695, %v1918_v60  ;;  %v1942_v49 = vmul.f32 1.442695, %v1919_v37  ;;  %v2123_v58 = vpack.c.bf16 %v4664_v23, %v4663_v7 }
 0x8a5   :  { %v1902_v17 = vpop.xlane.xlu0 %1901  ;;  %v4665_v37 = vld [vmem:[%s7268_s20 + $0x30] sm:$0xff] }
 0x8a6   :  { %v1920_v54 = vsub.f32 %v6356_v19, %v1902_v17  ;;  %v1921_v26 = vsub.f32 %v6358_v35, %v1902_v17  ;;  %v1922_v33 = vsub.f32 %v6362_v21, %v1902_v17  ;;  %4595 = vpow2.f32 %v1938_v63  ;;  %v4666_v63 = vld [vmem:[%s7268_s20 + $0x38] sm:$0xff]  ;;  %v4667_v17 = vld [vmem:[%s7268_s20 + $0xc0] sm:$0xff] }
 0x8a7   :  { %4597 = vpow2.f32 %v1940_v3  ;;  %v2108_v3 = vpack.c.bf16 %v4666_v63, %v4665_v37 }
 0x8a8   :  { %v4584_v20 = vpop.eup %4583  ;;  %v1944_v34 = vmul.f32 1.442695, %v1920_v54  ;;  %v1946_v24 = vmul.f32 1.442695, %v1921_v26  ;;  %v1948_v28 = vmul.f32 1.442695, %v1922_v33  ;;  %4599 = vpow2.f32 %v1942_v49 }
 0x8a9   :  { %v4586_v57 = vpop.eup %4585  ;;  %v4668_v54 = vld [vmem:[%s7268_s20 + $0xc8] sm:$0xff] }
 0x8aa   :  { %v4588_v5 = vpop.eup %4587  ;;  %4601 = vpow2.f32 %v1944_v34  ;;  %v1910_v43 = vpop.xlane.xlu1 %1909  ;;  %v2117_v26 = vpack.c.bf16 %v4668_v54, %v4667_v17 }
 0x8ab   :  { %v4590_v14 = vpop.eup %4589  ;;  %4603 = vpow2.f32 %v1946_v24  ;;  %v1923_v19 = vsub.f32 %v6371_v8, %v1910_v43  ;;  %v1924_v35 = vsub.f32 %v6377_v25, %v1910_v43  ;;  %v1925_v44 = vsub.f32 %v6375_v18, %v1910_v43  ;;  %v4651_v8 = vld [vmem:[%s7268_s20 + $0x90] sm:$0xff]  ;;  %v4669_v24 = vld [vmem:[%s7268_s20 + $0x40] sm:$0xff]  ;;  %v4672_v43 = vld [vmem:[%s7268_s20 + $0xd8] sm:$0xff] }
 0x8ac   :  { %v4592_v21 = vpop.eup %4591  ;;  %4605 = vpow2.f32 %v1948_v28  ;;  %v6401_v40 = vpack.c.bf16 %v4590_v14, %v4584_v20  ;;  %v2114_v45 = vpack.c.bf16 %v4652_v52, %v4651_v8  ;;  %v4670_v28 = vld [vmem:[%s7268_s20 + $0x48] sm:$0xff]  ;;  %v4681_v52 = vld [vmem:[%s7268_s20 + $0x70] sm:$0xff] }
 0x8ad   :  { %v4594_v6 = vpop.eup %4593  ;;  %v1952_v0 = vmul.f32 1.442695, %v1924_v35  ;;  %v6405_v53 = vpack.c.bf16 %v4592_v21, %v4586_v57  ;;  %v1954_v38 = vmul.f32 1.442695, %v1925_v44  ;;  %v1950_v18 = vmul.f32 1.442695, %v1923_v19 }
 0x8ae   :  { %v6409_v9 = vpack.c.bf16 %v4594_v6, %v4588_v5  ;;  %v2109_v57 = vpack.c.bf16 %v4670_v28, %v4669_v24  ;;  %v4671_v5 = vld [vmem:[%s7268_s20 + $0xd0] sm:$0xff]  ;;  %v4674_v21 = vld [vmem:[%s7268_s20 + $0x58] sm:$0xff] }
 0x8af   :  { %2025 = vmatprep.mubr.bf16.mxu0 %v6405_v53  ;;  %4607 = vpow2.f32 %v1952_v0  ;;  %v2118_v14 = vpack.c.bf16 %v4672_v43, %v4671_v5  ;;  %v4673_v44 = vld [vmem:[%s7268_s20 + $0x50] sm:$0xff]  ;;  %v4677_v0 = vld [vmem:[%s7268_s20 + $0x60] sm:$0xff] }
 0x8b0   :  { %4258 = vmatmul.mubr.msk.bf16.vlgmr.msra.gmra.mrb[28].mxu1 %vm388_vm2, %v6409_v9  ;;  %2026 = vmatmul.mubr.bf16.vlgmr.msra.gmra.mrb[36].mxu0 %v6401_v40  ;;  %v4596_v25 = vpop.eup %4595  ;;  %4609 = vpow2.f32 %v1954_v38  ;;  %v2110_v6 = vpack.c.bf16 %v4674_v21, %v4673_v44  ;;  %v2111_v30 = vpack.c.bf16 %v4678_v46, %v4677_v0  ;;  %v4680_v38 = vld [vmem:[%s7268_s20 + $0xf8] sm:$0xff] }
 0x8b1   :  { %4026 = vmatpush3.bf16.msra.mxu0 %v2105_v1  ;;  %4261 = vmatprep.mubr.msk.bf16.mxu1 %vm5026_vm4, %v7374_v62  ;;  %v4598_v29 = vpop.eup %4597  ;;  %4611 = vpow2.f32 %v1950_v18  ;;  %v2119_v1 = vpack.c.bf16 %v4676_v15, %v4675_v36 }
 0x8b2   :  { %4027 = vmatprep.subr.bf16.mxu0 %v2114_v45  ;;  %4270 = vmatpush3.bf16.msra.mxu1 %v2121_v2  ;;  %v4600_v59 = vpop.eup %4599  ;;  %v4679_v2 = vld [vmem:[%s7268_s20 + $0xf0] sm:$0xff]  ;;  %v4682_v45 = vld [vmem:[%s7268_s20 + $0x78] sm:$0xff] }
 0x8b3   :  { %4271 = vmatprep.subr.bf16.mxu1 %v7374_v62  ;;  %v2120_v8 = vpack.c.bf16 %v4680_v38, %v4679_v2  ;;  %v2112_v18 = vpack.c.bf16 %v4682_v45, %v4681_v52 }
 0x8b4   :  { %v4602_v56 = vpop.eup %4601 }
 0x8b5   :  { %v4604_v12 = vpop.eup %4603  ;;  %4028 = vmatpush3.bf16.msra.mxu0 %v2106_v13  ;;  %v6430_v11 = vpack.c.bf16 %v4602_v56, %v4596_v25  ;;  %v4530_v25 = vld [vmem:[%s7388_s26 + $0x18] sm:$0xff]  }
 0x8b6   :  { %v4606_v31 = vpop.eup %4605  ;;  %4029 = vmatprep.subr.bf16.mxu0 %v2115_v50  ;;  %v6428_v55 = vpack.c.bf16 %v4604_v12, %v4598_v29  ;;  %4272 = vmatpush3.bf16.msra.mxu1 %v2122_v4 }
 0x8b7   :  { %v1961_v60 = vpack.c.bf16 %v4606_v31, %v4600_v59  ;;  %4273 = vmatprep.subr.bf16.mxu1 %v7374_v62 }
 0x8b8   :  { %2033 = vmatprep.mubr.bf16.mxu0 %v6428_v55 }
 0x8b9   :  { %4030 = vmatpush3.bf16.msra.mxu0 %v2107_v42  ;;  %4262 = vmatmul.mubr.msk.bf16.gmra.mrb[32].mxu1 %vm388_vm2, %v1961_v60  ;;  %v4608_v49 = vpop.eup %4607 }
 0x8ba   :  { %2034 = vmatmul.mubr.bf16.gmra.mrb[40].mxu0 %v6430_v11  ;;  %4031 = vmatprep.subr.bf16.mxu0 %v2116_v47  ;;  %v1963_v33 = vpack.c.bf16 %v4608_v49, %v4608_v49  ;;  %v4610_v20 = vpop.eup %4609 }
 0x8bb   :  { %4265 = vmatprep.mubr.msk.bf16.mxu1 %vm5026_vm4, %v7374_v62  ;;  %4274 = vmatpush3.bf16.msra.mxu1 %v2123_v58  ;;  %v4612_v34 = vpop.eup %4611  ;;  %v1964_v19 = vpack.c.bf16 %v4610_v20, %v4610_v20 }
 0x8bc   :  { %4307 = vmatprep.subr.bf16.mxu1 %v7374_v62  ;;  %2041 = vmatprep.mubr.bf16.mxu0 %v1963_v33  ;;  %v1962_v35 = vpack.c.bf16 %v4612_v34, %v4612_v34 }
 0x8bd   :  { %4032 = vmatpush3.bf16.msra.mxu0 %v2108_v3 }
 0x8be   :  { %4033 = vmatprep.subr.bf16.mxu0 %v2117_v26 }
 0x8c1   :  { %4034 = vmatpush3.bf16.msra.mxu0 %v2109_v57  ;;  %4266 = vmatmul.mubr.msk.bf16.gmra.mrb[36].mxu1 %vm388_vm2, %v1964_v19 }
 0x8c2   :  { %2042 = vmatmul.mubr.bf16.gmra.mrb[44].mxu0 %v1962_v35  ;;  %4035 = vmatprep.subr.bf16.mxu0 %v2118_v14 }
 0x8c3   :  { %2156 = vmatprep.mubr.bf16.mxu0 %v6405_v53  ;;  %4275 = vmatprep.mubr.msk.bf16.mxu1 %vm5026_vm4, %v7374_v62  ;;  %v4528_v53 = vld [vmem:[%s7388_s26 + $0x8] sm:$0xff]  }
 0x8c5   :  { %4036 = vmatpush3.bf16.msra.mxu0 %v2110_v6 }
 0x8c6   :  { %4037 = vmatprep.subr.bf16.mxu0 %v2119_v1 }
 0x8c9   :  { %4038 = vmatpush3.bf16.msra.mxu0 %v2111_v30  ;;  %4276 = vmatmul.mubr.msk.bf16.vlgmr.msra.gmra.mrb[40].mxu1 %vm388_vm2, %v6409_v9  ;;  %v4529_v9 = vld [vmem:[%s7388_s26 + $0x10] sm:$0xff]  }
 0x8ca   :  { %4039 = vmatprep.subr.bf16.mxu0 %v2120_v8  ;;  %4279 = vmatprep.mubr.msk.bf16.mxu1 %vm5026_vm4, %v7374_v62 }
 0x8cd   :  { %4040 = vmatpush3.bf16.msra.mxu0 %v2112_v18 }
 0x8ce   :  { %4287 = vmatprep.subr.bf16.mxu0 %v7374_v62 }
 0x8d0   :  { %2157 = vmatmul.mubr.bf16.vlgmr.msra.gmra.mrb[48].mxu0 %v6401_v40  ;;  %v4527_v40 = vld [vmem:[%s7388_s26] sm:$0xff]  }
 0x8d1   :  { %2164 = vmatprep.mubr.bf16.mxu0 %v6428_v55  ;;  %4280 = vmatmul.mubr.msk.bf16.gmra.mrb[44].mxu1 %vm388_vm2, %v1961_v60 }
 0x8d2   :  { %4283 = vmatprep.mubr.msk.bf16.mxu1 %vm5026_vm4, %v7374_v62  ;;  %4288 = vmatpush3.bf16.msra.mxu0 %v4527_v40 }
 0x8d3   :  { %4289 = vmatprep.subr.bf16.mxu0 %v7374_v62 }
 0x8d6   :  { %4290 = vmatpush3.bf16.msra.mxu0 %v4528_v53 }
 0x8d7   :  { %4291 = vmatprep.subr.bf16.mxu0 %v7374_v62 }
 0x8d8   :  { %2165 = vmatmul.mubr.bf16.gmra.mrb[52].mxu0 %v6430_v11 }
 0x8d9   :  { %2172 = vmatprep.mubr.bf16.mxu0 %v1963_v33  ;;  %4284 = vmatmul.mubr.msk.bf16.gmra.mrb[48].mxu1 %vm388_vm2, %v1964_v19 }
 0x8da   :  { %4315 = vmatprep.mubr.msk.bf16.mxu1 %vm5026_vm4, %v7374_v62  ;;  %4292 = vmatpush3.bf16.msra.mxu0 %v4529_v9 }
 0x8db   :  { %4293 = vmatprep.subr.bf16.mxu0 %v7374_v62 }
 0x8de   :  { %4294 = vmatpush3.bf16.msra.mxu0 %v4530_v25 }
 0x8df   :  { %4327 = vmatprep.subr.bf16.mxu0 %v7374_v62 }
 0x8e0   :  { %2173 = vmatmul.mubr.bf16.gmra.mrb[56].mxu0 %v1962_v35 }
 0x8e1   :  { %4295 = vmatprep.mubr.msk.bf16.mxu0 %vm5026_vm4, %v7374_v62 }
 0x983   :  { %v2083_v41 = vpop.f32.mrb[28].mxu1  ;;  %v4001_v10 = vpop.f32.mrb[36].mxu0 }
 0x984   :  { %v4259_v13 = vpop.f32.mrb[29].mxu1  ;;  %v4002_v29 = vpop.f32.mrb[37].mxu0 }
 0x985   :  { %v4003_v39 = vadd.f32 %v4002_v29, %v4001_v10  ;;  %v2086_v22 = vpop.f32.mrb[30].mxu1  ;;  %v4004_v4 = vpop.f32.mrb[38].mxu0 }
 0x986   :  { %v4260_v48 = vpop.f32.mrb[31].mxu1  ;;  %v4005_v27 = vpop.f32.mrb[39].mxu0 }
 0x987   :  { %v6489_v50 = vadd.f32 %v4003_v39, %v2083_v41  ;;  %v4006_v59 = vadd.f32 %v4005_v27, %v4004_v4 }
 0x989   :  { %v6491_v56 = vadd.f32 %v4006_v59, %v2086_v22 }
 0x98c   :  { %v2091_v12 = vpop.f32.mrb[32].mxu1 }
 0x98d   :  { %v4007_v16 = vpop.f32.mrb[40].mxu0  ;;  %v4263_v51 = vpop.f32.mrb[33].mxu1 }
 0x98e   :  { %v4008_v42 = vpop.f32.mrb[41].mxu0  ;;  %v2094_v31 = vpop.f32.mrb[34].mxu1 }
 0x98f   :  { %v4009_v55 = vadd.f32 %v4008_v42, %v4007_v16  ;;  %v4010_v11 = vpop.f32.mrb[42].mxu0  ;;  %v4264_v61 = vpop.f32.mrb[35].mxu1 }
 0x990   :  { %v4011_v32 = vpop.f32.mrb[43].mxu0 }
 0x991   :  { %v6493_v47 = vadd.f32 %v4009_v55, %v2091_v12  ;;  %v4012_v7 = vadd.f32 %v4011_v32, %v4010_v11 }
 0x993   :  { %v6495_v23 = vadd.f32 %v4012_v7, %v2094_v31 }
 0x994   :  { %v2099_v58 = vpop.f32.mrb[36].mxu1 }
 0x995   :  { %v4013_v60 = vpop.f32.mrb[44].mxu0  ;;  %v4267_v37 = vpop.f32.mrb[37].mxu1 }
 0x996   :  { %v4014_v63 = vpop.f32.mrb[45].mxu0  ;;  %v2102_v3 = vpop.f32.mrb[38].mxu1  ;;  %v3881_v37 = vld [vmem:[#allocation4] ss:$0 sm:$0xff] }
 0x997   :  { %v4015_v49 = vadd.f32 %v4014_v63, %v4013_v60  ;;  %v4016_v17 = vpop.f32.mrb[46].mxu0  ;;  %v4268_v54 = vpop.f32.mrb[39].mxu1 }
 0x998   :  { %v4017_v26 = vpop.f32.mrb[47].mxu0 }
 0x999   :  { %v2100_v33 = vadd.f32 %v4015_v49, %v2099_v58  ;;  %v7390_v49 = vld [vmem:[#allocation68_spill] sm:$0xff] }
 0x99c   :  { %v2214_v20 = vpop.f32.mrb[40].mxu1 }
 0x99d   :  { %v4277_v34 = vpop.f32.mrb[41].mxu1 }
 0x99e   :  { %v2217_v24 = vpop.f32.mrb[42].mxu1 }
 0x99f   :  { %v4278_v28 = vpop.f32.mrb[43].mxu1 }
 0x9a0   :  { %v7391_v28 = vld [vmem:[#allocation67_spill] sm:$0xff] }
 0x9a3   :  { %v4041_v57 = vpop.f32.mrb[48].mxu0 }
 0x9a4   :  { %v4042_v5 = vpop.f32.mrb[49].mxu0  ;;  %v2222_v43 = vpop.f32.mrb[44].mxu1 }
 0x9a5   :  { %v4043_v14 = vadd.f32 %v4042_v5, %v4041_v57  ;;  %v4044_v19 = vpop.f32.mrb[50].mxu0  ;;  %v4281_v35 = vpop.f32.mrb[45].mxu1 }
 0x9a6   :  { %v4045_v44 = vpop.f32.mrb[51].mxu0  ;;  %v2225_v21 = vpop.f32.mrb[46].mxu1 }
 0x9a7   :  { %v2215_v6 = vadd.f32 %v4043_v14, %v2214_v20  ;;  %v4046_v36 = vadd.f32 %v4045_v44, %v4044_v19  ;;  %v4282_v15 = vpop.f32.mrb[47].mxu1  ;;  %v7392_v19 = vld [vmem:[#allocation70_spill] sm:$0xff] }
 0x9a9   :  { %v2236_v1 = vmax.f32 %v2215_v6, 1e-20  ;;  %v2218_v0 = vadd.f32 %v4046_v36, %v2217_v24 }
 0x9ab   :  { %4613 = vrcp.f32 %v2236_v1  ;;  %v2237_v46 = vmax.f32 %v2218_v0, 1e-20  ;;  %v4047_v30 = vpop.f32.mrb[52].mxu0  ;;  %v7393_v1 = vld [vmem:[#allocation69_spill] sm:$0xff] }
 0x9ac   :  { %v4048_v2 = vpop.f32.mrb[53].mxu0  ;;  %v2230_v38 = vpop.f32.mrb[48].mxu1 }
 0x9ad   :  { %4615 = vrcp.f32 %v2237_v46  ;;  %v4049_v8 = vadd.f32 %v4048_v2, %v4047_v30  ;;  %v4050_v52 = vpop.f32.mrb[54].mxu0  ;;  %v4285_v45 = vpop.f32.mrb[49].mxu1 }
 0x9ae   :  { %v4051_v18 = vpop.f32.mrb[55].mxu0  ;;  %v2233_v40 = vpop.f32.mrb[50].mxu1 }
 0x9af   :  { %v2223_v53 = vadd.f32 %v4049_v8, %v2222_v43  ;;  %v4052_v9 = vadd.f32 %v4051_v18, %v4050_v52  ;;  %v4286_v25 = vpop.f32.mrb[51].mxu1 }
 0x9b1   :  { %v2238_v41 = vmax.f32 %v2223_v53, 1e-20  ;;  %v2226_v10 = vadd.f32 %v4052_v9, %v2225_v21 }
 0x9b3   :  { %4617 = vrcp.f32 %v2238_v41  ;;  %v2239_v13 = vmax.f32 %v2226_v10, 1e-20  ;;  %v4053_v29 = vpop.f32.mrb[56].mxu0 }
 0x9b4   :  { %v4054_v39 = vpop.f32.mrb[57].mxu0 }
 0x9b5   :  { %v4614_v22 = vpop.eup %4613  ;;  %4619 = vrcp.f32 %v2239_v13  ;;  %v4055_v4 = vadd.f32 %v4054_v39, %v4053_v29  ;;  %v4056_v48 = vpop.f32.mrb[58].mxu0 }
 0x9b6   :  { %v2242_v27 = vmul.f32 %v4614_v22, %v6489_v50  ;;  %v4057_v59 = vpop.f32.mrb[59].mxu0 }
 0x9b7   :  { %v4616_v12 = vpop.eup %4615  ;;  %v2231_v16 = vadd.f32 %v4055_v4, %v2230_v38 }
 0x9b8   :  { %v2244_v51 = vmul.f32 %v4616_v12, %v6491_v56 }
 0x9b9   :  { %v2240_v42 = vmax.f32 %v2231_v16, 1e-20 }
 0x9ba   :  { %v2259_v31 = vpack.c.bf16 %v2244_v51, %v2242_v27 }
 0x9bb   :  { %4621 = vrcp.f32 %v2240_v42 }
 0x9bc   :  { %4296 = vmatmul.mubr.msk.bf16.vlgmr.msra.gmra.mrb[60].mxu0 %vm892_vm7, %v2259_v31 }
 0x9bd   :  { %v4618_v55 = vpop.eup %4617  ;;  %4299 = vmatprep.mubr.msk.bf16.mxu0 %vm5026_vm4, %v7374_v62 }
 0x9be   :  { %v2246_v11 = vmul.f32 %v4618_v55, %v6493_v47  ;;  %v7389_v47 = vld [vmem:[#allocation66_spill] sm:$0xff] }
 0x9bf   :  { %v4620_v61 = vpop.eup %4619 }
 0x9c0   :  { %v2248_v32 = vmul.f32 %v4620_v61, %v6495_v23 }
 0x9c2   :  { %v2260_v50 = vpack.c.bf16 %v2248_v32, %v2246_v11  ;;  %v4531_v32 = vld [vmem:[%s7394_s14] sm:$0xff]  }
 0x9c3   :  { %4308 = vmatpush3.bf16.msra.mxu1 %v4531_v32 }
 0x9c4   :  { %4300 = vmatmul.mubr.msk.bf16.gmra.mrb[64].mxu0 %vm892_vm7, %v2260_v50  ;;  %v4532_v50 = vld [vmem:[%s7394_s14 + $0x8] sm:$0xff]   ;;  %4309 = vmatprep.subr.bf16.mxu1 %v7374_v62 }
 0x9c5   :  { %v4622_v7 = vpop.eup %4621  ;;  %4303 = vmatprep.mubr.msk.bf16.mxu0 %vm5026_vm4, %v7374_v62 }
 0x9c6   :  { %v2250_v56 = vmul.f32 %v4622_v7, %v2100_v33  ;;  %v4533_v7 = vld [vmem:[%s7394_s14 + $0x10] sm:$0xff]  }
 0x9c7   :  { %4310 = vmatpush3.bf16.msra.mxu1 %v4532_v50 }
 0x9c8   :  { %v2261_v58 = vpack.c.bf16 %v2250_v56, %v2250_v56  ;;  %4311 = vmatprep.subr.bf16.mxu1 %v7374_v62  ;;  %v4534_v56 = vld [vmem:[%s7394_s14 + $0x18] sm:$0xff]  }
 0x9cb   :  { %4312 = vmatpush3.bf16.msra.mxu1 %v4533_v7 }
 0x9cc   :  { %4304 = vmatmul.mubr.msk.bf16.gmra.mrb[68].mxu0 %vm892_vm7, %v2261_v58  ;;  %4313 = vmatprep.subr.bf16.mxu1 %v7374_v62  ;;  %v4535_v58 = vld [vmem:[%s7395_s4] sm:$0xff]  }
 0x9cd   :  { %4343 = vmatprep.mubr.msk.bf16.mxu0 %vm5026_vm4, %v7374_v62  ;;  %4328 = vmatpush3.bf16.msra.mxu0 %v4535_v58 }
 0x9ce   :  { %4329 = vmatprep.subr.bf16.mxu0 %v7374_v62 }
 0x9cf   :  { %4314 = vmatpush3.bf16.msra.mxu1 %v4534_v56 }
 0x9d0   :  { %4355 = vmatprep.subr.bf16.mxu1 %v7374_v62 }
 0xa8f   :  { %v2329_v60 = vpop.f32.mrb[60].mxu0 }
 0xa90   :  { %v2351_v63 = vadd.f32 %v2329_v60, %v7389_v47  ;;  %v4297_v3 = vpop.f32.mrb[61].mxu0  ;;  %v4536_v60 = vld [vmem:[%s7395_s4 + $0x8] sm:$0xff]   ;;  %v4538_v47 = vld [vmem:[%s7395_s4 + $0x18] sm:$0xff]  }
 0xa91   :  { %v2332_v23 = vpop.f32.mrb[62].mxu0  ;;  %4330 = vmatpush3.bf16.msra.mxu0 %v4536_v60  ;;  %v4540_v3 = vld [vmem:[%s7395_s4 + $0x28] sm:$0xff]  }
 0xa92   :  { %v2352_v17 = vadd.f32 %v2332_v23, %v7390_v49  ;;  %v4298_v54 = vpop.f32.mrb[63].mxu0  ;;  %v2363_v26 = vadd.f32 %v3881_v37, %v2351_v63  ;;  %4331 = vmatprep.subr.bf16.mxu0 %v7374_v62  ;;  %v4539_v63 = vld [vmem:[%s7395_s4 + $0x20] sm:$0xff]  }
 0xa94   :  { %v6512_v20 = vadd.f32 %v3881_v37, %v2352_v17  ;;  %v2370_v33 = vsel %vm892_vm7, %v2363_v26, 0.0 }
 0xa95   :  { %2371 = vadd.xlane.f32.xlu0 %v2370_v33 }
 0xa96   :  { %v2373_v34 = vsel %vm892_vm7, %v6512_v20, 0.0 }
 0xa97   :  { %2374 = vadd.xlane.f32.xlu1 %v2373_v34  ;;  %v2337_v24 = vpop.f32.mrb[64].mxu0 }
 0xa98   :  { %v2353_v57 = vadd.f32 %v2337_v24, %v7391_v28  ;;  %v4301_v5 = vpop.f32.mrb[65].mxu0 }
 0xa99   :  { %v2340_v43 = vpop.f32.mrb[66].mxu0 }
 0xa9a   :  { %v6518_v14 = vadd.f32 %v3881_v37, %v2353_v57  ;;  %v2354_v35 = vadd.f32 %v2340_v43, %v7392_v19  ;;  %v4302_v44 = vpop.f32.mrb[67].mxu0 }
 0xa9c   :  { %v2376_v21 = vsel %vm892_vm7, %v6518_v14, 0.0  ;;  %v2366_v6 = vadd.f32 %v3881_v37, %v2354_v35  ;;  %v3882_v35 = vld [vmem:[#allocation6] ss:$0 sm:$0xff] }
 0xa9d   :  { %2377 = vadd.xlane.f32.xlu0 %v2376_v21 }
 0xa9e   :  { %v2379_v36 = vsel %vm892_vm7, %v2366_v6, 0.0 }
 0xa9f   :  { %2380 = vadd.xlane.f32.xlu1 %v2379_v36  ;;  %v2345_v15 = vpop.f32.mrb[68].mxu0 }
 0xaa0   :  { %v2355_v0 = vadd.f32 %v2345_v15, %v7393_v1  ;;  %v4305_v46 = vpop.f32.mrb[69].mxu0 }
 0xaa1   :  { %v2348_v30 = vpop.f32.mrb[70].mxu0 }
 0xaa2   :  { %v6525_v2 = vadd.f32 %v3881_v37, %v2355_v0  ;;  %v4306_v38 = vpop.f32.mrb[71].mxu0  ;;  %v4537_v37 = vld [vmem:[%s7395_s4 + $0x10] sm:$0xff]   ;;  %v3883_v0 = vld [vmem:[#allocation7] ss:$0 sm:$0xff] }
 0xaa3   :  { %4332 = vmatpush3.bf16.msra.mxu0 %v4537_v37 }
 0xaa4   :  { %v2382_v8 = vsel %vm905_vm10, %v6525_v2, 0.0  ;;  %4333 = vmatprep.subr.bf16.mxu0 %v7374_v62 }
 0xaa5   :  { %2383 = vadd.xlane.f32.xlu0 %v2382_v8 }
 0xaa7   :  { %4334 = vmatpush3.bf16.msra.mxu0 %v4538_v47 }
 0xaa8   :  { %4335 = vmatprep.subr.bf16.mxu0 %v7374_v62 }
 0xaab   :  { %4336 = vmatpush3.bf16.msra.mxu0 %v4539_v63 }
 0xaac   :  { %4337 = vmatprep.subr.bf16.mxu0 %v7374_v62 }
 0xaaf   :  { %4338 = vmatpush3.bf16.msra.mxu0 %v4540_v3 }
 0xab0   :  { %4339 = vmatprep.subr.bf16.mxu0 %v7374_v62 }
 0xb22   :  { %v2372_v52 = vpop.xlane.xlu0 %2371 }
 0xb23   :  { %v2385_v45 = vmul.f32 0.015625, %v2372_v52 }
 0xb24   :  { %v2375_v18 = vpop.xlane.xlu1 %2374 }
 0xb25   :  { %v6529_v40 = vsub.f32 %v2363_v26, %v2385_v45  ;;  %v2386_v53 = vmul.f32 0.015625, %v2375_v18 }
 0xb27   :  { %v6532_v9 = vsub.f32 %v6512_v20, %v2386_v53  ;;  %v2395_v25 = vmul.f32 %v6529_v40, %v6529_v40 }
 0xb29   :  { %v2400_v41 = vsel %vm892_vm7, %v2395_v25, 0.0  ;;  %v2396_v10 = vmul.f32 %v6532_v9, %v6532_v9 }
 0xb2a   :  { %v2378_v13 = vpop.xlane.xlu0 %2377  ;;  %2401 = vadd.xlane.f32.xlu1 %v2400_v41 }
 0xb2b   :  { %v2387_v29 = vmul.f32 0.015625, %v2378_v13  ;;  %v2403_v39 = vsel %vm892_vm7, %v2396_v10, 0.0 }
 0xb2c   :  { %v2381_v22 = vpop.xlane.xlu1 %2380  ;;  %2404 = vadd.xlane.f32.xlu0 %v2403_v39 }
 0xb2d   :  { %v6541_v4 = vsub.f32 %v6518_v14, %v2387_v29  ;;  %v2388_v48 = vmul.f32 0.015625, %v2381_v22 }
 0xb2f   :  { %v6543_v27 = vsub.f32 %v2366_v6, %v2388_v48  ;;  %v2397_v59 = vmul.f32 %v6541_v4, %v6541_v4 }
 0xb31   :  { %v2406_v12 = vsel %vm892_vm7, %v2397_v59, 0.0  ;;  %v2398_v16 = vmul.f32 %v6543_v27, %v6543_v27  ;;  %v4542_v59 = vld [vmem:[%s7395_s4 + $0x38] sm:$0xff]  }
 0xb32   :  { %2407 = vadd.xlane.f32.xlu1 %v2406_v12  ;;  %v2384_v51 = vpop.xlane.xlu0 %2383  ;;  %v3884_v12 = vld [vmem:[#allocation9] ss:$0 sm:$0xff] }
 0xb33   :  { %v2389_v42 = vmul.f32 0.015625, %v2384_v51  ;;  %v2409_v31 = vsel %vm892_vm7, %v2398_v16, 0.0 }
 0xb34   :  { %2410 = vadd.xlane.f32.xlu0 %v2409_v31 }
 0xb35   :  { %v6552_v55 = vsub.f32 %v6525_v2, %v2389_v42 }
 0xb37   :  { %v2399_v11 = vmul.f32 %v6552_v55, %v6552_v55 }
 0xb39   :  { %v2412_v61 = vsel %vm905_vm10, %v2399_v11, 0.0 }
 0xb3a   :  { %2413 = vadd.xlane.f32.xlu1 %v2412_v61 }
 0xbb7   :  { %v2402_v23 = vpop.xlane.xlu1 %2401 }
 0xbb8   :  { %v2415_v49 = vmul.f32 0.015625, %v2402_v23 }
 0xbb9   :  { %v2405_v17 = vpop.xlane.xlu0 %2404 }
 0xbba   :  { %v2420_v54 = vadd.f32 1e-05, %v2415_v49  ;;  %v2416_v26 = vmul.f32 0.015625, %v2405_v17 }
 0xbbc   :  { %4623 = vrsqrt.f32 %v2420_v54  ;;  %v2421_v33 = vadd.f32 1e-05, %v2416_v26 }
 0xbbe   :  { %4625 = vrsqrt.f32 %v2421_v33 }
 0xbbf   :  { %v2408_v34 = vpop.xlane.xlu1 %2407 }
 0xbc0   :  { %v2417_v24 = vmul.f32 0.015625, %v2408_v34 }
 0xbc1   :  { %v2411_v28 = vpop.xlane.xlu0 %2410 }
 0xbc2   :  { %v2422_v57 = vadd.f32 1e-05, %v2417_v24  ;;  %v2418_v5 = vmul.f32 0.015625, %v2411_v28  ;;  %v4543_v28 = vld [vmem:[%s7396_s28] sm:$0xff]  }
 0xbc4   :  { %4627 = vrsqrt.f32 %v2422_v57  ;;  %v2423_v43 = vadd.f32 1e-05, %v2418_v5  ;;  %v4544_v57 = vld [vmem:[%s7396_s28 + $0x8] sm:$0xff]   ;;  %v4545_v5 = vld [vmem:[%s7396_s28 + $0x10] sm:$0xff]  }
 0xbc6   :  { %v4624_v19 = vpop.eup %4623  ;;  %4629 = vrsqrt.f32 %v2423_v43  ;;  %v4546_v43 = vld [vmem:[%s7396_s28 + $0x18] sm:$0xff]  }
 0xbc7   :  { %v2430_v44 = vmul.f32 %v4624_v19, %v6529_v40  ;;  %v2414_v21 = vpop.xlane.xlu1 %2413  ;;  %v6606_v19 = vld [vmem:[%s7397_s17] sm:$0xff]  }
 0xbc8   :  { %v4626_v6 = vpop.eup %4625  ;;  %v2419_v36 = vmul.f32 0.015625, %v2414_v21  ;;  %v6620_v21 = vld [vmem:[%s7398_s3] sm:$0xff] }
 0xbc9   :  { %v2441_v15 = vmul.f32 %v3882_v35, %v2430_v44  ;;  %v2431_v1 = vmul.f32 %v4626_v6, %v6532_v9  ;;  %v6613_v44 = vld [vmem:[%s7398_s3 + $0x80] sm:$0xff]  ;;  %7400 = vst [vmem:[#allocation72_spill] sm:$0xff] %v6620_v21  ;;  %v6623_v6 = vld [vmem:[%s7398_s3 + $0x90] sm:$0xff] }
 0xbca   :  { %v2424_v46 = vadd.f32 1e-05, %v2419_v36  ;;  %7399 = vst [vmem:[#allocation107_spill] sm:$0xff] %v6613_v44  ;;  %3025 = vrot.lane.b32.xlu0 %v6613_v44, %s5028_s18  ;;  %7401 = vst [vmem:[#allocation100_spill] sm:$0xff] %v6623_v6  ;;  %v6630_v36 = vld [vmem:[%s7398_s3 + $0x8] sm:$0xff] }
 0xbcb   :  { %v2442_v30 = vmul.f32 %v3882_v35, %v2431_v1  ;;  %v2452_v38 = vadd.f32 %v3883_v0, %v2441_v15  ;;  %v6633_v15 = vld [vmem:[%s7398_s3 + $0x10] sm:$0xff]  ;;  %v6640_v1 = vld [vmem:[%s7398_s3 + $0x98] sm:$0xff] }
 0xbcc   :  { %4631 = vrsqrt.f32 %v2424_v46  ;;  %7402 = vst [vmem:[#allocation73_spill] sm:$0xff] %v6640_v1  ;;  %v6650_v46 = vld [vmem:[%s7398_s3 + $0x18] sm:$0xff] }
 0xbcd   :  { %v2453_v8 = vadd.f32 %v3883_v0, %v2442_v30  ;;  %v6653_v30 = vld [vmem:[%s7398_s3 + $0x20] sm:$0xff] }
 0xbce   :  { %v4628_v52 = vpop.eup %4627  ;;  %3029 = vrot.lane.b32.xlu0 %v6623_v6, %s5028_s18 }
 0xbcf   :  { %v2432_v45 = vmul.f32 %v4628_v52, %v6541_v4  ;;  %v2465_v18 = vpack.c.bf16 %v2453_v8, %v2452_v38  ;;  %v6660_v38 = vld [vmem:[%s7398_s3 + $0xa8] sm:$0xff]  ;;  %v6663_v8 = vld [vmem:[%s7398_s3 + $0xb0] sm:$0xff] }
 0xbd0   :  { %v4630_v53 = vpop.eup %4629  ;;  %v6670_v52 = vld [vmem:[%s7398_s3 + $0x28] sm:$0xff] }
 0xbd1   :  { %v2433_v25 = vmul.f32 %v4630_v53, %v6543_v27  ;;  %4316 = vmatmul.mubr.msk.bf16.vlgmr.msra.gmra.mrb[52].mxu1 %vm892_vm7, %v2465_v18  ;;  %v2443_v40 = vmul.f32 %v3882_v35, %v2432_v45  ;;  %v4541_v27 = vld [vmem:[%s7395_s4 + $0x30] sm:$0xff]   ;;  %v6680_v18 = vld [vmem:[%s7398_s3 + $0xb8] sm:$0xff]  ;;  %v6683_v53 = vld [vmem:[%s7398_s3 + $0xc0] sm:$0xff] }
 0xbd2   :  { %4319 = vmatprep.mubr.msk.bf16.mxu1 %vm5026_vm4, %v7374_v62  ;;  %4340 = vmatpush3.bf16.msra.mxu0 %v4541_v27  ;;  %v6673_v45 = vld [vmem:[%s7398_s3 + $0x30] sm:$0xff] }
 0xbd3   :  { %v2444_v9 = vmul.f32 %v3882_v35, %v2433_v25  ;;  %v2454_v41 = vadd.f32 %v3883_v0, %v2443_v40  ;;  %4341 = vmatprep.subr.bf16.mxu0 %v7374_v62  ;;  %4356 = vmatpush3.bf16.msra.mxu1 %v4543_v28  ;;  %v6690_v25 = vld [vmem:[%s7398_s3 + $0x38] sm:$0xff]  ;;  %v6693_v40 = vld [vmem:[%s7398_s3 + $0x40] sm:$0xff]  ;;  %v6743_v27 = vld [vmem:[%s7398_s3 + $0xf0] sm:$0xff] }
 0xbd4   :  { %4357 = vmatprep.subr.bf16.mxu1 %v7374_v62  ;;  %2997 = vrot.lane.b32.xlu0 %v6633_v15, %s5028_s18  ;;  %7403 = vst [vmem:[#allocation76_spill] sm:$0xff] %v6693_v40  ;;  %7412 = vst [vmem:[#allocation84_spill] sm:$0xff] %v6743_v27  ;;  %v4548_v28 = vld [vmem:[%s7397_s17 + $0x8] sm:$0xff]  }
 0xbd5   :  { %v2455_v10 = vadd.f32 %v3883_v0, %v2444_v9  ;;  %v6700_v9 = vld [vmem:[%s7398_s3 + $0xc8] sm:$0xff] }
 0xbd6   :  { %v4632_v13 = vpop.eup %4631  ;;  %4342 = vmatpush3.bf16.msra.mxu0 %v4542_v59  ;;  %v6750_v59 = vld [vmem:[%s7398_s3 + $0x68] sm:$0xff] }
 0xbd7   :  { %v2466_v29 = vpack.c.bf16 %v2455_v10, %v2454_v41  ;;  %v2434_v39 = vmul.f32 %v4632_v13, %v6552_v55  ;;  %4358 = vmatpush3.bf16.msra.mxu1 %v4544_v57  ;;  %v6703_v41 = vld [vmem:[%s7398_s3 + $0xd0] sm:$0xff]  ;;  %v6710_v10 = vld [vmem:[%s7398_s3 + $0x48] sm:$0xff]  ;;  %7413 = vst [vmem:[#allocation105_spill] sm:$0xff] %v6750_v59  ;;  %v7420_v57 = vld [vmem:[#allocation63_spill] sm:$0xff] }
 0xbd8   :  { %4359 = vmatprep.subr.bf16.mxu1 %v7374_v62  ;;  %7404 = vst [vmem:[#allocation103_spill] sm:$0xff] %v6703_v41  ;;  %7405 = vst [vmem:[#allocation71_spill] sm:$0xff] %v6710_v10  ;;  %v6713_v13 = vld [vmem:[%s7398_s3 + $0x50] sm:$0xff] }
 0xbd9   :  { %4320 = vmatmul.mubr.msk.bf16.gmra.mrb[56].mxu1 %vm892_vm7, %v2466_v29  ;;  %v2445_v22 = vmul.f32 %v3882_v35, %v2434_v39  ;;  %v6610_v35 = vld [vmem:[%s7398_s3 + $0x88] sm:$0xff]  ;;  %7406 = vst [vmem:[#allocation74_spill] sm:$0xff] %v6713_v13  ;;  %v6720_v29 = vld [vmem:[%s7398_s3 + $0xd8] sm:$0xff]  ;;  %v6723_v39 = vld [vmem:[%s7398_s3 + $0xe0] sm:$0xff] }
 0xbda   :  { %4323 = vmatprep.mubr.msk.bf16.mxu1 %vm5026_vm4, %v7374_v62  ;;  %3027 = vrot.lane.b32.xlu1 %v6610_v35, %s5028_s18  ;;  %7407 = vst [vmem:[#allocation77_spill] sm:$0xff] %v6720_v29  ;;  %7408 = vst [vmem:[#allocation80_spill] sm:$0xff] %v6723_v39 }
 0xbdb   :  { %v2456_v4 = vadd.f32 %v3883_v0, %v2445_v22  ;;  %4360 = vmatpush3.bf16.msra.mxu1 %v4545_v5  ;;  %v6643_v0 = vld [vmem:[%s7398_s3 + $0xa0] sm:$0xff]  ;;  %v6730_v22 = vld [vmem:[%s7398_s3 + $0x58] sm:$0xff] }
 0xbdc   :  { %4361 = vmatprep.subr.bf16.mxu1 %v7374_v62  ;;  %3033 = vrot.lane.b32.xlu0 %v6643_v0, %s5028_s18  ;;  %7409 = vst [vmem:[#allocation75_spill] sm:$0xff] %v6730_v22 }
 0xbdd   :  { %v2467_v48 = vpack.c.bf16 %v2456_v4, %v2456_v4  ;;  %v6733_v4 = vld [vmem:[%s7398_s3 + $0x60] sm:$0xff] }
 0xbde   :  { %2993 = vrot.lane.b32.xlu1 %v6620_v21, %s5028_s18  ;;  %7410 = vst [vmem:[#allocation81_spill] sm:$0xff] %v6733_v4 }
 0xbdf   :  { %4362 = vmatpush3.bf16.msra.mxu1 %v4546_v43  ;;  %v4549_v43 = vld [vmem:[%s7397_s17 + $0x10] sm:$0xff]  }
 0xbe0   :  { %4367 = vmatprep.subr.bf16.mxu1 %v6606_v19  ;;  %3001 = vrot.lane.b32.xlu0 %v6653_v30, %s5028_s18 }
 0xbe1   :  { %4324 = vmatmul.mubr.msk.bf16.gmra.mrb[60].mxu1 %vm892_vm7, %v2467_v48  ;;  %v6740_v48 = vld [vmem:[%s7398_s3 + $0xe8] sm:$0xff] }
 0xbe2   :  { %4363 = vmatprep.mubr.msk.bf16.mxu1 %vm5026_vm4, %v7374_v62  ;;  %2995 = vrot.lane.b32.xlu1 %v6630_v36, %s5028_s18  ;;  %7411 = vst [vmem:[#allocation78_spill] sm:$0xff] %v6740_v48 }
 0xbe4   :  { %3037 = vrot.lane.b32.xlu0 %v6663_v8, %s5028_s18 }
 0xbe6   :  { %3031 = vrot.lane.b32.xlu1 %v6640_v1, %s5028_s18 }
 0xbe8   :  { %3005 = vrot.lane.b32.xlu0 %v6673_v45, %s5028_s18 }
 0xbea   :  { %2999 = vrot.lane.b32.xlu1 %v6650_v46, %s5028_s18 }
 0xbec   :  { %3041 = vrot.lane.b32.xlu0 %v6683_v53, %s5028_s18 }
 0xbee   :  { %3035 = vrot.lane.b32.xlu1 %v6660_v38, %s5028_s18 }
 0xbf0   :  { %3009 = vrot.lane.b32.xlu0 %v6693_v40, %s5028_s18 }
 0xbf2   :  { %3003 = vrot.lane.b32.xlu1 %v6670_v52, %s5028_s18 }
 0xbf4   :  { %3045 = vrot.lane.b32.xlu0 %v6703_v41, %s5028_s18 }
 0xbf6   :  { %3039 = vrot.lane.b32.xlu1 %v6680_v18, %s5028_s18 }
 0xbf8   :  { %3013 = vrot.lane.b32.xlu0 %v6713_v13, %s5028_s18 }
 0xbfa   :  { %3007 = vrot.lane.b32.xlu1 %v6690_v25, %s5028_s18 }
 0xbfc   :  { %3049 = vrot.lane.b32.xlu0 %v6723_v39, %s5028_s18 }
 0xbfe   :  { %3043 = vrot.lane.b32.xlu1 %v6700_v9, %s5028_s18 }
 0xc00   :  { %3017 = vrot.lane.b32.xlu0 %v6733_v4, %s5028_s18 }
 0xc02   :  { %3011 = vrot.lane.b32.xlu1 %v6710_v10, %s5028_s18 }
 0xc04   :  { %3053 = vrot.lane.b32.xlu0 %v6743_v27, %s5028_s18 }
 0xc06   :  { %3047 = vrot.lane.b32.xlu1 %v6720_v29, %s5028_s18 }
 0xc0a   :  { %3015 = vrot.lane.b32.xlu1 %v6730_v22, %s5028_s18 }
 0xc0e   :  { %3051 = vrot.lane.b32.xlu1 %v6740_v48, %s5028_s18  ;;  %v3907_v48 = vld [vmem:[#allocation13] ss:$0 sm:$0xff] }
 0xc12   :  { %3019 = vrot.lane.b32.xlu1 %v6750_v59, %s5028_s18 }
 0xca4   :  { %v2542_v16 = vpop.f32.mrb[52].mxu1 }
 0xca5   :  { %v2543_v51 = vadd.f32 %v3884_v12, %v2542_v16  ;;  %v4317_v42 = vpop.f32.mrb[53].mxu1  ;;  %v6760_v16 = vld [vmem:[%s7398_s3 + $0xf8] sm:$0xff] }
 0xca6   :  { %v2545_v31 = vpop.f32.mrb[54].mxu1  ;;  %7415 = vst [vmem:[#allocation88_spill] sm:$0xff] %v6760_v16  ;;  %3055 = vrot.lane.b32.xlu1 %v6760_v16, %s5028_s18 }
 0xca7   :  { %v2546_v55 = vadd.f32 %v3884_v12, %v2545_v31  ;;  %v4318_v11 = vpop.f32.mrb[55].mxu1  ;;  %v2564_v61 = vmax.f32 %v2543_v51, 0.0  ;;  %v6765_v51 = vld [vmem:[%s7398_s3 + $0x78] sm:$0xff] }
 0xca8   :  { %7416 = vst [vmem:[#allocation79_spill] sm:$0xff] %v6765_v51 }
 0xca9   :  { %v2565_v32 = vmax.f32 %v2546_v55, 0.0 }
 0xcaa   :  { %3023 = vrot.lane.b32.xlu1 %v6765_v51, %s5028_s18 }
 0xcab   :  { %v2585_v50 = vpack.c.bf16 %v2565_v32, %v2564_v61  ;;  %v3900_v32 = vld [vmem:[#allocation10] ss:$0 sm:$0xff] }
 0xcac   :  { %v2550_v7 = vpop.f32.mrb[56].mxu1 }
 0xcad   :  { %v2551_v56 = vadd.f32 %v3884_v12, %v2550_v7  ;;  %v4321_v58 = vpop.f32.mrb[57].mxu1  ;;  %4344 = vmatmul.mubr.bf16.vlgmr.msra.gmra.mrb[72].mxu0 %v2585_v50 }
 0xcae   :  { %v2553_v60 = vpop.f32.mrb[58].mxu1  ;;  %4347 = vmatprep.mubr.msk.bf16.mxu0 %vm5026_vm4, %v7374_v62 }
 0xcaf   :  { %v2554_v37 = vadd.f32 %v3884_v12, %v2553_v60  ;;  %v4322_v47 = vpop.f32.mrb[59].mxu1  ;;  %v2566_v63 = vmax.f32 %v2551_v56, 0.0 }
 0xcb1   :  { %v2567_v3 = vmax.f32 %v2554_v37, 0.0 }
 0xcb3   :  { %v2586_v23 = vpack.c.bf16 %v2567_v3, %v2566_v63 }
 0xcb4   :  { %v2558_v49 = vpop.f32.mrb[60].mxu1 }
 0xcb5   :  { %v2559_v17 = vadd.f32 %v3884_v12, %v2558_v49  ;;  %v4325_v54 = vpop.f32.mrb[61].mxu1  ;;  %4348 = vmatmul.mubr.bf16.gmra.mrb[76].mxu0 %v2586_v23  ;;  %v6753_v12 = vld [vmem:[%s7398_s3 + $0x70] sm:$0xff] }
 0xcb6   :  { %v2561_v26 = vpop.f32.mrb[62].mxu1  ;;  %4351 = vmatprep.mubr.msk.bf16.mxu0 %vm5026_vm4, %v7374_v62  ;;  %7414 = vst [vmem:[#allocation85_spill] sm:$0xff] %v6753_v12  ;;  %3021 = vrot.lane.b32.xlu0 %v6753_v12, %s5028_s18 }
 0xcb7   :  { %v2568_v33 = vmax.f32 %v2559_v17, 0.0  ;;  %v4326_v34 = vpop.f32.mrb[63].mxu1 }
 0xcb9   :  { %v2587_v24 = vpack.c.bf16 %v2568_v33, %v2568_v33 }
 0xcbd   :  { %4352 = vmatmul.mubr.bf16.gmra.mrb[80].mxu0 %v2587_v24 }
 0xd80   :  { %v2670_v42 = vpop.f32.mrb[72].mxu0 }
 0xd81   :  { %v4345_v31 = vpop.f32.mrb[73].mxu0  ;;  %v4550_v42 = vld [vmem:[%s7397_s17 + $0x18] sm:$0xff]  }
 0xd82   :  { %v2672_v55 = vpop.f32.mrb[74].mxu0  ;;  %v7422_v31 = vld [vmem:[#allocation64_spill] sm:$0xff] }
 0xd83   :  { %v4346_v11 = vpop.f32.mrb[75].mxu0  ;;  %v2690_v61 = vadd.f32 %v2672_v55, %v6512_v20  ;;  %v7423_v55 = vld [vmem:[#allocation62_spill] sm:$0xff] }
 0xd84   :  { %v7424_v11 = vpack.c.bf16 %v7422_v31, %v7423_v55 }
 0xd85   :  { %v2700_v7 = vadd.f32 %v3900_v32, %v2690_v61  ;;  %v6794_v61 = vpop.permute.xlu1 %3027 }
 0xd87   :  { %v2705_v63 = vrot.slane %v2700_v7, 5 }
 0xd88   :  { %v2677_v50 = vpop.f32.mrb[76].mxu0 }
 0xd89   :  { %v2691_v56 = vadd.f32 %v2677_v50, %v6518_v14  ;;  %v4349_v58 = vpop.f32.mrb[77].mxu0 }
 0xd8a   :  { %v2680_v60 = vpop.f32.mrb[78].mxu0 }
 0xd8b   :  { %v2701_v37 = vadd.f32 %v3900_v32, %v2691_v56  ;;  %v4350_v47 = vpop.f32.mrb[79].mxu0 }
 0xd8d   :  { %v2706_v3 = vrot.slane %v2701_v37, 5 }
 0xd8f   :  { %v2707_v23 = vsel %vm622_vm0, %v2705_v63, %v2706_v3 }
 0xd90   :  { %v2684_v49 = vpop.f32.mrb[80].mxu0 }
 0xd91   :  { %v2692_v17 = vadd.f32 %v2684_v49, %v6525_v2  ;;  %v4353_v20 = vpop.f32.mrb[81].mxu0  ;;  %v7419_v2 = vld [vmem:[#allocation65_spill] sm:$0xff] }
 0xd92   :  { %v2687_v54 = vpop.f32.mrb[82].mxu0  ;;  %v7421_v5 = vpack.c.bf16 %v7419_v2, %v7420_v57 }
 0xd93   :  { %v2702_v26 = vadd.f32 %v3900_v32, %v2692_v17  ;;  %v4354_v33 = vpop.f32.mrb[83].mxu0  ;;  %v6798_v32 = vpop.permute.xlu0 %3025 }
 0xd95   :  { %v6773_v34 = vrot.slane %v2702_v26, 2 }
 0xd97   :  { %7417 = vst [vmem:[#allocation82_spill] sm:$0xff] %v6773_v34  ;;  %v6777_v14 = vsel %vm1262_vm12, %v2707_v23, %v6773_v34  ;;  %v3030_v7 = vpop.permute.xlu0 %3029 }
 0xd98   :  { %7418 = vst [vmem:[#allocation89_spill] sm:$0xff] %v6777_v14  ;;  %v2721_v24 = vpack.c.bf16 %v6773_v34, %v6777_v14 }
 0xd9a   :  { %4364 = vmatmul.mubr.msk.bf16.vlgmr.msra.gmra.mrb[64].mxu1 %vm892_vm7, %v2721_v24 }
 0xd9b   :  { %4368 = vmatpush3.bf16.msra.mxu1 %v6606_v19  ;;  %4375 = vmatprep.mubr.msk.bf16.mxu1 %vm892_vm7, %v7421_v5  ;;  %v6796_v19 = vpop.permute.xlu1 %2993  ;;  %v6802_v58 = vpop.permute.xlu0 %2997 }
 0xd9c   :  { %4369 = vmatprep.subr.bf16.mxu1 %v4548_v28 }
 0xd9f   :  { %4370 = vmatpush3.bf16.msra.mxu1 %v4548_v28  ;;  %v6800_v50 = vpop.permute.xlu1 %2995  ;;  %v6806_v37 = vpop.permute.xlu0 %3033 }
 0xda0   :  { %4371 = vmatprep.subr.bf16.mxu1 %v4549_v43 }
 0xda3   :  { %4372 = vmatpush3.bf16.msra.mxu1 %v4549_v43  ;;  %v3032_v56 = vpop.permute.xlu1 %3031  ;;  %v6810_v63 = vpop.permute.xlu0 %3001 }
 0xda4   :  { %4373 = vmatprep.subr.bf16.mxu1 %v4550_v42 }
 0xda7   :  { %4374 = vmatpush3.bf16.msra.mxu1 %v4550_v42  ;;  %v6804_v60 = vpop.permute.xlu1 %2999  ;;  %v3038_v23 = vpop.permute.xlu0 %3037  ;;  %v3901_v42 = vld [vmem:[#allocation12] ss:$0 sm:$0xff] }
 0xdaa   :  { %4376 = vmatmul.mubr.msk.bf16.vlgmr.msra.gmra.mrb[68].mxu1 %vm892_vm7, %v7424_v11 }
 0xdab   :  { %v6808_v47 = vpop.permute.xlu1 %3035  ;;  %v3006_v17 = vpop.permute.xlu0 %3005 }
 0xdaf   :  { %v6812_v3 = vpop.permute.xlu1 %3003  ;;  %v6814_v54 = vpop.permute.xlu0 %3041 }
 0xdb3   :  { %v3040_v49 = vpop.permute.xlu1 %3039  ;;  %v6818_v33 = vpop.permute.xlu0 %3009 }
 0xdb7   :  { %v3008_v20 = vpop.permute.xlu1 %3007  ;;  %v3046_v28 = vpop.permute.xlu0 %3045 }
 0xdbb   :  { %v6816_v26 = vpop.permute.xlu1 %3043  ;;  %v6822_v57 = vpop.permute.xlu0 %3013 }
 0xdbf   :  { %v6820_v24 = vpop.permute.xlu1 %3011  ;;  %v6826_v43 = vpop.permute.xlu0 %3049 }
 0xdc3   :  { %v3048_v2 = vpop.permute.xlu1 %3047  ;;  %v6830_v12 = vpop.permute.xlu0 %3017 }
 0xdc7   :  { %v6824_v5 = vpop.permute.xlu1 %3015  ;;  %v6838_v59 = vpop.permute.xlu0 %3053 }
 0xdc8   :  { %7426 = vst [vmem:[#allocation86_spill] sm:$0xff] %v6838_v59 }
 0xdcb   :  { %v6828_v55 = vpop.permute.xlu1 %3051 }
 0xdcf   :  { %v6834_v27 = vpop.permute.xlu1 %3019 }
 0xdd3   :  { %v6840_v4 = vpop.permute.xlu1 %3055 }
 0xdd4   :  { %7427 = vst [vmem:[#allocation92_spill] sm:$0xff] %v6840_v4 }
 0xe6d   :  { %v2790_v31 = vpop.f32.mrb[64].mxu1 }
 0xe6e   :  { %v4365_v11 = vpop.f32.mrb[65].mxu1  ;;  %v2791_v14 = vadd.f32 %v3901_v42, %v2790_v31 }
 0xe6f   :  { %v2793_v34 = vpop.f32.mrb[66].mxu1  ;;  %v3022_v11 = vpop.permute.xlu0 %3021 }
 0xe70   :  { %v2794_v62 = vadd.f32 %v3901_v42, %v2793_v34  ;;  %v4366_v51 = vpop.f32.mrb[67].mxu1 }
 0xe72   :  { %v6832_v16 = vpack.c.bf16 %v2794_v62, %v2791_v14  ;;  %v3024_v62 = vpop.permute.xlu1 %3023 }
 0xe74   :  { %7425 = vst [vmem:[#allocation83_spill] sm:$0xff] %v6832_v16  ;;  %4117 = vmatprep.mubr.msk.bf16.mxu0 %vm892_vm7, %v6832_v16 }
 0xe7d   :  { %v4377_v39 = vpop.f32.mrb[68].mxu1 }
 0xe7e   :  { %v6842_v22 = vadd.f32 %v4377_v39, %v3907_v48  ;;  %v2878_v34 = vpop.f32.mrb[69].mxu1 }
 0xe7f   :  { %v6844_v51 = vadd.f32 %v3907_v48, %v2878_v34  ;;  %v4378_v42 = vpop.f32.mrb[70].mxu1 }
 0xe80   :  { %v6847_v14 = vmul.f32 %v3022_v11, %v6842_v22  ;;  %v6849_v31 = vadd.f32 %v4378_v42, %v3907_v48  ;;  %v2881_v16 = vpop.f32.mrb[71].mxu1  ;;  %v3111_v59 = vmul.f32 %v3038_v23, %v6842_v22  ;;  %v3107_v4 = vmul.f32 %v3030_v7, %v6842_v22 }
 0xe81   :  { %v6853_v13 = vadd.f32 %v3907_v48, %v2881_v16  ;;  %v2945_v39 = vmul.f32 %v6613_v44, %v6844_v51  ;;  %v2929_v34 = vmul.f32 %v6620_v21, %v6844_v51  ;;  %v2947_v29 = vmul.f32 %v6623_v6, %v6842_v22 }
 0xe82   :  { %v6862_v11 = vmul.f32 %v3024_v62, %v6849_v31  ;;  %v3112_v42 = vmul.f32 %v3040_v49, %v6849_v31  ;;  %v3108_v23 = vmul.f32 %v3032_v56, %v6849_v31  ;;  %v2948_v48 = vmul.f32 %v6640_v1, %v6849_v31 }
 0xe83   :  { %v2946_v16 = vmul.f32 %v6610_v35, %v6853_v13  ;;  %v2930_v7 = vmul.f32 %v6630_v36, %v6853_v13  ;;  %v3115_v21 = vmul.f32 %v3046_v28, %v6842_v22  ;;  %v3116_v6 = vmul.f32 %v3048_v2, %v6849_v31 }
 0xe84   :  { %v3273_v44 = vpack.c.bf16 %v3112_v42, %v3111_v59  ;;  %v3271_v49 = vpack.c.bf16 %v3108_v23, %v3107_v4  ;;  %v3131_v41 = vpack.c.bf16 %v2948_v48, %v2947_v29  ;;  %v3091_v1 = vmul.f32 %v6802_v58, %v6842_v22 }
 0xe85   :  { %v3130_v56 = vpack.c.bf16 %v2946_v16, %v2945_v39  ;;  %v3122_v10 = vpack.c.bf16 %v2930_v7, %v2929_v34  ;;  %v3275_v40 = vpack.c.bf16 %v3116_v6, %v3115_v21  ;;  %v3092_v28 = vmul.f32 %v6804_v60, %v6849_v31 }
 0xe86   :  { %3316 = vrot.lane.b32.xlu0 %v3273_v44, %s5028_s18  ;;  %3312 = vrot.lane.b32.xlu1 %v3271_v49, %s5028_s18  ;;  %v3095_v2 = vmul.f32 %v3006_v17, %v6842_v22  ;;  %v3096_v62 = vmul.f32 %v3008_v20, %v6849_v31  ;;  %v3105_v21 = vmul.f32 %v6798_v32, %v6844_v51 }
 0xe87   :  { %4428 = vmatprep.subr.msk.bf16.mxu0 %vm892_vm7, %v3130_v56  ;;  %v3142_v29 = vsel %vm892_vm7, %v3122_v10, 0  ;;  %v3106_v6 = vmul.f32 %v6794_v61, %v6853_v13  ;;  %v2931_v44 = vmul.f32 %v6633_v15, %v6842_v22  ;;  %v3263_v4 = vpack.c.bf16 %v3092_v28, %v3091_v1 }
 0xe88   :  { %4102 = vmatpush3.bf16.xpose.msra.mxu0 %v3142_v29  ;;  %v3265_v59 = vpack.c.bf16 %v3096_v62, %v3095_v2  ;;  %v2932_v58 = vmul.f32 %v6650_v46, %v6849_v31  ;;  %v2949_v60 = vmul.f32 %v6643_v0, %v6844_v51  ;;  %v2950_v32 = vmul.f32 %v6660_v38, %v6853_v13 }
 0xe89   :  { %4429 = vmatprep.subr.msk.bf16.mxu0 %vm892_vm7, %v3131_v41  ;;  %v3270_v10 = vpack.c.bf16 %v3106_v6, %v3105_v21  ;;  %v3099_v61 = vmul.f32 %v6822_v57, %v6842_v22  ;;  %v3100_v17 = vmul.f32 %v6824_v5, %v6849_v31  ;;  %v3089_v20 = vmul.f32 %v6796_v19, %v6844_v51 }
 0xe8a   :  { %3320 = vrot.lane.b32.xlu0 %v3275_v40, %s5028_s18  ;;  %3296 = vrot.lane.b32.xlu1 %v3263_v4, %s5028_s18  ;;  %v3123_v1 = vpack.c.bf16 %v2932_v58, %v2931_v44  ;;  %v3090_v41 = vmul.f32 %v6800_v50, %v6853_v13  ;;  %v3132_v39 = vpack.c.bf16 %v2950_v32, %v2949_v60  ;;  %v7429_v58 = vld [vmem:[#allocation71_spill] sm:$0xff] }
 0xe8b   :  { %v3267_v34 = vpack.c.bf16 %v3100_v17, %v3099_v61  ;;  %v3093_v42 = vmul.f32 %v6810_v63, %v6844_v51  ;;  %v3094_v57 = vmul.f32 %v6812_v3, %v6853_v13  ;;  %v3109_v40 = vmul.f32 %v6806_v37, %v6844_v51  ;;  %v7431_v61 = vld [vmem:[#allocation77_spill] sm:$0xff] }
 0xe8c   :  { %v3262_v5 = vpack.c.bf16 %v3090_v41, %v3089_v20  ;;  %v3110_v23 = vmul.f32 %v6808_v47, %v6853_v13  ;;  %v2933_v19 = vmul.f32 %v6653_v30, %v6844_v51  ;;  %v2934_v50 = vmul.f32 %v6670_v52, %v6853_v13  ;;  %v7432_v20 = vld [vmem:[#allocation74_spill] sm:$0xff] }
 0xe8d   :  { %v3264_v48 = vpack.c.bf16 %v3094_v57, %v3093_v42  ;;  %v2951_v63 = vmul.f32 %v6663_v8, %v6842_v22  ;;  %v3145_v3 = vsel %vm892_vm7, %v3123_v1, 0  ;;  %v2952_v47 = vmul.f32 %v6680_v18, %v6849_v31  ;;  %v7434_v42 = vld [vmem:[#allocation80_spill] sm:$0xff] }
 0xe8e   :  { %3300 = vrot.lane.b32.xlu1 %v3265_v59, %s5028_s18  ;;  %3310 = vrot.lane.b32.xlu0 %v3270_v10, %s5028_s18  ;;  %v3272_v37 = vpack.c.bf16 %v3110_v23, %v3109_v40  ;;  %v3097_v16 = vmul.f32 %v6818_v33, %v6844_v51  ;;  %v3124_v7 = vpack.c.bf16 %v2934_v50, %v2933_v19  ;;  %v7430_v10 = vld [vmem:[#allocation103_spill] sm:$0xff]  ;;  %v7435_v23 = vld [vmem:[#allocation78_spill] sm:$0xff] }
 0xe8f   :  { %v3098_v62 = vmul.f32 %v6820_v24, %v6853_v13  ;;  %v3113_v49 = vmul.f32 %v6814_v54, %v6844_v51  ;;  %v3114_v56 = vmul.f32 %v6816_v26, %v6853_v13  ;;  %v3133_v28 = vpack.c.bf16 %v2952_v47, %v2951_v63 }
 0xe90   :  { %4104 = vmatpush3.bf16.xpose.msra.mxu0 %v3145_v3  ;;  %v3101_v2 = vmul.f32 %v6830_v12, %v6844_v51  ;;  %v3102_v29 = vmul.f32 %v6834_v27, %v6853_v13  ;;  %v3117_v24 = vmul.f32 %v6826_v43, %v6844_v51  ;;  %v3118_v54 = vmul.f32 %v6828_v55, %v6853_v13  ;;  %v7428_v55 = vld [vmem:[#allocation76_spill] sm:$0xff]  ;;  %v7436_v3 = vld [vmem:[#allocation81_spill] sm:$0xff] }
 0xe91   :  { %4430 = vmatprep.subr.msk.bf16.mxu0 %vm892_vm7, %v3132_v39  ;;  %v3266_v33 = vpack.c.bf16 %v3098_v62, %v3097_v16  ;;  %v3274_v21 = vpack.c.bf16 %v3114_v56, %v3113_v49  ;;  %v2935_v12 = vmul.f32 %v6673_v45, %v6842_v22  ;;  %v2936_v27 = vmul.f32 %v6690_v25, %v6849_v31  ;;  %v7433_v39 = vld [vmem:[#allocation75_spill] sm:$0xff]  ;;  %v7437_v16 = vld [vmem:[#allocation105_spill] sm:$0xff] }
 0xe92   :  { %3304 = vrot.lane.b32.xlu1 %v3267_v34, %s5028_s18  ;;  %3294 = vrot.lane.b32.xlu0 %v3262_v5, %s5028_s18  ;;  %v3268_v26 = vpack.c.bf16 %v3102_v29, %v3101_v2  ;;  %v3276_v6 = vpack.c.bf16 %v3118_v54, %v3117_v24  ;;  %v2953_v44 = vmul.f32 %v6683_v53, %v6844_v51  ;;  %v3148_v50 = vsel %vm892_vm7, %v3124_v7, 0  ;;  %v7440_v7 = vld [vmem:[#allocation85_spill] sm:$0xff]  ;;  %v7441_v54 = vld [vmem:[#allocation79_spill] sm:$0xff] }
 0xe93   :  { %v2954_v43 = vmul.f32 %v6700_v9, %v6853_v13  ;;  %v2937_v4 = vmul.f32 %v7428_v55, %v6844_v51  ;;  %v3125_v59 = vpack.c.bf16 %v2936_v27, %v2935_v12  ;;  %v2938_v60 = vmul.f32 %v7429_v58, %v6853_v13  ;;  %v7442_v12 = vld [vmem:[#allocation86_spill] sm:$0xff] }
 0xe94   :  { %v2955_v32 = vmul.f32 %v7430_v10, %v6842_v22  ;;  %v2956_v17 = vmul.f32 %v7431_v61, %v6849_v31  ;;  %v2939_v41 = vmul.f32 %v7432_v20, %v6842_v22  ;;  %v2940_v34 = vmul.f32 %v7433_v39, %v6849_v31 }
 0xe95   :  { %v3134_v1 = vpack.c.bf16 %v2954_v43, %v2953_v44  ;;  %v2957_v57 = vmul.f32 %v7434_v42, %v6844_v51  ;;  %v3126_v5 = vpack.c.bf16 %v2938_v60, %v2937_v4  ;;  %v2958_v19 = vmul.f32 %v7435_v23, %v6853_v13  ;;  %v7443_v44 = vld [vmem:[#allocation92_spill] sm:$0xff] }
 0xe96   :  { %3298 = vrot.lane.b32.xlu1 %v3264_v48, %s5028_s18  ;;  %3314 = vrot.lane.b32.xlu0 %v3272_v37, %s5028_s18  ;;  %v3135_v40 = vpack.c.bf16 %v2956_v17, %v2955_v32  ;;  %v3127_v63 = vpack.c.bf16 %v2940_v34, %v2939_v41  ;;  %v2941_v47 = vmul.f32 %v7436_v3, %v6844_v51  ;;  %v7438_v48 = vld [vmem:[#allocation84_spill] sm:$0xff] }
 0xe97   :  { %v2942_v62 = vmul.f32 %v7437_v16, %v6853_v13  ;;  %v3136_v49 = vpack.c.bf16 %v2958_v19, %v2957_v57  ;;  %v2959_v56 = vmul.f32 %v7438_v48, %v6842_v22  ;;  %v7439_v37 = vld [vmem:[#allocation88_spill] sm:$0xff]  ;;  %v2943_v24 = vmul.f32 %v7440_v7, %v6842_v22 }
 0xe98   :  { %4106 = vmatpush3.bf16.xpose.msra.mxu0 %v3148_v50  ;;  %v2960_v2 = vmul.f32 %v7439_v37, %v6849_v31  ;;  %v2944_v51 = vmul.f32 %v7441_v54, %v6849_v31  ;;  %v6991_v27 = vmul.f32 %v7442_v12, %v6842_v22  ;;  %v6995_v43 = vmul.f32 %v7443_v44, %v6849_v31 }
 0xe99   :  { %4431 = vmatprep.subr.msk.bf16.mxu0 %vm892_vm7, %v3133_v28  ;;  %v3128_v29 = vpack.c.bf16 %v2942_v62, %v2941_v47  ;;  %v3154_v22 = vsel %vm892_vm7, %v3126_v5, 0  ;;  %v3157_v31 = vsel %vm892_vm7, %v3127_v63, 0 }
 0xe9a   :  { %3302 = vrot.lane.b32.xlu1 %v3266_v33, %s5028_s18  ;;  %3318 = vrot.lane.b32.xlu0 %v3274_v21, %s5028_s18  ;;  %v3137_v13 = vpack.c.bf16 %v2960_v2, %v2959_v56  ;;  %v3129_v28 = vpack.c.bf16 %v2944_v51, %v2943_v24  ;;  %v3277_v4 = vpack.c.bf16 %v6995_v43, %v6991_v27  ;;  %v3151_v33 = vsel %vm892_vm7, %v3125_v59, 0  ;;  %v7445_v59 = vld [vmem:[#allocation83_spill] sm:$0xff] }
 0xe9b   :  { %v3160_v21 = vsel %vm892_vm7, %v3128_v29, 0  ;;  %v2926_v29 = vld [vmem:[%s7446_s8 + $0x8] sm:$0xff] }
 0xe9e   :  { %3306 = vrot.lane.b32.xlu1 %v3268_v26, %s5028_s18  ;;  %3322 = vrot.lane.b32.xlu0 %v3276_v6, %s5028_s18  ;;  %v3163_v26 = vsel %vm892_vm7, %v3129_v28, 0  ;;  %v7444_v6 = vmov 0.0  }
 0xea0   :  { %4108 = vmatpush3.bf16.xpose.msra.mxu0 %v3151_v33  ;;  %v2928_v33 = vld [vmem:[%s7446_s8 + $0x18] sm:$0xf] }
 0xea1   :  { %4432 = vmatprep.subr.msk.bf16.mxu0 %vm892_vm7, %v3134_v1 }
 0xea8   :  { %4110 = vmatpush3.bf16.xpose.msra.mxu0 %v3154_v22 }
 0xea9   :  { %4433 = vmatprep.subr.msk.bf16.mxu0 %vm892_vm7, %v3135_v40 }
 0xeb0   :  { %4112 = vmatpush3.bf16.xpose.msra.mxu0 %v3157_v31 }
 0xeb1   :  { %4434 = vmatprep.subr.msk.bf16.mxu0 %vm892_vm7, %v3136_v49  ;;  %v2925_v49 = vld [vmem:[%s7446_s8] sm:$0xff] }
 0xeb8   :  { %4114 = vmatpush3.bf16.xpose.msra.mxu0 %v3160_v21 }
 0xeb9   :  { %4435 = vmatprep.subr.msk.bf16.mxu0 %vm892_vm7, %v3137_v13  ;;  %v2927_v13 = vld [vmem:[%s7446_s8 + $0x10] sm:$0xf] }
 0xec0   :  { %4116 = vmatpush3.bf16.xpose.msra.mxu0 %v3163_v26 }
 0xec1   :  { %4379 = vmatprep.subr.bf16.mxu0 %v7444_v6 }
 0xec7   :  { %4118 = vmatmul.mubr.msk.bf16.vlgmr.msra.gmra.mrb[84].mxu0 %vm892_vm7, %v7445_v59 }
 0xec8   :  { %4387 = vmatprep.mubr.msk.bf16.mxu0 %vm5026_vm4, %v7444_v6 }
 0xef8   :  { %v3317_v60 = vpop.permute.xlu0 %3316  ;;  %v3313_v32 = vpop.permute.xlu1 %3312 }
 0xefc   :  { %v3321_v17 = vpop.permute.xlu0 %3320  ;;  %v3297_v1 = vpop.permute.xlu1 %3296 }
 0xf00   :  { %v3301_v41 = vpop.permute.xlu1 %3300  ;;  %v3311_v34 = vpop.permute.xlu0 %3310 }
 0xf01   :  { %4119 = vmatprep.subr.bf16.mxu1 %v3311_v34 }
 0xf04   :  { %v3295_v57 = vpop.permute.xlu0 %3294  ;;  %v3305_v5 = vpop.permute.xlu1 %3304 }
 0xf05   :  { %4120 = vmatpush3.bf16.msra.mxu1 %v3295_v57 }
 0xf06   :  { %4121 = vmatprep.subr.bf16.mxu1 %v3313_v32 }
 0xf08   :  { %v3315_v40 = vpop.permute.xlu0 %3314  ;;  %v3299_v19 = vpop.permute.xlu1 %3298 }
 0xf09   :  { %4122 = vmatpush3.bf16.msra.mxu1 %v3297_v1 }
 0xf0a   :  { %4123 = vmatprep.subr.bf16.mxu1 %v3315_v40 }
 0xf0c   :  { %v3319_v50 = vpop.permute.xlu0 %3318  ;;  %v3303_v63 = vpop.permute.xlu1 %3302 }
 0xf0d   :  { %4124 = vmatpush3.bf16.msra.mxu1 %v3299_v19 }
 0xf0e   :  { %4125 = vmatprep.subr.bf16.mxu1 %v3317_v60 }
 0xf10   :  { %v3323_v47 = vpop.permute.xlu0 %3322  ;;  %v3307_v62 = vpop.permute.xlu1 %3306 }
 0xf11   :  { %4126 = vmatpush3.bf16.msra.mxu1 %v3301_v41  ;;  %v7447_v41 = vpack.c.bf16 %v6862_v11, %v6847_v14 }
 0xf12   :  { %4127 = vmatprep.subr.bf16.mxu1 %v3319_v50 }
 0xf15   :  { %4128 = vmatpush3.bf16.msra.mxu1 %v3303_v63 }
 0xf16   :  { %4129 = vmatprep.subr.bf16.mxu1 %v3321_v17 }
 0xf19   :  { %4130 = vmatpush3.bf16.msra.mxu1 %v3305_v5 }
 0xf1a   :  { %4131 = vmatprep.subr.bf16.mxu1 %v3323_v47 }
 0xf1d   :  { %4132 = vmatpush3.bf16.msra.mxu1 %v3307_v62 }
 0xf9a   :  { %v3223_v56 = vpop.f32.mrb[84].mxu0 }
 0xf9b   :  { %v3232_v2 = vmul.f32 0.35355338, %v3223_v56  ;;  %v3225_v24 = vpop.f32.mrb[85].mxu0  ;;  %v7448_v56 = vld [vmem:[#allocation107_spill] sm:$0xff] }
 0xf9c   :  { %v3233_v51 = vmul.f32 0.35355338, %v3225_v24  ;;  %v3227_v12 = vpop.f32.mrb[86].mxu0  ;;  %v3391_v14 = vpack.c.bf16 %v6610_v35, %v7448_v56 }
 0xf9d   :  { %v3236_v44 = vadd.f32 %v3232_v2, %v2925_v49  ;;  %v3234_v28 = vmul.f32 0.35355338, %v3227_v12  ;;  %v3229_v22 = vpop.f32.mrb[87].mxu0 }
 0xf9e   :  { %v3237_v31 = vadd.f32 %v3233_v51, %v2926_v29  ;;  %v3235_v21 = vmul.f32 0.35355338, %v3229_v22  ;;  %v7449_v51 = vld [vmem:[#allocation72_spill] sm:$0xff]  ;;  %v3393_v22 = vpack.c.bf16 %v6660_v38, %v6643_v0  ;;  %v3396_v0 = vpack.c.bf16 %v7431_v61, %v7430_v10 }
 0xf9f   :  { %v3238_v26 = vadd.f32 %v3234_v28, %v2927_v13  ;;  %v3383_v13 = vpack.c.bf16 %v6630_v36, %v7449_v51  ;;  %v7451_v28 = vld [vmem:[#allocation73_spill] sm:$0xff]  ;;  %v3394_v36 = vpack.c.bf16 %v6680_v18, %v6663_v8  ;;  %v3397_v38 = vpack.c.bf16 %v7435_v23, %v7434_v42  ;;  %v4551_v18 = vld [vmem:[%s7452_s9] sm:$0xff]  }
 0xfa0   :  { %v3239_v59 = vadd.f32 %v3235_v21, %v2928_v33  ;;  %v3240_v60 = vmax.f32 %v3236_v44, %v3237_v31  ;;  %v3384_v33 = vpack.c.bf16 %v6650_v46, %v6633_v15  ;;  %v3386_v21 = vpack.c.bf16 %v6690_v25, %v6673_v45  ;;  %4380 = vmatpush3.bf16.msra.mxu0 %v4551_v18  ;;  %v4553_v25 = vld [vmem:[%s7452_s9 + $0x10] sm:$0xff]  }
 0xfa1   :  { %v3243_v32 = vsel %vm472_vm1, %v3238_v26, -inf  ;;  %v3395_v15 = vpack.c.bf16 %v6700_v9, %v6683_v53  ;;  %v3387_v46 = vpack.c.bf16 %v7429_v58, %v7428_v55  ;;  %v3389_v8 = vpack.c.bf16 %v7437_v16, %v7436_v3  ;;  %v4552_v53 = vld [vmem:[%s7452_s9 + $0x8] sm:$0xff]   ;;  %4381 = vmatprep.subr.bf16.mxu0 %v7444_v6  ;;  %v4554_v9 = vld [vmem:[%s7452_s9 + $0x18] sm:$0xff]  }
 0xfa2   :  { %v3244_v17 = vsel %vm472_vm1, %v3239_v59, -inf  ;;  %3241 = vmax.xlane.f32.xlu1 %v3240_v60  ;;  %v3390_v45 = vpack.c.bf16 %v7441_v54, %v7440_v7 }
 0xfa3   :  { %v3245_v1 = vmax.f32 %v3243_v32, %v3244_v17  ;;  %v4555_v17 = vld [vmem:[%s7453_s13] sm:$0xff]  }
 0xfa4   :  { %4382 = vmatpush3.bf16.msra.mxu0 %v4552_v53 }
 0xfa5   :  { %3246 = vmax.xlane.f32.xlu0 %v3245_v1  ;;  %4383 = vmatprep.subr.bf16.mxu0 %v7444_v6 }
 0xfa8   :  { %4384 = vmatpush3.bf16.msra.mxu0 %v4553_v25 }
 0xfa9   :  { %4385 = vmatprep.subr.bf16.mxu0 %v7444_v6 }
 0xfac   :  { %4386 = vmatpush3.bf16.msra.mxu0 %v4554_v9 }
 0xfad   :  { %4391 = vmatprep.subr.bf16.mxu0 %v7444_v6 }
 0xfb3   :  { %3308 = vrot.lane.b32.xlu1 %v7447_v41, %s5028_s18  ;;  %v4556_v41 = vld [vmem:[%s7453_s13 + $0x8] sm:$0xff]  }
 0xfbb   :  { %3324 = vrot.lane.b32.xlu0 %v3277_v4, %s5028_s18 }
0x102f   :  { %v3242_v34 = vpop.xlane.xlu1 %3241 }
0x1030   :  { %v3248_v57 = vsub.f32 %v3236_v44, %v3242_v34  ;;  %v3249_v5 = vsub.f32 %v3237_v31, %v3242_v34  ;;  %v7450_v44 = vld [vmem:[#allocation100_spill] sm:$0xff]  ;;  %v3385_v31 = vpack.c.bf16 %v6670_v52, %v6653_v30  ;;  %v3388_v30 = vpack.c.bf16 %v7433_v39, %v7432_v20  ;;  %v4557_v34 = vld [vmem:[%s7453_s13 + $0x10] sm:$0xff]  }
0x1031   :  { %v3392_v35 = vpack.c.bf16 %v7451_v28, %v7450_v44  ;;  %v3398_v52 = vpack.c.bf16 %v7439_v37, %v7438_v48 }
0x1032   :  { %v3252_v40 = vmul.f32 1.442695, %v3248_v57  ;;  %v3254_v19 = vmul.f32 1.442695, %v3249_v5  ;;  %v3247_v50 = vpop.xlane.xlu0 %3246  ;;  %v4558_v57 = vld [vmem:[%s7453_s13 + $0x18] sm:$0xff]  }
0x1033   :  { %v3250_v63 = vsub.f32 %v3238_v26, %v3247_v50  ;;  %v3251_v47 = vsub.f32 %v3239_v59, %v3247_v50  ;;  %v3309_v2 = vpop.permute.xlu1 %3308  ;;  %v3915_v5 = vld [vmem:[#allocation15] ss:$0 sm:$0xff] }
0x1034   :  { %4633 = vpow2.f32 %v3252_v40 }
0x1035   :  { %v3256_v62 = vmul.f32 1.442695, %v3250_v63  ;;  %v3258_v49 = vmul.f32 1.442695, %v3251_v47  ;;  %4635 = vpow2.f32 %v3254_v19 }
0x1036   :  { %v3325_v11 = vpop.permute.xlu0 %3324 }
0x1037   :  { %4637 = vpow2.f32 %v3256_v62  ;;  %4133 = vmatprep.subr.bf16.mxu1 %v3325_v11 }
0x1038   :  { %4639 = vpow2.f32 %v3258_v49  ;;  %4134 = vmatpush3.bf16.msra.mxu1 %v3309_v2  ;;  %v7455_v49 = vld [vmem:[#allocation89_spill] sm:$0xff] }
0x1039   :  { %4141 = vmatprep.subr.bf16.mxu1 %v3391_v14  ;;  %v7456_v14 = vld [vmem:[#allocation82_spill] sm:$0xff] }
0x103e   :  { %v4634_v27 = vpop.eup %4633 }
0x103f   :  { %v4636_v43 = vpop.eup %4635 }
0x1041   :  { %v4638_v4 = vpop.eup %4637 }
0x1042   :  { %v4640_v29 = vpop.eup %4639  ;;  %v3260_v24 = vpack.c.bf16 %v4638_v4, %v4634_v27  ;;  %v4559_v27 = vld [vmem:[%s7454_s12] sm:$0xff]   ;;  %v3921_v4 = vld [vmem:[#allocation16] ss:$0 sm:$0xff] }
0x1043   :  { %v3261_v12 = vpack.c.bf16 %v4640_v29, %v4636_v43  ;;  %v4560_v43 = vld [vmem:[%s7454_s12 + $0x8] sm:$0xff]  }
0x1045   :  { %3374 = vmatprep.mubr.bf16.mxu1 %v3261_v12 }
0x1046   :  { %3375 = vmatmul.mubr.bf16.vlgmr.msra.gmra.mrb[72].mxu1 %v3260_v24 }
0x1047   :  { %4142 = vmatpush3.bf16.msra.mxu1 %v3383_v13  ;;  %3431 = vmatprep.mubr.bf16.mxu1 %v3261_v12 }
0x1048   :  { %4143 = vmatprep.subr.bf16.mxu1 %v3392_v35 }
0x104b   :  { %4144 = vmatpush3.bf16.msra.mxu1 %v3384_v33  ;;  %v4561_v33 = vld [vmem:[%s5282_s27] sm:$0xff]  }
0x104c   :  { %4145 = vmatprep.subr.bf16.mxu1 %v3393_v22 }
0x104f   :  { %4146 = vmatpush3.bf16.msra.mxu1 %v3385_v31  ;;  %v4562_v31 = vld [vmem:[%s5282_s27 + $0x8] sm:$0xff]  }
0x1050   :  { %4147 = vmatprep.subr.bf16.mxu1 %v3394_v36  ;;  %v3927_v36 = vld [vmem:[#allocation18] ss:$0 sm:$0xff] }
0x1053   :  { %4148 = vmatpush3.bf16.msra.mxu1 %v3386_v21 }
0x1054   :  { %4149 = vmatprep.subr.bf16.mxu1 %v3395_v15 }
0x1057   :  { %4150 = vmatpush3.bf16.msra.mxu1 %v3387_v46 }
0x1058   :  { %4151 = vmatprep.subr.bf16.mxu1 %v3396_v0 }
0x105b   :  { %4152 = vmatpush3.bf16.msra.mxu1 %v3388_v30 }
0x105c   :  { %4153 = vmatprep.subr.bf16.mxu1 %v3397_v38 }
0x105f   :  { %4154 = vmatpush3.bf16.msra.mxu1 %v3389_v8 }
0x1060   :  { %4155 = vmatprep.subr.bf16.mxu1 %v3398_v52  ;;  %v3931_v52 = vld [vmem:[#allocation19] ss:$0 sm:$0xff] }
0x1063   :  { %4156 = vmatpush3.bf16.msra.mxu1 %v3390_v45 }
0x1064   :  { %4403 = vmatprep.subr.bf16.mxu1 %v7444_v6 }
0x1066   :  { %3432 = vmatmul.mubr.bf16.vlgmr.msra.gmra.mrb[76].mxu1 %v3260_v24 }
0x1067   :  { %4407 = vmatprep.mubr.msk.bf16.mxu1 %vm5026_vm4, %v7444_v6  ;;  %4404 = vmatpush3.bf16.msra.mxu1 %v4559_v27 }
0x1068   :  { %4405 = vmatprep.subr.bf16.mxu1 %v7444_v6 }
0x106b   :  { %4406 = vmatpush3.bf16.msra.mxu1 %v4560_v43 }
0x106c   :  { %4411 = vmatprep.subr.bf16.mxu1 %v7444_v6 }
0x1119   :  { %v4135_v55 = vpop.f32.mrb[72].mxu1 }
0x111a   :  { %v4136_v58 = vpop.f32.mrb[73].mxu1 }
0x111b   :  { %v4137_v10 = vadd.f32 %v4136_v58, %v4135_v55  ;;  %v4138_v61 = vpop.f32.mrb[74].mxu1 }
0x111c   :  { %v4139_v20 = vpop.f32.mrb[75].mxu1 }
0x111d   :  { %v4140_v39 = vadd.f32 %v4139_v20, %v4138_v61 }
0x1139   :  { %v4157_v42 = vpop.f32.mrb[76].mxu1 }
0x113a   :  { %v4158_v23 = vpop.f32.mrb[77].mxu1 }
0x113b   :  { %v4159_v3 = vadd.f32 %v4158_v23, %v4157_v42  ;;  %v4160_v16 = vpop.f32.mrb[78].mxu1 }
0x113c   :  { %v4161_v48 = vpop.f32.mrb[79].mxu1 }
0x113d   :  { %v3440_v37 = vmax.f32 %v4159_v3, 1e-20  ;;  %v4162_v7 = vadd.f32 %v4161_v48, %v4160_v16 }
0x113f   :  { %4641 = vrcp.f32 %v3440_v37  ;;  %v3441_v54 = vmax.f32 %v4162_v7, 1e-20 }
0x1141   :  { %4643 = vrcp.f32 %v3441_v54 }
0x1149   :  { %v4642_v26 = vpop.eup %4641 }
0x114a   :  { %v3443_v59 = vmul.f32 %v4642_v26, %v4137_v10 }
0x114b   :  { %v4644_v60 = vpop.eup %4643 }
0x114c   :  { %v3445_v32 = vmul.f32 %v4644_v60, %v4140_v39 }
0x114e   :  { %v3454_v1 = vpack.c.bf16 %v3445_v32, %v3443_v59 }
0x1150   :  { %4388 = vmatmul.mubr.msk.bf16.vlgmr.msra.gmra.mrb[88].mxu0 %vm892_vm7, %v3454_v1 }
0x1151   :  { %4392 = vmatpush3.bf16.msra.mxu0 %v4555_v17  ;;  %4399 = vmatprep.mubr.msk.bf16.mxu0 %vm5026_vm4, %v7444_v6 }
0x1152   :  { %4393 = vmatprep.subr.bf16.mxu0 %v7444_v6 }
0x1155   :  { %4394 = vmatpush3.bf16.msra.mxu0 %v4556_v41 }
0x1156   :  { %4395 = vmatprep.subr.bf16.mxu0 %v7444_v6 }
0x1159   :  { %4396 = vmatpush3.bf16.msra.mxu0 %v4557_v34 }
0x115a   :  { %4397 = vmatprep.subr.bf16.mxu0 %v7444_v6 }
0x115d   :  { %4398 = vmatpush3.bf16.msra.mxu0 %v4558_v57 }
0x1223   :  { %v3523_v40 = vpop.f32.mrb[88].mxu0 }
0x1224   :  { %v3524_v19 = vadd.f32 %v3915_v5, %v3523_v40  ;;  %v4389_v50 = vpop.f32.mrb[89].mxu0 }
0x1225   :  { %v3526_v63 = vpop.f32.mrb[90].mxu0 }
0x1226   :  { %v3527_v47 = vadd.f32 %v3915_v5, %v3526_v63  ;;  %v4390_v62 = vpop.f32.mrb[91].mxu0  ;;  %v3530_v56 = vadd.f32 %v3524_v19, %v7455_v49 }
0x1228   :  { %v3531_v11 = vadd.f32 %v3527_v47, %v7456_v14 }
0x122a   :  { %v3540_v2 = vpack.c.bf16 %v3531_v11, %v3530_v56 }
0x122c   :  { %4400 = vmatmul.mubr.msk.bf16.vlgmr.msra.gmra.mrb[92].mxu0 %vm892_vm7, %v3540_v2 }
0x12ff   :  { %v3609_v29 = vpop.f32.mrb[92].mxu0 }
0x1300   :  { %v3610_v24 = vadd.f32 %v3921_v4, %v3609_v29  ;;  %v4401_v51 = vpop.f32.mrb[93].mxu0 }
0x1301   :  { %v3612_v13 = vpop.f32.mrb[94].mxu0 }
0x1302   :  { %v3613_v12 = vadd.f32 %v3921_v4, %v3612_v13  ;;  %v4402_v44 = vpop.f32.mrb[95].mxu0  ;;  %v3616_v28 = vmax.f32 %v3610_v24, 0.0 }
0x1304   :  { %v3617_v35 = vmax.f32 %v3613_v12, 0.0 }
0x1306   :  { %v3622_v22 = vpack.c.bf16 %v3617_v35, %v3616_v28 }
0x1308   :  { %4408 = vmatmul.mubr.msk.bf16.vlgmr.msra.gmra.mrb[80].mxu1 %vm561_vm6, %v3622_v22 }
0x1309   :  { %4412 = vmatpush3.bf16.msra.mxu1 %v4561_v33  ;;  %4415 = vmatprep.mubr.msk.bf16.mxu1 %vm5026_vm4, %v7444_v6 }
0x130a   :  { %4413 = vmatprep.subr.bf16.mxu1 %v7444_v6 }
0x130d   :  { %4414 = vmatpush3.bf16.msra.mxu1 %v4562_v31 }
0x13db   :  { %v3679_v21 = vpop.f32.mrb[80].mxu1 }
0x13dc   :  { %v4409_v15 = vpop.f32.mrb[81].mxu1  ;;  %v3680_v0 = vadd.f32 %v3927_v36, %v3679_v21 }
0x13dd   :  { %v3682_v46 = vpop.f32.mrb[82].mxu1 }
0x13de   :  { %v3683_v30 = vadd.f32 %v3927_v36, %v3682_v46  ;;  %v4410_v38 = vpop.f32.mrb[83].mxu1 }
0x13e0   :  { %v3690_v8 = vpack.c.bf16 %v3683_v30, %v3680_v0 }
0x13e2   :  { %4416 = vmatmul.mubr.msk.bf16.vlgmr.msra.gmra.mrb[84].mxu1 %vm561_vm6, %v3690_v8 }
0x14b5   :  { %v3747_v45 = vpop.f32.mrb[84].mxu1 }
0x14b6   :  { %v3748_v18 = vadd.f32 %v3931_v52, %v3747_v45  ;;  %v4417_v53 = vpop.f32.mrb[85].mxu1 }
0x14b7   :  { %v3750_v25 = vpop.f32.mrb[86].mxu1 }
0x14b8   :  { %3754 = vst [vmem:[%s5292_s24] sm:$0xff] %v3748_v18  ;;  %v3751_v6 = vadd.f32 %v3931_v52, %v3750_v25  ;;  %v4418_v9 = vpop.f32.mrb[87].mxu1 }
0x14ba   :  { %3755 = vst [vmem:[%s5292_s24 + $0x8] sm:$0xf] %v3751_v6 }
0x14bb   :  { %3760 = vsyncpa [#allocation3], 1 }
0x14bc   :  { %3761 = vsyncpa [#allocation5], 1 }
0x14bd   :  { %3762 = vsyncpa [#allocation8], 1 }
0x14be   :  { %3763 = vsyncpa [#allocation11], 1 }
0x14bf   :  { %3764 = vsyncpa [#allocation14], 1 }
0x14c0   :  { %3765 = vsyncpa [#allocation17], 1 }
0x14c1   :  { %3766 = vsyncpa [#allocation20], 1 }

</bundles_post_ra>
